<compile_context>
chip_gen: v7x
topology: tpu7x:2x2x1
jax: 0.10.0
libtpu: 0.0.40
codegen_flags: <defaults>
</compile_context>

<pallas_src>
import math
from functools import partial

import jax
import jax.numpy as jnp
import numpy as np
from jax.experimental import pallas as pl
from jax.experimental.pallas import tpu as pltpu


# ----------------------------------------------------------------- helpers ---
def _round_up(a, m):
    return -(-a // m) * m


def _pick_row_tile(Ho, Wo, target_tokens=512):
    """Pick a row tile so that tokens/tile ~ target, >=2 tiles, divides Ho."""
    tr = max(1, min(Ho, target_tokens // max(Wo, 1)))
    if Ho >= 2:
        tr = min(tr, max(1, Ho // 2))   # >=2 row tiles: pipelining + megacore for small B
    tr = min(tr, 8)                     # bound static unroll of the in-kernel row loop
    while Ho % tr:
        tr -= 1
    return tr


def _vmem_block_bytes(shape, dtype):
    """Conservative VMEM footprint of one block after (sublane, lane) padding."""
    it = np.dtype(dtype).itemsize
    if len(shape) < 2:
        return _round_up(int(np.prod(shape)) * it, 512)
    sub = 8 * (4 // it)                 # f32: 8 sublanes/tile, bf16: 16
    lead = int(np.prod(shape[:-2]))
    return lead * _round_up(shape[-2], sub) * _round_up(shape[-1], 128) * it


# ------------------------------------------------------------------ kernel ---
def _conv_bn_gelu_kernel(x_ref, w_ref, b_ref, o_ref, *, tr, wo, hh, apply_gelu):
    """Fused conv3x3(stride=2,pad=1) + folded BatchNorm + optional exact GELU.

    x_ref : (1, 4*hh, wo+1, Cin)  bf16 space-to-depth padded image (VMEM resident);
                                  row index = parity_plane*hh + out_row + kh//2
    w_ref : (9, Cin, Coutp)       bf16 conv weight with BN scale folded in, tap = kh*3+kw
    b_ref : (1, Coutp)            f32 folded BN bias
    o_ref : (1, tr, wo, Coutp)    output row tile (lane-dense Coutp)
    """
    r0 = pl.program_id(1) * tr
    coutp = o_ref.shape[-1]
    for i in range(tr):                                  # static unroll over rows
        acc = jnp.zeros((wo, coutp), jnp.float32)
        for kh in range(3):
            for kw in range(3):
                plane = (kh % 2) * 2 + (kw % 2)
                row = plane * hh + r0 + i + kh // 2
                a = x_ref[0, row, pl.ds(kw // 2, wo), :]          # (wo, Cin) bf16
                acc += jnp.dot(a, w_ref[kh * 3 + kw],
                               preferred_element_type=jnp.float32)
        y = acc + b_ref[...]                             # folded BN bias (f32)
        if apply_gelu:
            # exact GELU (nn.GELU default): 0.5 * x * (1 + erf(x / sqrt(2))), in f32
            y = 0.5 * y * (1.0 + jax.lax.erf(y * (2.0 ** -0.5)))
        o_ref[0, i] = y.astype(o_ref.dtype)


# ---------------------------------------------------------------- wrappers ---
def conv3x3_bn_block(x_nhwc, w9, bias, *, apply_gelu, out_dtype):
    """One conv3x3(stride=2, pad=1, bias=False) + folded BN (+GELU) block."""
    B, H, W, Cin = x_nhwc.shape
    assert H % 2 == 0 and W % 2 == 0, "even spatial dims assumed (FAN uses 224)"
    Ho, Wo = H // 2, W // 2
    Hh, Wh = Ho + 1, Wo + 1
    Coutp = w9.shape[-1]

    # Space-to-depth parity split (cheap 1x-traffic layout pass, NOT a 9x im2col):
    #   x4[b, (rp*2+cp)*Hh + i, j, c] == pad(x)[b, 2*i+rp, 2*j+cp, c]
    xp = jnp.pad(x_nhwc, ((0, 0), (1, 1), (1, 1), (0, 0)))
    x4 = xp.reshape(B, Hh, 2, Wh, 2, Cin).transpose(0, 2, 4, 1, 3, 5)
    x4 = x4.reshape(B, 4 * Hh, Wh, Cin)

    tr = _pick_row_tile(Ho, Wo)
    grid = (B, Ho // tr)

    vmem_est = (2 * (_vmem_block_bytes((1, 4 * Hh, Wh, Cin), jnp.bfloat16)
                     + _vmem_block_bytes((9, Cin, Coutp), jnp.bfloat16)
                     + _vmem_block_bytes((1, Coutp), jnp.float32)
                     + _vmem_block_bytes((1, tr, Wo, Coutp), out_dtype))
                + 8 * _vmem_block_bytes((Wo, Coutp), jnp.float32))
    vmem_limit = int(min(100 * 2**20, max(32 * 2**20, 2 * vmem_est)))

    out = pl.pallas_call(
        partial(_conv_bn_gelu_kernel, tr=tr, wo=Wo, hh=Hh, apply_gelu=apply_gelu),
        out_shape=jax.ShapeDtypeStruct((B, Ho, Wo, Coutp), out_dtype),
        grid=grid,
        in_specs=[
            # whole space-to-depth image per batch: constant along the row axis
            # -> fetched once per batch, stays VMEM resident across row tiles.
            pl.BlockSpec((1, 4 * Hh, Wh, Cin), lambda b, r: (b, 0, 0, 0)),
            # weight / bias: constant index map -> resident, not re-DMA'd.
            pl.BlockSpec((9, Cin, Coutp), lambda b, r: (0, 0, 0)),
            pl.BlockSpec((1, Coutp), lambda b, r: (0, 0)),
        ],
        out_specs=pl.BlockSpec((1, tr, Wo, Coutp), lambda b, r: (b, r, 0, 0)),
        compiler_params=pltpu.CompilerParams(
            dimension_semantics=("parallel", "parallel"),
            vmem_limit_bytes=vmem_limit),
    )(x4, w9, bias)
    return out                                            # (B, Ho, Wo, Coutp)


def prep_block_params(w_hwio, scale, bias, cin_padded, cout_padded):
    """Fold BN scale into the conv weight, zero-pad channels, cast to bf16."""
    k1, k2, cin, cout = w_hwio.shape
    w = w_hwio * scale[None, None, None, :]               # fold BN scale (trace time)
    w = jnp.pad(w, ((0, 0), (0, 0), (0, cin_padded - cin), (0, cout_padded - cout)))
    w9 = w.reshape(k1 * k2, cin_padded, cout_padded).astype(jnp.bfloat16)
    b = jnp.pad(bias, (0, cout_padded - cout)).astype(jnp.float32).reshape(1, cout_padded)
    return w9, b


def conv_patch_embed_forward(x_nchw, params, embed_dim):
    """Equivalent of ConvPatchEmbed.forward: returns (tokens, (Hp, Wp))."""
    x = jnp.transpose(x_nchw, (0, 2, 3, 1)).astype(jnp.bfloat16)   # NCHW -> NHWC, bf16
    n = len(params)
    cin_p = x.shape[-1]
    for i, (w, scale, bias) in enumerate(params):
        cout = w.shape[-1]
        cout_p = _round_up(cout, 128)                     # lane-dense output channels
        w9, b = prep_block_params(w, scale, bias, cin_p, cout_p)
        last = i == n - 1
        x = conv3x3_bn_block(x, w9, b, apply_gelu=not last,
                             out_dtype=jnp.float32 if last else jnp.bfloat16)
        cin_p = cout_p
    B, Hp, Wp, _ = x.shape
    # PyTorch: flatten(2).transpose(1,2) on NCHW == NHWC reshape; drop channel padding.
    tokens = x[..., :embed_dim].reshape(B, Hp * Wp, embed_dim)
    return tokens, (Hp, Wp)


# --------------------------------------------------------- param synthesis ---
def make_block_params(key, cin, cout, eps=1e-5):
    k1, k2, k3, k4, k5 = jax.random.split(key, 5)
    w = jax.random.normal(k1, (3, 3, cin, cout), jnp.float32) / math.sqrt(9 * cin)
    gamma = 1.0 + 0.1 * jax.random.normal(k2, (cout,), jnp.float32)
    beta = 0.1 * jax.random.normal(k3, (cout,), jnp.float32)
    running_mean = 0.1 * jax.random.normal(k4, (cout,), jnp.float32)
    running_var = 1.0 + 0.1 * jnp.abs(jax.random.normal(k5, (cout,), jnp.float32))
    scale = gamma / jnp.sqrt(running_var + eps)            # fold eval-mode BN
    bias = beta - running_mean * scale
    return w, scale, bias


# --------------------------------------------------------------- reference ---
def reference_forward(x_nchw, params, embed_dim):
    """Pure-XLA reference with the same quantization points (bf16 operands,
    f32 accumulation/epilogue) as the Pallas path."""
    f32 = jnp.float32
    x = jnp.transpose(x_nchw, (0, 2, 3, 1)).astype(jnp.bfloat16).astype(f32)
    n = len(params)
    for i, (w, scale, bias) in enumerate(params):
        wq = (w * scale[None, None, None, :]).astype(jnp.bfloat16).astype(f32)
        x = jax.lax.conv_general_dilated(
            x, wq, window_strides=(2, 2), padding=((1, 1), (1, 1)),
            dimension_numbers=("NHWC", "HWIO", "NHWC"))
        x = x + bias
        if i < n - 1:
            x = jax.nn.gelu(x, approximate=False)
            x = x.astype(jnp.bfloat16).astype(f32)
    B, Hp, Wp, C = x.shape
    return x.reshape(B, Hp * Wp, C), (Hp, Wp)


# -------------------------------------------------------------------- main ---
if __name__ == "__main__":
    key = jax.random.PRNGKey(0)
    B, Cin, H, W = 2, 4, 16, 16
    embed_dim, patch_size = 32, 4                          # patch_size=4 branch

    kx, kp = jax.random.split(key)
    x = jax.random.normal(kx, (B, Cin, H, W), jnp.float32)

    # patch_size == 4 -> channel chain: Cin -> embed_dim//4 -> embed_dim
    dims = [Cin, embed_dim // 4, embed_dim]
    keys = jax.random.split(kp, len(dims) - 1)
    params = [make_block_params(keys[i], dims[i], dims[i + 1])
              for i in range(len(dims) - 1)]

    fwd = jax.jit(conv_patch_embed_forward, static_argnums=2)
    tokens, (Hp, Wp) = fwd(x, params, embed_dim)
    tokens = jax.block_until_ready(tokens)
    Hp, Wp = int(Hp), int(Wp)

    ref_tokens, (Hp_ref, Wp_ref) = reference_forward(x, params, embed_dim)
    ref_tokens = jax.block_until_ready(ref_tokens)

    assert tokens.shape == (B, (H // patch_size) * (W // patch_size), embed_dim)
    assert (Hp, Wp) == (Hp_ref, Wp_ref) == (H // patch_size, W // patch_size)
    np.testing.assert_allclose(np.asarray(tokens), np.asarray(ref_tokens),
                               rtol=5e-3, atol=5e-3)
    print("KERNEL_OK")
</pallas_src>

<mosaic_0001>
module attributes {stable_mosaic.version = 11 : i64} {
  func.func @_conv_bn_gelu_kernel(%arg0: i32, %arg1: i32, %arg2: memref<1x36x9x4xbf16, #tpu.memory_space<vmem>>, %arg3: memref<9x4x128xbf16, #tpu.memory_space<vmem>>, %arg4: memref<1x128xf32, #tpu.memory_space<vmem>>, %arg5: memref<1x4x8x128xbf16, #tpu.memory_space<vmem>>) attributes {dimension_semantics = [#tpu.dimension_semantics<parallel>, #tpu.dimension_semantics<parallel>], iteration_bounds = array<i64: 2, 2>, scalar_prefetch = 0 : i64, scratch_operands = 0 : i64, tpu.core_type = #tpu.core_type<tc>, window_params = [{transform_indices = @transform_0, window_bounds = array<i64: 1, 36, 9, 4>}, {pipeline_mode = #tpu.pipeline_mode<synchronous>, transform_indices = @transform_1, window_bounds = array<i64: 9, 4, 128>}, {pipeline_mode = #tpu.pipeline_mode<synchronous>, transform_indices = @transform_2, window_bounds = array<i64: 1, 128>}, {transform_indices = @transform_3, window_bounds = array<i64: 1, 4, 8, 128>}]} {
    %c4_i32 = arith.constant 4 : i32
    %0 = arith.muli %arg1, %c4_i32 : i32
    %cst = arith.constant 0.000000e+00 : f32
    %1 = vector.broadcast %cst : f32 to vector<8x128xf32>
    %c0_i32 = arith.constant 0 : i32
    %2 = arith.addi %c0_i32, %0 : i32
    %c0_i32_0 = arith.constant 0 : i32
    %3 = arith.addi %2, %c0_i32_0 : i32
    %c0_i32_1 = arith.constant 0 : i32
    %4 = arith.addi %3, %c0_i32_1 : i32
    %c0 = arith.constant 0 : index
    %5 = arith.index_cast %4 : i32 to index
    %c0_2 = arith.constant 0 : index
    %c0_3 = arith.constant 0 : index
    %6 = vector.load %arg2[%c0, %5, %c0_2, %c0_3] : memref<1x36x9x4xbf16, #tpu.memory_space<vmem>>, vector<1x1x8x4xbf16>
    %7 = vector.shape_cast %6 : vector<1x1x8x4xbf16> to vector<8x4xbf16>
    %c0_4 = arith.constant 0 : index
    %c0_5 = arith.constant 0 : index
    %c0_6 = arith.constant 0 : index
    %8 = vector.load %arg3[%c0_4, %c0_5, %c0_6] : memref<9x4x128xbf16, #tpu.memory_space<vmem>>, vector<1x4x128xbf16>
    %9 = vector.shape_cast %8 : vector<1x4x128xbf16> to vector<4x128xbf16>
    %cst_7 = arith.constant dense<0.000000e+00> : vector<8x128xf32>
    %10 = tpu.matmul %7, %9, %cst_7 {dimension_numbers = #tpu.dot_dimension_numbers<[1], [0], [0], [1], [0, 0, 1, 1], [], []>} : vector<8x4xbf16>, vector<4x128xbf16>, vector<8x128xf32> -> vector<8x128xf32>
    %11 = arith.addf %1, %10 : vector<8x128xf32>
    %c9_i32 = arith.constant 9 : i32
    %12 = arith.addi %c9_i32, %0 : i32
    %c0_i32_8 = arith.constant 0 : i32
    %13 = arith.addi %12, %c0_i32_8 : i32
    %c0_i32_9 = arith.constant 0 : i32
    %14 = arith.addi %13, %c0_i32_9 : i32
    %c0_10 = arith.constant 0 : index
    %15 = arith.index_cast %14 : i32 to index
    %c0_11 = arith.constant 0 : index
    %c0_12 = arith.constant 0 : index
    %16 = vector.load %arg2[%c0_10, %15, %c0_11, %c0_12] : memref<1x36x9x4xbf16, #tpu.memory_space<vmem>>, vector<1x1x8x4xbf16>
    %17 = vector.shape_cast %16 : vector<1x1x8x4xbf16> to vector<8x4xbf16>
    %c1 = arith.constant 1 : index
    %c0_13 = arith.constant 0 : index
    %c0_14 = arith.constant 0 : index
    %18 = vector.load %arg3[%c1, %c0_13, %c0_14] : memref<9x4x128xbf16, #tpu.memory_space<vmem>>, vector<1x4x128xbf16>
    %19 = vector.shape_cast %18 : vector<1x4x128xbf16> to vector<4x128xbf16>
    %cst_15 = arith.constant dense<0.000000e+00> : vector<8x128xf32>
    %20 = tpu.matmul %17, %19, %cst_15 {dimension_numbers = #tpu.dot_dimension_numbers<[1], [0], [0], [1], [0, 0, 1, 1], [], []>} : vector<8x4xbf16>, vector<4x128xbf16>, vector<8x128xf32> -> vector<8x128xf32>
    %21 = arith.addf %11, %20 : vector<8x128xf32>
    %c0_i32_16 = arith.constant 0 : i32
    %22 = arith.addi %c0_i32_16, %0 : i32
    %c0_i32_17 = arith.constant 0 : i32
    %23 = arith.addi %22, %c0_i32_17 : i32
    %c0_i32_18 = arith.constant 0 : i32
    %24 = arith.addi %23, %c0_i32_18 : i32
    %c0_19 = arith.constant 0 : index
    %25 = arith.index_cast %24 : i32 to index
    %c1_20 = arith.constant 1 : index
    %c0_21 = arith.constant 0 : index
    %26 = vector.load %arg2[%c0_19, %25, %c1_20, %c0_21] : memref<1x36x9x4xbf16, #tpu.memory_space<vmem>>, vector<1x1x8x4xbf16>
    %27 = vector.shape_cast %26 : vector<1x1x8x4xbf16> to vector<8x4xbf16>
    %c2 = arith.constant 2 : index
    %c0_22 = arith.constant 0 : index
    %c0_23 = arith.constant 0 : index
    %28 = vector.load %arg3[%c2, %c0_22, %c0_23] : memref<9x4x128xbf16, #tpu.memory_space<vmem>>, vector<1x4x128xbf16>
    %29 = vector.shape_cast %28 : vector<1x4x128xbf16> to vector<4x128xbf16>
    %cst_24 = arith.constant dense<0.000000e+00> : vector<8x128xf32>
    %30 = tpu.matmul %27, %29, %cst_24 {dimension_numbers = #tpu.dot_dimension_numbers<[1], [0], [0], [1], [0, 0, 1, 1], [], []>} : vector<8x4xbf16>, vector<4x128xbf16>, vector<8x128xf32> -> vector<8x128xf32>
    %31 = arith.addf %21, %30 : vector<8x128xf32>
    %c18_i32 = arith.constant 18 : i32
    %32 = arith.addi %c18_i32, %0 : i32
    %c0_i32_25 = arith.constant 0 : i32
    %33 = arith.addi %32, %c0_i32_25 : i32
    %c0_i32_26 = arith.constant 0 : i32
    %34 = arith.addi %33, %c0_i32_26 : i32
    %c0_27 = arith.constant 0 : index
    %35 = arith.index_cast %34 : i32 to index
    %c0_28 = arith.constant 0 : index
    %c0_29 = arith.constant 0 : index
    %36 = vector.load %arg2[%c0_27, %35, %c0_28, %c0_29] : memref<1x36x9x4xbf16, #tpu.memory_space<vmem>>, vector<1x1x8x4xbf16>
    %37 = vector.shape_cast %36 : vector<1x1x8x4xbf16> to vector<8x4xbf16>
    %c3 = arith.constant 3 : index
    %c0_30 = arith.constant 0 : index
    %c0_31 = arith.constant 0 : index
    %38 = vector.load %arg3[%c3, %c0_30, %c0_31] : memref<9x4x128xbf16, #tpu.memory_space<vmem>>, vector<1x4x128xbf16>
    %39 = vector.shape_cast %38 : vector<1x4x128xbf16> to vector<4x128xbf16>
    %cst_32 = arith.constant dense<0.000000e+00> : vector<8x128xf32>
    %40 = tpu.matmul %37, %39, %cst_32 {dimension_numbers = #tpu.dot_dimension_numbers<[1], [0], [0], [1], [0, 0, 1, 1], [], []>} : vector<8x4xbf16>, vector<4x128xbf16>, vector<8x128xf32> -> vector<8x128xf32>
    %41 = arith.addf %31, %40 : vector<8x128xf32>
    %c27_i32 = arith.constant 27 : i32
    %42 = arith.addi %c27_i32, %0 : i32
    %c0_i32_33 = arith.constant 0 : i32
    %43 = arith.addi %42, %c0_i32_33 : i32
    %c0_i32_34 = arith.constant 0 : i32
    %44 = arith.addi %43, %c0_i32_34 : i32
    %c0_35 = arith.constant 0 : index
    %45 = arith.index_cast %44 : i32 to index
    %c0_36 = arith.constant 0 : index
    %c0_37 = arith.constant 0 : index
    %46 = vector.load %arg2[%c0_35, %45, %c0_36, %c0_37] : memref<1x36x9x4xbf16, #tpu.memory_space<vmem>>, vector<1x1x8x4xbf16>
    %47 = vector.shape_cast %46 : vector<1x1x8x4xbf16> to vector<8x4xbf16>
    %c4 = arith.constant 4 : index
    %c0_38 = arith.constant 0 : index
    %c0_39 = arith.constant 0 : index
    %48 = vector.load %arg3[%c4, %c0_38, %c0_39] : memref<9x4x128xbf16, #tpu.memory_space<vmem>>, vector<1x4x128xbf16>
    %49 = vector.shape_cast %48 : vector<1x4x128xbf16> to vector<4x128xbf16>
    %cst_40 = arith.constant dense<0.000000e+00> : vector<8x128xf32>
    %50 = tpu.matmul %47, %49, %cst_40 {dimension_numbers = #tpu.dot_dimension_numbers<[1], [0], [0], [1], [0, 0, 1, 1], [], []>} : vector<8x4xbf16>, vector<4x128xbf16>, vector<8x128xf32> -> vector<8x128xf32>
    %51 = arith.addf %41, %50 : vector<8x128xf32>
    %c18_i32_41 = arith.constant 18 : i32
    %52 = arith.addi %c18_i32_41, %0 : i32
    %c0_i32_42 = arith.constant 0 : i32
    %53 = arith.addi %52, %c0_i32_42 : i32
    %c0_i32_43 = arith.constant 0 : i32
    %54 = arith.addi %53, %c0_i32_43 : i32
    %c0_44 = arith.constant 0 : index
    %55 = arith.index_cast %54 : i32 to index
    %c1_45 = arith.constant 1 : index
    %c0_46 = arith.constant 0 : index
    %56 = vector.load %arg2[%c0_44, %55, %c1_45, %c0_46] : memref<1x36x9x4xbf16, #tpu.memory_space<vmem>>, vector<1x1x8x4xbf16>
    %57 = vector.shape_cast %56 : vector<1x1x8x4xbf16> to vector<8x4xbf16>
    %c5 = arith.constant 5 : index
    %c0_47 = arith.constant 0 : index
    %c0_48 = arith.constant 0 : index
    %58 = vector.load %arg3[%c5, %c0_47, %c0_48] : memref<9x4x128xbf16, #tpu.memory_space<vmem>>, vector<1x4x128xbf16>
    %59 = vector.shape_cast %58 : vector<1x4x128xbf16> to vector<4x128xbf16>
    %cst_49 = arith.constant dense<0.000000e+00> : vector<8x128xf32>
    %60 = tpu.matmul %57, %59, %cst_49 {dimension_numbers = #tpu.dot_dimension_numbers<[1], [0], [0], [1], [0, 0, 1, 1], [], []>} : vector<8x4xbf16>, vector<4x128xbf16>, vector<8x128xf32> -> vector<8x128xf32>
    %61 = arith.addf %51, %60 : vector<8x128xf32>
    %c0_i32_50 = arith.constant 0 : i32
    %62 = arith.addi %c0_i32_50, %0 : i32
    %c0_i32_51 = arith.constant 0 : i32
    %63 = arith.addi %62, %c0_i32_51 : i32
    %c1_i32 = arith.constant 1 : i32
    %64 = arith.addi %63, %c1_i32 : i32
    %c0_52 = arith.constant 0 : index
    %65 = arith.index_cast %64 : i32 to index
    %c0_53 = arith.constant 0 : index
    %c0_54 = arith.constant 0 : index
    %66 = vector.load %arg2[%c0_52, %65, %c0_53, %c0_54] : memref<1x36x9x4xbf16, #tpu.memory_space<vmem>>, vector<1x1x8x4xbf16>
    %67 = vector.shape_cast %66 : vector<1x1x8x4xbf16> to vector<8x4xbf16>
    %c6 = arith.constant 6 : index
    %c0_55 = arith.constant 0 : index
    %c0_56 = arith.constant 0 : index
    %68 = vector.load %arg3[%c6, %c0_55, %c0_56] : memref<9x4x128xbf16, #tpu.memory_space<vmem>>, vector<1x4x128xbf16>
    %69 = vector.shape_cast %68 : vector<1x4x128xbf16> to vector<4x128xbf16>
    %cst_57 = arith.constant dense<0.000000e+00> : vector<8x128xf32>
    %70 = tpu.matmul %67, %69, %cst_57 {dimension_numbers = #tpu.dot_dimension_numbers<[1], [0], [0], [1], [0, 0, 1, 1], [], []>} : vector<8x4xbf16>, vector<4x128xbf16>, vector<8x128xf32> -> vector<8x128xf32>
    %71 = arith.addf %61, %70 : vector<8x128xf32>
    %c9_i32_58 = arith.constant 9 : i32
    %72 = arith.addi %c9_i32_58, %0 : i32
    %c0_i32_59 = arith.constant 0 : i32
    %73 = arith.addi %72, %c0_i32_59 : i32
    %c1_i32_60 = arith.constant 1 : i32
    %74 = arith.addi %73, %c1_i32_60 : i32
    %c0_61 = arith.constant 0 : index
    %75 = arith.index_cast %74 : i32 to index
    %c0_62 = arith.constant 0 : index
    %c0_63 = arith.constant 0 : index
    %76 = vector.load %arg2[%c0_61, %75, %c0_62, %c0_63] : memref<1x36x9x4xbf16, #tpu.memory_space<vmem>>, vector<1x1x8x4xbf16>
    %77 = vector.shape_cast %76 : vector<1x1x8x4xbf16> to vector<8x4xbf16>
    %c7 = arith.constant 7 : index
    %c0_64 = arith.constant 0 : index
    %c0_65 = arith.constant 0 : index
    %78 = vector.load %arg3[%c7, %c0_64, %c0_65] : memref<9x4x128xbf16, #tpu.memory_space<vmem>>, vector<1x4x128xbf16>
    %79 = vector.shape_cast %78 : vector<1x4x128xbf16> to vector<4x128xbf16>
    %cst_66 = arith.constant dense<0.000000e+00> : vector<8x128xf32>
    %80 = tpu.matmul %77, %79, %cst_66 {dimension_numbers = #tpu.dot_dimension_numbers<[1], [0], [0], [1], [0, 0, 1, 1], [], []>} : vector<8x4xbf16>, vector<4x128xbf16>, vector<8x128xf32> -> vector<8x128xf32>
    %81 = arith.addf %71, %80 : vector<8x128xf32>
    %c0_i32_67 = arith.constant 0 : i32
    %82 = arith.addi %c0_i32_67, %0 : i32
    %c0_i32_68 = arith.constant 0 : i32
    %83 = arith.addi %82, %c0_i32_68 : i32
    %c1_i32_69 = arith.constant 1 : i32
    %84 = arith.addi %83, %c1_i32_69 : i32
    %c0_70 = arith.constant 0 : index
    %85 = arith.index_cast %84 : i32 to index
    %c1_71 = arith.constant 1 : index
    %c0_72 = arith.constant 0 : index
    %86 = vector.load %arg2[%c0_70, %85, %c1_71, %c0_72] : memref<1x36x9x4xbf16, #tpu.memory_space<vmem>>, vector<1x1x8x4xbf16>
    %87 = vector.shape_cast %86 : vector<1x1x8x4xbf16> to vector<8x4xbf16>
    %c8 = arith.constant 8 : index
    %c0_73 = arith.constant 0 : index
    %c0_74 = arith.constant 0 : index
    %88 = vector.load %arg3[%c8, %c0_73, %c0_74] : memref<9x4x128xbf16, #tpu.memory_space<vmem>>, vector<1x4x128xbf16>
    %89 = vector.shape_cast %88 : vector<1x4x128xbf16> to vector<4x128xbf16>
    %cst_75 = arith.constant dense<0.000000e+00> : vector<8x128xf32>
    %90 = tpu.matmul %87, %89, %cst_75 {dimension_numbers = #tpu.dot_dimension_numbers<[1], [0], [0], [1], [0, 0, 1, 1], [], []>} : vector<8x4xbf16>, vector<4x128xbf16>, vector<8x128xf32> -> vector<8x128xf32>
    %91 = arith.addf %81, %90 : vector<8x128xf32>
    %c0_76 = arith.constant 0 : index
    %c0_77 = arith.constant 0 : index
    %92 = vector.load %arg4[%c0_76, %c0_77] : memref<1x128xf32, #tpu.memory_space<vmem>>, vector<1x128xf32>
    %93 = vector.broadcast %92 : vector<1x128xf32> to vector<8x128xf32>
    %94 = arith.addf %91, %93 : vector<8x128xf32>
    %cst_78 = arith.constant 5.000000e-01 : f32
    %95 = vector.broadcast %cst_78 : f32 to vector<8x128xf32>
    %96 = arith.mulf %95, %94 : vector<8x128xf32>
    %cst_79 = arith.constant 0.707106769 : f32
    %97 = vector.broadcast %cst_79 : f32 to vector<8x128xf32>
    %98 = arith.mulf %94, %97 : vector<8x128xf32>
    %99 = math.erf %98 : vector<8x128xf32>
    %cst_80 = arith.constant 1.000000e+00 : f32
    %100 = vector.broadcast %cst_80 : f32 to vector<8x128xf32>
    %101 = arith.addf %100, %99 : vector<8x128xf32>
    %102 = arith.mulf %96, %101 : vector<8x128xf32>
    %103 = arith.truncf %102 : vector<8x128xf32> to vector<8x128xbf16>
    %c0_81 = arith.constant 0 : index
    %c0_82 = arith.constant 0 : index
    %c0_83 = arith.constant 0 : index
    %c0_84 = arith.constant 0 : index
    %104 = vector.load %arg5[%c0_81, %c0_82, %c0_83, %c0_84] : memref<1x4x8x128xbf16, #tpu.memory_space<vmem>>, vector<1x1x8x128xbf16>
    %105 = vector.shape_cast %104 : vector<1x1x8x128xbf16> to vector<8x128xbf16>
    %106 = vector.shape_cast %103 : vector<8x128xbf16> to vector<1x1x8x128xbf16>
    tpu.vector_store %arg5[%c0_81, %c0_82, %c0_83, %c0_84], %106 {strides = array<i32>} : memref<1x4x8x128xbf16, #tpu.memory_space<vmem>>, vector<1x1x8x128xbf16>,
    %cst_85 = arith.constant 0.000000e+00 : f32
    %107 = vector.broadcast %cst_85 : f32 to vector<8x128xf32>
    %c0_i32_86 = arith.constant 0 : i32
    %108 = arith.addi %c0_i32_86, %0 : i32
    %c1_i32_87 = arith.constant 1 : i32
    %109 = arith.addi %108, %c1_i32_87 : i32
    %c0_i32_88 = arith.constant 0 : i32
    %110 = arith.addi %109, %c0_i32_88 : i32
    %c0_89 = arith.constant 0 : index
    %111 = arith.index_cast %110 : i32 to index
    %c0_90 = arith.constant 0 : index
    %c0_91 = arith.constant 0 : index
    %112 = vector.load %arg2[%c0_89, %111, %c0_90, %c0_91] : memref<1x36x9x4xbf16, #tpu.memory_space<vmem>>, vector<1x1x8x4xbf16>
    %113 = vector.shape_cast %112 : vector<1x1x8x4xbf16> to vector<8x4xbf16>
    %c0_92 = arith.constant 0 : index
    %c0_93 = arith.constant 0 : index
    %c0_94 = arith.constant 0 : index
    %114 = vector.load %arg3[%c0_92, %c0_93, %c0_94] : memref<9x4x128xbf16, #tpu.memory_space<vmem>>, vector<1x4x128xbf16>
    %115 = vector.shape_cast %114 : vector<1x4x128xbf16> to vector<4x128xbf16>
    %cst_95 = arith.constant dense<0.000000e+00> : vector<8x128xf32>
    %116 = tpu.matmul %113, %115, %cst_95 {dimension_numbers = #tpu.dot_dimension_numbers<[1], [0], [0], [1], [0, 0, 1, 1], [], []>} : vector<8x4xbf16>, vector<4x128xbf16>, vector<8x128xf32> -> vector<8x128xf32>
    %117 = arith.addf %107, %116 : vector<8x128xf32>
    %c9_i32_96 = arith.constant 9 : i32
    %118 = arith.addi %c9_i32_96, %0 : i32
    %c1_i32_97 = arith.constant 1 : i32
    %119 = arith.addi %118, %c1_i32_97 : i32
    %c0_i32_98 = arith.constant 0 : i32
    %120 = arith.addi %119, %c0_i32_98 : i32
    %c0_99 = arith.constant 0 : index
    %121 = arith.index_cast %120 : i32 to index
    %c0_100 = arith.constant 0 : index
    %c0_101 = arith.constant 0 : index
    %122 = vector.load %arg2[%c0_99, %121, %c0_100, %c0_101] : memref<1x36x9x4xbf16, #tpu.memory_space<vmem>>, vector<1x1x8x4xbf16>
    %123 = vector.shape_cast %122 : vector<1x1x8x4xbf16> to vector<8x4xbf16>
    %c1_102 = arith.constant 1 : index
    %c0_103 = arith.constant 0 : index
    %c0_104 = arith.constant 0 : index
    %124 = vector.load %arg3[%c1_102, %c0_103, %c0_104] : memref<9x4x128xbf16, #tpu.memory_space<vmem>>, vector<1x4x128xbf16>
    %125 = vector.shape_cast %124 : vector<1x4x128xbf16> to vector<4x128xbf16>
    %cst_105 = arith.constant dense<0.000000e+00> : vector<8x128xf32>
    %126 = tpu.matmul %123, %125, %cst_105 {dimension_numbers = #tpu.dot_dimension_numbers<[1], [0], [0], [1], [0, 0, 1, 1], [], []>} : vector<8x4xbf16>, vector<4x128xbf16>, vector<8x128xf32> -> vector<8x128xf32>
    %127 = arith.addf %117, %126 : vector<8x128xf32>
    %c0_i32_106 = arith.constant 0 : i32
    %128 = arith.addi %c0_i32_106, %0 : i32
    %c1_i32_107 = arith.constant 1 : i32
    %129 = arith.addi %128, %c1_i32_107 : i32
    %c0_i32_108 = arith.constant 0 : i32
    %130 = arith.addi %129, %c0_i32_108 : i32
    %c0_109 = arith.constant 0 : index
    %131 = arith.index_cast %130 : i32 to index
    %c1_110 = arith.constant 1 : index
    %c0_111 = arith.constant 0 : index
    %132 = vector.load %arg2[%c0_109, %131, %c1_110, %c0_111] : memref<1x36x9x4xbf16, #tpu.memory_space<vmem>>, vector<1x1x8x4xbf16>
    %133 = vector.shape_cast %132 : vector<1x1x8x4xbf16> to vector<8x4xbf16>
    %c2_112 = arith.constant 2 : index
    %c0_113 = arith.constant 0 : index
    %c0_114 = arith.constant 0 : index
    %134 = vector.load %arg3[%c2_112, %c0_113, %c0_114] : memref<9x4x128xbf16, #tpu.memory_space<vmem>>, vector<1x4x128xbf16>
    %135 = vector.shape_cast %134 : vector<1x4x128xbf16> to vector<4x128xbf16>
    %cst_115 = arith.constant dense<0.000000e+00> : vector<8x128xf32>
    %136 = tpu.matmul %133, %135, %cst_115 {dimension_numbers = #tpu.dot_dimension_numbers<[1], [0], [0], [1], [0, 0, 1, 1], [], []>} : vector<8x4xbf16>, vector<4x128xbf16>, vector<8x128xf32> -> vector<8x128xf32>
    %137 = arith.addf %127, %136 : vector<8x128xf32>
    %c18_i32_116 = arith.constant 18 : i32
    %138 = arith.addi %c18_i32_116, %0 : i32
    %c1_i32_117 = arith.constant 1 : i32
    %139 = arith.addi %138, %c1_i32_117 : i32
    %c0_i32_118 = arith.constant 0 : i32
    %140 = arith.addi %139, %c0_i32_118 : i32
    %c0_119 = arith.constant 0 : index
    %141 = arith.index_cast %140 : i32 to index
    %c0_120 = arith.constant 0 : index
    %c0_121 = arith.constant 0 : index
    %142 = vector.load %arg2[%c0_119, %141, %c0_120, %c0_121] : memref<1x36x9x4xbf16, #tpu.memory_space<vmem>>, vector<1x1x8x4xbf16>
    %143 = vector.shape_cast %142 : vector<1x1x8x4xbf16> to vector<8x4xbf16>
    %c3_122 = arith.constant 3 : index
    %c0_123 = arith.constant 0 : index
    %c0_124 = arith.constant 0 : index
    %144 = vector.load %arg3[%c3_122, %c0_123, %c0_124] : memref<9x4x128xbf16, #tpu.memory_space<vmem>>, vector<1x4x128xbf16>
    %145 = vector.shape_cast %144 : vector<1x4x128xbf16> to vector<4x128xbf16>
    %cst_125 = arith.constant dense<0.000000e+00> : vector<8x128xf32>
    %146 = tpu.matmul %143, %145, %cst_125 {dimension_numbers = #tpu.dot_dimension_numbers<[1], [0], [0], [1], [0, 0, 1, 1], [], []>} : vector<8x4xbf16>, vector<4x128xbf16>, vector<8x128xf32> -> vector<8x128xf32>
    %147 = arith.addf %137, %146 : vector<8x128xf32>
    %c27_i32_126 = arith.constant 27 : i32
    %148 = arith.addi %c27_i32_126, %0 : i32
    %c1_i32_127 = arith.constant 1 : i32
    %149 = arith.addi %148, %c1_i32_127 : i32
    %c0_i32_128 = arith.constant 0 : i32
    %150 = arith.addi %149, %c0_i32_128 : i32
    %c0_129 = arith.constant 0 : index
    %151 = arith.index_cast %150 : i32 to index
    %c0_130 = arith.constant 0 : index
    %c0_131 = arith.constant 0 : index
    %152 = vector.load %arg2[%c0_129, %151, %c0_130, %c0_131] : memref<1x36x9x4xbf16, #tpu.memory_space<vmem>>, vector<1x1x8x4xbf16>
    %153 = vector.shape_cast %152 : vector<1x1x8x4xbf16> to vector<8x4xbf16>
    %c4_132 = arith.constant 4 : index
    %c0_133 = arith.constant 0 : index
    %c0_134 = arith.constant 0 : index
    %154 = vector.load %arg3[%c4_132, %c0_133, %c0_134] : memref<9x4x128xbf16, #tpu.memory_space<vmem>>, vector<1x4x128xbf16>
    %155 = vector.shape_cast %154 : vector<1x4x128xbf16> to vector<4x128xbf16>
    %cst_135 = arith.constant dense<0.000000e+00> : vector<8x128xf32>
    %156 = tpu.matmul %153, %155, %cst_135 {dimension_numbers = #tpu.dot_dimension_numbers<[1], [0], [0], [1], [0, 0, 1, 1], [], []>} : vector<8x4xbf16>, vector<4x128xbf16>, vector<8x128xf32> -> vector<8x128xf32>
    %157 = arith.addf %147, %156 : vector<8x128xf32>
    %c18_i32_136 = arith.constant 18 : i32
    %158 = arith.addi %c18_i32_136, %0 : i32
    %c1_i32_137 = arith.constant 1 : i32
    %159 = arith.addi %158, %c1_i32_137 : i32
    %c0_i32_138 = arith.constant 0 : i32
    %160 = arith.addi %159, %c0_i32_138 : i32
    %c0_139 = arith.constant 0 : index
    %161 = arith.index_cast %160 : i32 to index
    %c1_140 = arith.constant 1 : index
    %c0_141 = arith.constant 0 : index
    %162 = vector.load %arg2[%c0_139, %161, %c1_140, %c0_141] : memref<1x36x9x4xbf16, #tpu.memory_space<vmem>>, vector<1x1x8x4xbf16>
    %163 = vector.shape_cast %162 : vector<1x1x8x4xbf16> to vector<8x4xbf16>
    %c5_142 = arith.constant 5 : index
    %c0_143 = arith.constant 0 : index
    %c0_144 = arith.constant 0 : index
    %164 = vector.load %arg3[%c5_142, %c0_143, %c0_144] : memref<9x4x128xbf16, #tpu.memory_space<vmem>>, vector<1x4x128xbf16>
    %165 = vector.shape_cast %164 : vector<1x4x128xbf16> to vector<4x128xbf16>
    %cst_145 = arith.constant dense<0.000000e+00> : vector<8x128xf32>
    %166 = tpu.matmul %163, %165, %cst_145 {dimension_numbers = #tpu.dot_dimension_numbers<[1], [0], [0], [1], [0, 0, 1, 1], [], []>} : vector<8x4xbf16>, vector<4x128xbf16>, vector<8x128xf32> -> vector<8x128xf32>
    %167 = arith.addf %157, %166 : vector<8x128xf32>
    %c0_i32_146 = arith.constant 0 : i32
    %168 = arith.addi %c0_i32_146, %0 : i32
    %c1_i32_147 = arith.constant 1 : i32
    %169 = arith.addi %168, %c1_i32_147 : i32
    %c1_i32_148 = arith.constant 1 : i32
    %170 = arith.addi %169, %c1_i32_148 : i32
    %c0_149 = arith.constant 0 : index
    %171 = arith.index_cast %170 : i32 to index
    %c0_150 = arith.constant 0 : index
    %c0_151 = arith.constant 0 : index
    %172 = vector.load %arg2[%c0_149, %171, %c0_150, %c0_151] : memref<1x36x9x4xbf16, #tpu.memory_space<vmem>>, vector<1x1x8x4xbf16>
    %173 = vector.shape_cast %172 : vector<1x1x8x4xbf16> to vector<8x4xbf16>
    %c6_152 = arith.constant 6 : index
    %c0_153 = arith.constant 0 : index
    %c0_154 = arith.constant 0 : index
    %174 = vector.load %arg3[%c6_152, %c0_153, %c0_154] : memref<9x4x128xbf16, #tpu.memory_space<vmem>>, vector<1x4x128xbf16>
    %175 = vector.shape_cast %174 : vector<1x4x128xbf16> to vector<4x128xbf16>
    %cst_155 = arith.constant dense<0.000000e+00> : vector<8x128xf32>
    %176 = tpu.matmul %173, %175, %cst_155 {dimension_numbers = #tpu.dot_dimension_numbers<[1], [0], [0], [1], [0, 0, 1, 1], [], []>} : vector<8x4xbf16>, vector<4x128xbf16>, vector<8x128xf32> -> vector<8x128xf32>
    %177 = arith.addf %167, %176 : vector<8x128xf32>
    %c9_i32_156 = arith.constant 9 : i32
    %178 = arith.addi %c9_i32_156, %0 : i32
    %c1_i32_157 = arith.constant 1 : i32
    %179 = arith.addi %178, %c1_i32_157 : i32
    %c1_i32_158 = arith.constant 1 : i32
    %180 = arith.addi %179, %c1_i32_158 : i32
    %c0_159 = arith.constant 0 : index
    %181 = arith.index_cast %180 : i32 to index
    %c0_160 = arith.constant 0 : index
    %c0_161 = arith.constant 0 : index
    %182 = vector.load %arg2[%c0_159, %181, %c0_160, %c0_161] : memref<1x36x9x4xbf16, #tpu.memory_space<vmem>>, vector<1x1x8x4xbf16>
    %183 = vector.shape_cast %182 : vector<1x1x8x4xbf16> to vector<8x4xbf16>
    %c7_162 = arith.constant 7 : index
    %c0_163 = arith.constant 0 : index
    %c0_164 = arith.constant 0 : index
    %184 = vector.load %arg3[%c7_162, %c0_163, %c0_164] : memref<9x4x128xbf16, #tpu.memory_space<vmem>>, vector<1x4x128xbf16>
    %185 = vector.shape_cast %184 : vector<1x4x128xbf16> to vector<4x128xbf16>
    %cst_165 = arith.constant dense<0.000000e+00> : vector<8x128xf32>
    %186 = tpu.matmul %183, %185, %cst_165 {dimension_numbers = #tpu.dot_dimension_numbers<[1], [0], [0], [1], [0, 0, 1, 1], [], []>} : vector<8x4xbf16>, vector<4x128xbf16>, vector<8x128xf32> -> vector<8x128xf32>
    %187 = arith.addf %177, %186 : vector<8x128xf32>
    %c0_i32_166 = arith.constant 0 : i32
    %188 = arith.addi %c0_i32_166, %0 : i32
    %c1_i32_167 = arith.constant 1 : i32
    %189 = arith.addi %188, %c1_i32_167 : i32
    %c1_i32_168 = arith.constant 1 : i32
    %190 = arith.addi %189, %c1_i32_168 : i32
    %c0_169 = arith.constant 0 : index
    %191 = arith.index_cast %190 : i32 to index
    %c1_170 = arith.constant 1 : index
    %c0_171 = arith.constant 0 : index
    %192 = vector.load %arg2[%c0_169, %191, %c1_170, %c0_171] : memref<1x36x9x4xbf16, #tpu.memory_space<vmem>>, vector<1x1x8x4xbf16>
    %193 = vector.shape_cast %192 : vector<1x1x8x4xbf16> to vector<8x4xbf16>
    %c8_172 = arith.constant 8 : index
    %c0_173 = arith.constant 0 : index
    %c0_174 = arith.constant 0 : index
    %194 = vector.load %arg3[%c8_172, %c0_173, %c0_174] : memref<9x4x128xbf16, #tpu.memory_space<vmem>>, vector<1x4x128xbf16>
    %195 = vector.shape_cast %194 : vector<1x4x128xbf16> to vector<4x128xbf16>
    %cst_175 = arith.constant dense<0.000000e+00> : vector<8x128xf32>
    %196 = tpu.matmul %193, %195, %cst_175 {dimension_numbers = #tpu.dot_dimension_numbers<[1], [0], [0], [1], [0, 0, 1, 1], [], []>} : vector<8x4xbf16>, vector<4x128xbf16>, vector<8x128xf32> -> vector<8x128xf32>
    %197 = arith.addf %187, %196 : vector<8x128xf32>
    %c0_176 = arith.constant 0 : index
    %c0_177 = arith.constant 0 : index
    %198 = vector.load %arg4[%c0_176, %c0_177] : memref<1x128xf32, #tpu.memory_space<vmem>>, vector<1x128xf32>
    %199 = vector.broadcast %198 : vector<1x128xf32> to vector<8x128xf32>
    %200 = arith.addf %197, %199 : vector<8x128xf32>
    %cst_178 = arith.constant 5.000000e-01 : f32
    %201 = vector.broadcast %cst_178 : f32 to vector<8x128xf32>
    %202 = arith.mulf %201, %200 : vector<8x128xf32>
    %cst_179 = arith.constant 0.707106769 : f32
    %203 = vector.broadcast %cst_179 : f32 to vector<8x128xf32>
    %204 = arith.mulf %200, %203 : vector<8x128xf32>
    %205 = math.erf %204 : vector<8x128xf32>
    %cst_180 = arith.constant 1.000000e+00 : f32
    %206 = vector.broadcast %cst_180 : f32 to vector<8x128xf32>
    %207 = arith.addf %206, %205 : vector<8x128xf32>
    %208 = arith.mulf %202, %207 : vector<8x128xf32>
    %209 = arith.truncf %208 : vector<8x128xf32> to vector<8x128xbf16>
    %c0_181 = arith.constant 0 : index
    %c1_182 = arith.constant 1 : index
    %c0_183 = arith.constant 0 : index
    %c0_184 = arith.constant 0 : index
    %210 = vector.load %arg5[%c0_181, %c1_182, %c0_183, %c0_184] : memref<1x4x8x128xbf16, #tpu.memory_space<vmem>>, vector<1x1x8x128xbf16>
    %211 = vector.shape_cast %210 : vector<1x1x8x128xbf16> to vector<8x128xbf16>
    %212 = vector.shape_cast %209 : vector<8x128xbf16> to vector<1x1x8x128xbf16>
    tpu.vector_store %arg5[%c0_181, %c1_182, %c0_183, %c0_184], %212 {strides = array<i32>} : memref<1x4x8x128xbf16, #tpu.memory_space<vmem>>, vector<1x1x8x128xbf16>,
    %cst_185 = arith.constant 0.000000e+00 : f32
    %213 = vector.broadcast %cst_185 : f32 to vector<8x128xf32>
    %c0_i32_186 = arith.constant 0 : i32
    %214 = arith.addi %c0_i32_186, %0 : i32
    %c2_i32 = arith.constant 2 : i32
    %215 = arith.addi %214, %c2_i32 : i32
    %c0_i32_187 = arith.constant 0 : i32
    %216 = arith.addi %215, %c0_i32_187 : i32
    %c0_188 = arith.constant 0 : index
    %217 = arith.index_cast %216 : i32 to index
    %c0_189 = arith.constant 0 : index
    %c0_190 = arith.constant 0 : index
    %218 = vector.load %arg2[%c0_188, %217, %c0_189, %c0_190] : memref<1x36x9x4xbf16, #tpu.memory_space<vmem>>, vector<1x1x8x4xbf16>
    %219 = vector.shape_cast %218 : vector<1x1x8x4xbf16> to vector<8x4xbf16>
    %c0_191 = arith.constant 0 : index
    %c0_192 = arith.constant 0 : index
    %c0_193 = arith.constant 0 : index
    %220 = vector.load %arg3[%c0_191, %c0_192, %c0_193] : memref<9x4x128xbf16, #tpu.memory_space<vmem>>, vector<1x4x128xbf16>
    %221 = vector.shape_cast %220 : vector<1x4x128xbf16> to vector<4x128xbf16>
    %cst_194 = arith.constant dense<0.000000e+00> : vector<8x128xf32>
    %222 = tpu.matmul %219, %221, %cst_194 {dimension_numbers = #tpu.dot_dimension_numbers<[1], [0], [0], [1], [0, 0, 1, 1], [], []>} : vector<8x4xbf16>, vector<4x128xbf16>, vector<8x128xf32> -> vector<8x128xf32>
    %223 = arith.addf %213, %222 : vector<8x128xf32>
    %c9_i32_195 = arith.constant 9 : i32
    %224 = arith.addi %c9_i32_195, %0 : i32
    %c2_i32_196 = arith.constant 2 : i32
    %225 = arith.addi %224, %c2_i32_196 : i32
    %c0_i32_197 = arith.constant 0 : i32
    %226 = arith.addi %225, %c0_i32_197 : i32
    %c0_198 = arith.constant 0 : index
    %227 = arith.index_cast %226 : i32 to index
    %c0_199 = arith.constant 0 : index
    %c0_200 = arith.constant 0 : index
    %228 = vector.load %arg2[%c0_198, %227, %c0_199, %c0_200] : memref<1x36x9x4xbf16, #tpu.memory_space<vmem>>, vector<1x1x8x4xbf16>
    %229 = vector.shape_cast %228 : vector<1x1x8x4xbf16> to vector<8x4xbf16>
    %c1_201 = arith.constant 1 : index
    %c0_202 = arith.constant 0 : index
    %c0_203 = arith.constant 0 : index
    %230 = vector.load %arg3[%c1_201, %c0_202, %c0_203] : memref<9x4x128xbf16, #tpu.memory_space<vmem>>, vector<1x4x128xbf16>
    %231 = vector.shape_cast %230 : vector<1x4x128xbf16> to vector<4x128xbf16>
    %cst_204 = arith.constant dense<0.000000e+00> : vector<8x128xf32>
    %232 = tpu.matmul %229, %231, %cst_204 {dimension_numbers = #tpu.dot_dimension_numbers<[1], [0], [0], [1], [0, 0, 1, 1], [], []>} : vector<8x4xbf16>, vector<4x128xbf16>, vector<8x128xf32> -> vector<8x128xf32>
    %233 = arith.addf %223, %232 : vector<8x128xf32>
    %c0_i32_205 = arith.constant 0 : i32
    %234 = arith.addi %c0_i32_205, %0 : i32
    %c2_i32_206 = arith.constant 2 : i32
    %235 = arith.addi %234, %c2_i32_206 : i32
    %c0_i32_207 = arith.constant 0 : i32
    %236 = arith.addi %235, %c0_i32_207 : i32
    %c0_208 = arith.constant 0 : index
    %237 = arith.index_cast %236 : i32 to index
    %c1_209 = arith.constant 1 : index
    %c0_210 = arith.constant 0 : index
    %238 = vector.load %arg2[%c0_208, %237, %c1_209, %c0_210] : memref<1x36x9x4xbf16, #tpu.memory_space<vmem>>, vector<1x1x8x4xbf16>
    %239 = vector.shape_cast %238 : vector<1x1x8x4xbf16> to vector<8x4xbf16>
    %c2_211 = arith.constant 2 : index
    %c0_212 = arith.constant 0 : index
    %c0_213 = arith.constant 0 : index
    %240 = vector.load %arg3[%c2_211, %c0_212, %c0_213] : memref<9x4x128xbf16, #tpu.memory_space<vmem>>, vector<1x4x128xbf16>
    %241 = vector.shape_cast %240 : vector<1x4x128xbf16> to vector<4x128xbf16>
    %cst_214 = arith.constant dense<0.000000e+00> : vector<8x128xf32>
    %242 = tpu.matmul %239, %241, %cst_214 {dimension_numbers = #tpu.dot_dimension_numbers<[1], [0], [0], [1], [0, 0, 1, 1], [], []>} : vector<8x4xbf16>, vector<4x128xbf16>, vector<8x128xf32> -> vector<8x128xf32>
    %243 = arith.addf %233, %242 : vector<8x128xf32>
    %c18_i32_215 = arith.constant 18 : i32
    %244 = arith.addi %c18_i32_215, %0 : i32
    %c2_i32_216 = arith.constant 2 : i32
    %245 = arith.addi %244, %c2_i32_216 : i32
    %c0_i32_217 = arith.constant 0 : i32
    %246 = arith.addi %245, %c0_i32_217 : i32
    %c0_218 = arith.constant 0 : index
    %247 = arith.index_cast %246 : i32 to index
    %c0_219 = arith.constant 0 : index
    %c0_220 = arith.constant 0 : index
    %248 = vector.load %arg2[%c0_218, %247, %c0_219, %c0_220] : memref<1x36x9x4xbf16, #tpu.memory_space<vmem>>, vector<1x1x8x4xbf16>
    %249 = vector.shape_cast %248 : vector<1x1x8x4xbf16> to vector<8x4xbf16>
    %c3_221 = arith.constant 3 : index
    %c0_222 = arith.constant 0 : index
    %c0_223 = arith.constant 0 : index
    %250 = vector.load %arg3[%c3_221, %c0_222, %c0_223] : memref<9x4x128xbf16, #tpu.memory_space<vmem>>, vector<1x4x128xbf16>
    %251 = vector.shape_cast %250 : vector<1x4x128xbf16> to vector<4x128xbf16>
    %cst_224 = arith.constant dense<0.000000e+00> : vector<8x128xf32>
    %252 = tpu.matmul %249, %251, %cst_224 {dimension_numbers = #tpu.dot_dimension_numbers<[1], [0], [0], [1], [0, 0, 1, 1], [], []>} : vector<8x4xbf16>, vector<4x128xbf16>, vector<8x128xf32> -> vector<8x128xf32>
    %253 = arith.addf %243, %252 : vector<8x128xf32>
    %c27_i32_225 = arith.constant 27 : i32
    %254 = arith.addi %c27_i32_225, %0 : i32
    %c2_i32_226 = arith.constant 2 : i32
    %255 = arith.addi %254, %c2_i32_226 : i32
    %c0_i32_227 = arith.constant 0 : i32
    %256 = arith.addi %255, %c0_i32_227 : i32
    %c0_228 = arith.constant 0 : index
    %257 = arith.index_cast %256 : i32 to index
    %c0_229 = arith.constant 0 : index
    %c0_230 = arith.constant 0 : index
    %258 = vector.load %arg2[%c0_228, %257, %c0_229, %c0_230] : memref<1x36x9x4xbf16, #tpu.memory_space<vmem>>, vector<1x1x8x4xbf16>
    %259 = vector.shape_cast %258 : vector<1x1x8x4xbf16> to vector<8x4xbf16>
    %c4_231 = arith.constant 4 : index
    %c0_232 = arith.constant 0 : index
    %c0_233 = arith.constant 0 : index
    %260 = vector.load %arg3[%c4_231, %c0_232, %c0_233] : memref<9x4x128xbf16, #tpu.memory_space<vmem>>, vector<1x4x128xbf16>
    %261 = vector.shape_cast %260 : vector<1x4x128xbf16> to vector<4x128xbf16>
    %cst_234 = arith.constant dense<0.000000e+00> : vector<8x128xf32>
    %262 = tpu.matmul %259, %261, %cst_234 {dimension_numbers = #tpu.dot_dimension_numbers<[1], [0], [0], [1], [0, 0, 1, 1], [], []>} : vector<8x4xbf16>, vector<4x128xbf16>, vector<8x128xf32> -> vector<8x128xf32>
    %263 = arith.addf %253, %262 : vector<8x128xf32>
    %c18_i32_235 = arith.constant 18 : i32
    %264 = arith.addi %c18_i32_235, %0 : i32
    %c2_i32_236 = arith.constant 2 : i32
    %265 = arith.addi %264, %c2_i32_236 : i32
    %c0_i32_237 = arith.constant 0 : i32
    %266 = arith.addi %265, %c0_i32_237 : i32
    %c0_238 = arith.constant 0 : index
    %267 = arith.index_cast %266 : i32 to index
    %c1_239 = arith.constant 1 : index
    %c0_240 = arith.constant 0 : index
    %268 = vector.load %arg2[%c0_238, %267, %c1_239, %c0_240] : memref<1x36x9x4xbf16, #tpu.memory_space<vmem>>, vector<1x1x8x4xbf16>
    %269 = vector.shape_cast %268 : vector<1x1x8x4xbf16> to vector<8x4xbf16>
    %c5_241 = arith.constant 5 : index
    %c0_242 = arith.constant 0 : index
    %c0_243 = arith.constant 0 : index
    %270 = vector.load %arg3[%c5_241, %c0_242, %c0_243] : memref<9x4x128xbf16, #tpu.memory_space<vmem>>, vector<1x4x128xbf16>
    %271 = vector.shape_cast %270 : vector<1x4x128xbf16> to vector<4x128xbf16>
    %cst_244 = arith.constant dense<0.000000e+00> : vector<8x128xf32>
    %272 = tpu.matmul %269, %271, %cst_244 {dimension_numbers = #tpu.dot_dimension_numbers<[1], [0], [0], [1], [0, 0, 1, 1], [], []>} : vector<8x4xbf16>, vector<4x128xbf16>, vector<8x128xf32> -> vector<8x128xf32>
    %273 = arith.addf %263, %272 : vector<8x128xf32>
    %c0_i32_245 = arith.constant 0 : i32
    %274 = arith.addi %c0_i32_245, %0 : i32
    %c2_i32_246 = arith.constant 2 : i32
    %275 = arith.addi %274, %c2_i32_246 : i32
    %c1_i32_247 = arith.constant 1 : i32
    %276 = arith.addi %275, %c1_i32_247 : i32
    %c0_248 = arith.constant 0 : index
    %277 = arith.index_cast %276 : i32 to index
    %c0_249 = arith.constant 0 : index
    %c0_250 = arith.constant 0 : index
    %278 = vector.load %arg2[%c0_248, %277, %c0_249, %c0_250] : memref<1x36x9x4xbf16, #tpu.memory_space<vmem>>, vector<1x1x8x4xbf16>
    %279 = vector.shape_cast %278 : vector<1x1x8x4xbf16> to vector<8x4xbf16>
    %c6_251 = arith.constant 6 : index
    %c0_252 = arith.constant 0 : index
    %c0_253 = arith.constant 0 : index
    %280 = vector.load %arg3[%c6_251, %c0_252, %c0_253] : memref<9x4x128xbf16, #tpu.memory_space<vmem>>, vector<1x4x128xbf16>
    %281 = vector.shape_cast %280 : vector<1x4x128xbf16> to vector<4x128xbf16>
    %cst_254 = arith.constant dense<0.000000e+00> : vector<8x128xf32>
    %282 = tpu.matmul %279, %281, %cst_254 {dimension_numbers = #tpu.dot_dimension_numbers<[1], [0], [0], [1], [0, 0, 1, 1], [], []>} : vector<8x4xbf16>, vector<4x128xbf16>, vector<8x128xf32> -> vector<8x128xf32>
    %283 = arith.addf %273, %282 : vector<8x128xf32>
    %c9_i32_255 = arith.constant 9 : i32
    %284 = arith.addi %c9_i32_255, %0 : i32
    %c2_i32_256 = arith.constant 2 : i32
    %285 = arith.addi %284, %c2_i32_256 : i32
    %c1_i32_257 = arith.constant 1 : i32
    %286 = arith.addi %285, %c1_i32_257 : i32
    %c0_258 = arith.constant 0 : index
    %287 = arith.index_cast %286 : i32 to index
    %c0_259 = arith.constant 0 : index
    %c0_260 = arith.constant 0 : index
    %288 = vector.load %arg2[%c0_258, %287, %c0_259, %c0_260] : memref<1x36x9x4xbf16, #tpu.memory_space<vmem>>, vector<1x1x8x4xbf16>
    %289 = vector.shape_cast %288 : vector<1x1x8x4xbf16> to vector<8x4xbf16>
    %c7_261 = arith.constant 7 : index
    %c0_262 = arith.constant 0 : index
    %c0_263 = arith.constant 0 : index
    %290 = vector.load %arg3[%c7_261, %c0_262, %c0_263] : memref<9x4x128xbf16, #tpu.memory_space<vmem>>, vector<1x4x128xbf16>
    %291 = vector.shape_cast %290 : vector<1x4x128xbf16> to vector<4x128xbf16>
    %cst_264 = arith.constant dense<0.000000e+00> : vector<8x128xf32>
    %292 = tpu.matmul %289, %291, %cst_264 {dimension_numbers = #tpu.dot_dimension_numbers<[1], [0], [0], [1], [0, 0, 1, 1], [], []>} : vector<8x4xbf16>, vector<4x128xbf16>, vector<8x128xf32> -> vector<8x128xf32>
    %293 = arith.addf %283, %292 : vector<8x128xf32>
    %c0_i32_265 = arith.constant 0 : i32
    %294 = arith.addi %c0_i32_265, %0 : i32
    %c2_i32_266 = arith.constant 2 : i32
    %295 = arith.addi %294, %c2_i32_266 : i32
    %c1_i32_267 = arith.constant 1 : i32
    %296 = arith.addi %295, %c1_i32_267 : i32
    %c0_268 = arith.constant 0 : index
    %297 = arith.index_cast %296 : i32 to index
    %c1_269 = arith.constant 1 : index
    %c0_270 = arith.constant 0 : index
    %298 = vector.load %arg2[%c0_268, %297, %c1_269, %c0_270] : memref<1x36x9x4xbf16, #tpu.memory_space<vmem>>, vector<1x1x8x4xbf16>
    %299 = vector.shape_cast %298 : vector<1x1x8x4xbf16> to vector<8x4xbf16>
    %c8_271 = arith.constant 8 : index
    %c0_272 = arith.constant 0 : index
    %c0_273 = arith.constant 0 : index
    %300 = vector.load %arg3[%c8_271, %c0_272, %c0_273] : memref<9x4x128xbf16, #tpu.memory_space<vmem>>, vector<1x4x128xbf16>
    %301 = vector.shape_cast %300 : vector<1x4x128xbf16> to vector<4x128xbf16>
    %cst_274 = arith.constant dense<0.000000e+00> : vector<8x128xf32>
    %302 = tpu.matmul %299, %301, %cst_274 {dimension_numbers = #tpu.dot_dimension_numbers<[1], [0], [0], [1], [0, 0, 1, 1], [], []>} : vector<8x4xbf16>, vector<4x128xbf16>, vector<8x128xf32> -> vector<8x128xf32>
    %303 = arith.addf %293, %302 : vector<8x128xf32>
    %c0_275 = arith.constant 0 : index
    %c0_276 = arith.constant 0 : index
    %304 = vector.load %arg4[%c0_275, %c0_276] : memref<1x128xf32, #tpu.memory_space<vmem>>, vector<1x128xf32>
    %305 = vector.broadcast %304 : vector<1x128xf32> to vector<8x128xf32>
    %306 = arith.addf %303, %305 : vector<8x128xf32>
    %cst_277 = arith.constant 5.000000e-01 : f32
    %307 = vector.broadcast %cst_277 : f32 to vector<8x128xf32>
    %308 = arith.mulf %307, %306 : vector<8x128xf32>
    %cst_278 = arith.constant 0.707106769 : f32
    %309 = vector.broadcast %cst_278 : f32 to vector<8x128xf32>
    %310 = arith.mulf %306, %309 : vector<8x128xf32>
    %311 = math.erf %310 : vector<8x128xf32>
    %cst_279 = arith.constant 1.000000e+00 : f32
    %312 = vector.broadcast %cst_279 : f32 to vector<8x128xf32>
    %313 = arith.addf %312, %311 : vector<8x128xf32>
    %314 = arith.mulf %308, %313 : vector<8x128xf32>
    %315 = arith.truncf %314 : vector<8x128xf32> to vector<8x128xbf16>
    %c0_280 = arith.constant 0 : index
    %c2_281 = arith.constant 2 : index
    %c0_282 = arith.constant 0 : index
    %c0_283 = arith.constant 0 : index
    %316 = vector.load %arg5[%c0_280, %c2_281, %c0_282, %c0_283] : memref<1x4x8x128xbf16, #tpu.memory_space<vmem>>, vector<1x1x8x128xbf16>
    %317 = vector.shape_cast %316 : vector<1x1x8x128xbf16> to vector<8x128xbf16>
    %318 = vector.shape_cast %315 : vector<8x128xbf16> to vector<1x1x8x128xbf16>
    tpu.vector_store %arg5[%c0_280, %c2_281, %c0_282, %c0_283], %318 {strides = array<i32>} : memref<1x4x8x128xbf16, #tpu.memory_space<vmem>>, vector<1x1x8x128xbf16>,
    %cst_284 = arith.constant 0.000000e+00 : f32
    %319 = vector.broadcast %cst_284 : f32 to vector<8x128xf32>
    %c0_i32_285 = arith.constant 0 : i32
    %320 = arith.addi %c0_i32_285, %0 : i32
    %c3_i32 = arith.constant 3 : i32
    %321 = arith.addi %320, %c3_i32 : i32
    %c0_i32_286 = arith.constant 0 : i32
    %322 = arith.addi %321, %c0_i32_286 : i32
    %c0_287 = arith.constant 0 : index
    %323 = arith.index_cast %322 : i32 to index
    %c0_288 = arith.constant 0 : index
    %c0_289 = arith.constant 0 : index
    %324 = vector.load %arg2[%c0_287, %323, %c0_288, %c0_289] : memref<1x36x9x4xbf16, #tpu.memory_space<vmem>>, vector<1x1x8x4xbf16>
    %325 = vector.shape_cast %324 : vector<1x1x8x4xbf16> to vector<8x4xbf16>
    %c0_290 = arith.constant 0 : index
    %c0_291 = arith.constant 0 : index
    %c0_292 = arith.constant 0 : index
    %326 = vector.load %arg3[%c0_290, %c0_291, %c0_292] : memref<9x4x128xbf16, #tpu.memory_space<vmem>>, vector<1x4x128xbf16>
    %327 = vector.shape_cast %326 : vector<1x4x128xbf16> to vector<4x128xbf16>
    %cst_293 = arith.constant dense<0.000000e+00> : vector<8x128xf32>
    %328 = tpu.matmul %325, %327, %cst_293 {dimension_numbers = #tpu.dot_dimension_numbers<[1], [0], [0], [1], [0, 0, 1, 1], [], []>} : vector<8x4xbf16>, vector<4x128xbf16>, vector<8x128xf32> -> vector<8x128xf32>
    %329 = arith.addf %319, %328 : vector<8x128xf32>
    %c9_i32_294 = arith.constant 9 : i32
    %330 = arith.addi %c9_i32_294, %0 : i32
    %c3_i32_295 = arith.constant 3 : i32
    %331 = arith.addi %330, %c3_i32_295 : i32
    %c0_i32_296 = arith.constant 0 : i32
    %332 = arith.addi %331, %c0_i32_296 : i32
    %c0_297 = arith.constant 0 : index
    %333 = arith.index_cast %332 : i32 to index
    %c0_298 = arith.constant 0 : index
    %c0_299 = arith.constant 0 : index
    %334 = vector.load %arg2[%c0_297, %333, %c0_298, %c0_299] : memref<1x36x9x4xbf16, #tpu.memory_space<vmem>>, vector<1x1x8x4xbf16>
    %335 = vector.shape_cast %334 : vector<1x1x8x4xbf16> to vector<8x4xbf16>
    %c1_300 = arith.constant 1 : index
    %c0_301 = arith.constant 0 : index
    %c0_302 = arith.constant 0 : index
    %336 = vector.load %arg3[%c1_300, %c0_301, %c0_302] : memref<9x4x128xbf16, #tpu.memory_space<vmem>>, vector<1x4x128xbf16>
    %337 = vector.shape_cast %336 : vector<1x4x128xbf16> to vector<4x128xbf16>
    %cst_303 = arith.constant dense<0.000000e+00> : vector<8x128xf32>
    %338 = tpu.matmul %335, %337, %cst_303 {dimension_numbers = #tpu.dot_dimension_numbers<[1], [0], [0], [1], [0, 0, 1, 1], [], []>} : vector<8x4xbf16>, vector<4x128xbf16>, vector<8x128xf32> -> vector<8x128xf32>
    %339 = arith.addf %329, %338 : vector<8x128xf32>
    %c0_i32_304 = arith.constant 0 : i32
    %340 = arith.addi %c0_i32_304, %0 : i32
    %c3_i32_305 = arith.constant 3 : i32
    %341 = arith.addi %340, %c3_i32_305 : i32
    %c0_i32_306 = arith.constant 0 : i32
    %342 = arith.addi %341, %c0_i32_306 : i32
    %c0_307 = arith.constant 0 : index
    %343 = arith.index_cast %342 : i32 to index
    %c1_308 = arith.constant 1 : index
    %c0_309 = arith.constant 0 : index
    %344 = vector.load %arg2[%c0_307, %343, %c1_308, %c0_309] : memref<1x36x9x4xbf16, #tpu.memory_space<vmem>>, vector<1x1x8x4xbf16>
    %345 = vector.shape_cast %344 : vector<1x1x8x4xbf16> to vector<8x4xbf16>
    %c2_310 = arith.constant 2 : index
    %c0_311 = arith.constant 0 : index
    %c0_312 = arith.constant 0 : index
    %346 = vector.load %arg3[%c2_310, %c0_311, %c0_312] : memref<9x4x128xbf16, #tpu.memory_space<vmem>>, vector<1x4x128xbf16>
    %347 = vector.shape_cast %346 : vector<1x4x128xbf16> to vector<4x128xbf16>
    %cst_313 = arith.constant dense<0.000000e+00> : vector<8x128xf32>
    %348 = tpu.matmul %345, %347, %cst_313 {dimension_numbers = #tpu.dot_dimension_numbers<[1], [0], [0], [1], [0, 0, 1, 1], [], []>} : vector<8x4xbf16>, vector<4x128xbf16>, vector<8x128xf32> -> vector<8x128xf32>
    %349 = arith.addf %339, %348 : vector<8x128xf32>
    %c18_i32_314 = arith.constant 18 : i32
    %350 = arith.addi %c18_i32_314, %0 : i32
    %c3_i32_315 = arith.constant 3 : i32
    %351 = arith.addi %350, %c3_i32_315 : i32
    %c0_i32_316 = arith.constant 0 : i32
    %352 = arith.addi %351, %c0_i32_316 : i32
    %c0_317 = arith.constant 0 : index
    %353 = arith.index_cast %352 : i32 to index
    %c0_318 = arith.constant 0 : index
    %c0_319 = arith.constant 0 : index
    %354 = vector.load %arg2[%c0_317, %353, %c0_318, %c0_319] : memref<1x36x9x4xbf16, #tpu.memory_space<vmem>>, vector<1x1x8x4xbf16>
    %355 = vector.shape_cast %354 : vector<1x1x8x4xbf16> to vector<8x4xbf16>
    %c3_320 = arith.constant 3 : index
    %c0_321 = arith.constant 0 : index
    %c0_322 = arith.constant 0 : index
    %356 = vector.load %arg3[%c3_320, %c0_321, %c0_322] : memref<9x4x128xbf16, #tpu.memory_space<vmem>>, vector<1x4x128xbf16>
    %357 = vector.shape_cast %356 : vector<1x4x128xbf16> to vector<4x128xbf16>
    %cst_323 = arith.constant dense<0.000000e+00> : vector<8x128xf32>
    %358 = tpu.matmul %355, %357, %cst_323 {dimension_numbers = #tpu.dot_dimension_numbers<[1], [0], [0], [1], [0, 0, 1, 1], [], []>} : vector<8x4xbf16>, vector<4x128xbf16>, vector<8x128xf32> -> vector<8x128xf32>
    %359 = arith.addf %349, %358 : vector<8x128xf32>
    %c27_i32_324 = arith.constant 27 : i32
    %360 = arith.addi %c27_i32_324, %0 : i32
    %c3_i32_325 = arith.constant 3 : i32
    %361 = arith.addi %360, %c3_i32_325 : i32
    %c0_i32_326 = arith.constant 0 : i32
    %362 = arith.addi %361, %c0_i32_326 : i32
    %c0_327 = arith.constant 0 : index
    %363 = arith.index_cast %362 : i32 to index
    %c0_328 = arith.constant 0 : index
    %c0_329 = arith.constant 0 : index
    %364 = vector.load %arg2[%c0_327, %363, %c0_328, %c0_329] : memref<1x36x9x4xbf16, #tpu.memory_space<vmem>>, vector<1x1x8x4xbf16>
    %365 = vector.shape_cast %364 : vector<1x1x8x4xbf16> to vector<8x4xbf16>
    %c4_330 = arith.constant 4 : index
    %c0_331 = arith.constant 0 : index
    %c0_332 = arith.constant 0 : index
    %366 = vector.load %arg3[%c4_330, %c0_331, %c0_332] : memref<9x4x128xbf16, #tpu.memory_space<vmem>>, vector<1x4x128xbf16>
    %367 = vector.shape_cast %366 : vector<1x4x128xbf16> to vector<4x128xbf16>
    %cst_333 = arith.constant dense<0.000000e+00> : vector<8x128xf32>
    %368 = tpu.matmul %365, %367, %cst_333 {dimension_numbers = #tpu.dot_dimension_numbers<[1], [0], [0], [1], [0, 0, 1, 1], [], []>} : vector<8x4xbf16>, vector<4x128xbf16>, vector<8x128xf32> -> vector<8x128xf32>
    %369 = arith.addf %359, %368 : vector<8x128xf32>
    %c18_i32_334 = arith.constant 18 : i32
    %370 = arith.addi %c18_i32_334, %0 : i32
    %c3_i32_335 = arith.constant 3 : i32
    %371 = arith.addi %370, %c3_i32_335 : i32
    %c0_i32_336 = arith.constant 0 : i32
    %372 = arith.addi %371, %c0_i32_336 : i32
    %c0_337 = arith.constant 0 : index
    %373 = arith.index_cast %372 : i32 to index
    %c1_338 = arith.constant 1 : index
    %c0_339 = arith.constant 0 : index
    %374 = vector.load %arg2[%c0_337, %373, %c1_338, %c0_339] : memref<1x36x9x4xbf16, #tpu.memory_space<vmem>>, vector<1x1x8x4xbf16>
    %375 = vector.shape_cast %374 : vector<1x1x8x4xbf16> to vector<8x4xbf16>
    %c5_340 = arith.constant 5 : index
    %c0_341 = arith.constant 0 : index
    %c0_342 = arith.constant 0 : index
    %376 = vector.load %arg3[%c5_340, %c0_341, %c0_342] : memref<9x4x128xbf16, #tpu.memory_space<vmem>>, vector<1x4x128xbf16>
    %377 = vector.shape_cast %376 : vector<1x4x128xbf16> to vector<4x128xbf16>
    %cst_343 = arith.constant dense<0.000000e+00> : vector<8x128xf32>
    %378 = tpu.matmul %375, %377, %cst_343 {dimension_numbers = #tpu.dot_dimension_numbers<[1], [0], [0], [1], [0, 0, 1, 1], [], []>} : vector<8x4xbf16>, vector<4x128xbf16>, vector<8x128xf32> -> vector<8x128xf32>
    %379 = arith.addf %369, %378 : vector<8x128xf32>
    %c0_i32_344 = arith.constant 0 : i32
    %380 = arith.addi %c0_i32_344, %0 : i32
    %c3_i32_345 = arith.constant 3 : i32
    %381 = arith.addi %380, %c3_i32_345 : i32
    %c1_i32_346 = arith.constant 1 : i32
    %382 = arith.addi %381, %c1_i32_346 : i32
    %c0_347 = arith.constant 0 : index
    %383 = arith.index_cast %382 : i32 to index
    %c0_348 = arith.constant 0 : index
    %c0_349 = arith.constant 0 : index
    %384 = vector.load %arg2[%c0_347, %383, %c0_348, %c0_349] : memref<1x36x9x4xbf16, #tpu.memory_space<vmem>>, vector<1x1x8x4xbf16>
    %385 = vector.shape_cast %384 : vector<1x1x8x4xbf16> to vector<8x4xbf16>
    %c6_350 = arith.constant 6 : index
    %c0_351 = arith.constant 0 : index
    %c0_352 = arith.constant 0 : index
    %386 = vector.load %arg3[%c6_350, %c0_351, %c0_352] : memref<9x4x128xbf16, #tpu.memory_space<vmem>>, vector<1x4x128xbf16>
    %387 = vector.shape_cast %386 : vector<1x4x128xbf16> to vector<4x128xbf16>
    %cst_353 = arith.constant dense<0.000000e+00> : vector<8x128xf32>
    %388 = tpu.matmul %385, %387, %cst_353 {dimension_numbers = #tpu.dot_dimension_numbers<[1], [0], [0], [1], [0, 0, 1, 1], [], []>} : vector<8x4xbf16>, vector<4x128xbf16>, vector<8x128xf32> -> vector<8x128xf32>
    %389 = arith.addf %379, %388 : vector<8x128xf32>
    %c9_i32_354 = arith.constant 9 : i32
    %390 = arith.addi %c9_i32_354, %0 : i32
    %c3_i32_355 = arith.constant 3 : i32
    %391 = arith.addi %390, %c3_i32_355 : i32
    %c1_i32_356 = arith.constant 1 : i32
    %392 = arith.addi %391, %c1_i32_356 : i32
    %c0_357 = arith.constant 0 : index
    %393 = arith.index_cast %392 : i32 to index
    %c0_358 = arith.constant 0 : index
    %c0_359 = arith.constant 0 : index
    %394 = vector.load %arg2[%c0_357, %393, %c0_358, %c0_359] : memref<1x36x9x4xbf16, #tpu.memory_space<vmem>>, vector<1x1x8x4xbf16>
    %395 = vector.shape_cast %394 : vector<1x1x8x4xbf16> to vector<8x4xbf16>
    %c7_360 = arith.constant 7 : index
    %c0_361 = arith.constant 0 : index
    %c0_362 = arith.constant 0 : index
    %396 = vector.load %arg3[%c7_360, %c0_361, %c0_362] : memref<9x4x128xbf16, #tpu.memory_space<vmem>>, vector<1x4x128xbf16>
    %397 = vector.shape_cast %396 : vector<1x4x128xbf16> to vector<4x128xbf16>
    %cst_363 = arith.constant dense<0.000000e+00> : vector<8x128xf32>
    %398 = tpu.matmul %395, %397, %cst_363 {dimension_numbers = #tpu.dot_dimension_numbers<[1], [0], [0], [1], [0, 0, 1, 1], [], []>} : vector<8x4xbf16>, vector<4x128xbf16>, vector<8x128xf32> -> vector<8x128xf32>
    %399 = arith.addf %389, %398 : vector<8x128xf32>
    %c0_i32_364 = arith.constant 0 : i32
    %400 = arith.addi %c0_i32_364, %0 : i32
    %c3_i32_365 = arith.constant 3 : i32
    %401 = arith.addi %400, %c3_i32_365 : i32
    %c1_i32_366 = arith.constant 1 : i32
    %402 = arith.addi %401, %c1_i32_366 : i32
    %c0_367 = arith.constant 0 : index
    %403 = arith.index_cast %402 : i32 to index
    %c1_368 = arith.constant 1 : index
    %c0_369 = arith.constant 0 : index
    %404 = vector.load %arg2[%c0_367, %403, %c1_368, %c0_369] : memref<1x36x9x4xbf16, #tpu.memory_space<vmem>>, vector<1x1x8x4xbf16>
    %405 = vector.shape_cast %404 : vector<1x1x8x4xbf16> to vector<8x4xbf16>
    %c8_370 = arith.constant 8 : index
    %c0_371 = arith.constant 0 : index
    %c0_372 = arith.constant 0 : index
    %406 = vector.load %arg3[%c8_370, %c0_371, %c0_372] : memref<9x4x128xbf16, #tpu.memory_space<vmem>>, vector<1x4x128xbf16>
    %407 = vector.shape_cast %406 : vector<1x4x128xbf16> to vector<4x128xbf16>
    %cst_373 = arith.constant dense<0.000000e+00> : vector<8x128xf32>
    %408 = tpu.matmul %405, %407, %cst_373 {dimension_numbers = #tpu.dot_dimension_numbers<[1], [0], [0], [1], [0, 0, 1, 1], [], []>} : vector<8x4xbf16>, vector<4x128xbf16>, vector<8x128xf32> -> vector<8x128xf32>
    %409 = arith.addf %399, %408 : vector<8x128xf32>
    %c0_374 = arith.constant 0 : index
    %c0_375 = arith.constant 0 : index
    %410 = vector.load %arg4[%c0_374, %c0_375] : memref<1x128xf32, #tpu.memory_space<vmem>>, vector<1x128xf32>
    %411 = vector.broadcast %410 : vector<1x128xf32> to vector<8x128xf32>
    %412 = arith.addf %409, %411 : vector<8x128xf32>
    %cst_376 = arith.constant 5.000000e-01 : f32
    %413 = vector.broadcast %cst_376 : f32 to vector<8x128xf32>
    %414 = arith.mulf %413, %412 : vector<8x128xf32>
    %cst_377 = arith.constant 0.707106769 : f32
    %415 = vector.broadcast %cst_377 : f32 to vector<8x128xf32>
    %416 = arith.mulf %412, %415 : vector<8x128xf32>
    %417 = math.erf %416 : vector<8x128xf32>
    %cst_378 = arith.constant 1.000000e+00 : f32
    %418 = vector.broadcast %cst_378 : f32 to vector<8x128xf32>
    %419 = arith.addf %418, %417 : vector<8x128xf32>
    %420 = arith.mulf %414, %419 : vector<8x128xf32>
    %421 = arith.truncf %420 : vector<8x128xf32> to vector<8x128xbf16>
    %c0_379 = arith.constant 0 : index
    %c3_380 = arith.constant 3 : index
    %c0_381 = arith.constant 0 : index
    %c0_382 = arith.constant 0 : index
    %422 = vector.load %arg5[%c0_379, %c3_380, %c0_381, %c0_382] : memref<1x4x8x128xbf16, #tpu.memory_space<vmem>>, vector<1x1x8x128xbf16>
    %423 = vector.shape_cast %422 : vector<1x1x8x128xbf16> to vector<8x128xbf16>
    %424 = vector.shape_cast %421 : vector<8x128xbf16> to vector<1x1x8x128xbf16>
    tpu.vector_store %arg5[%c0_379, %c3_380, %c0_381, %c0_382], %424 {strides = array<i32>} : memref<1x4x8x128xbf16, #tpu.memory_space<vmem>>, vector<1x1x8x128xbf16>,
    return
  }
  func.func @transform_0(%arg0: i32, %arg1: i32) -> (i32, i32, i32, i32) {
    %c0_i32 = arith.constant 0 : i32
    %c0_i32_0 = arith.constant 0 : i32
    %c0_i32_1 = arith.constant 0 : i32
    %c0_i32_2 = arith.constant 0 : i32
    return %arg0, %c0_i32, %c0_i32_0, %c0_i32_1 : i32, i32, i32, i32
  }
  func.func @transform_1(%arg0: i32, %arg1: i32) -> (i32, i32, i32) {
    %c0_i32 = arith.constant 0 : i32
    %c0_i32_0 = arith.constant 0 : i32
    %c0_i32_1 = arith.constant 0 : i32
    %c0_i32_2 = arith.constant 0 : i32
    return %c0_i32, %c0_i32_0, %c0_i32_1 : i32, i32, i32
  }
  func.func @transform_2(%arg0: i32, %arg1: i32) -> (i32, i32) {
    %c0_i32 = arith.constant 0 : i32
    %c0_i32_0 = arith.constant 0 : i32
    %c0_i32_1 = arith.constant 0 : i32
    return %c0_i32, %c0_i32_0 : i32, i32
  }
  func.func @transform_3(%arg0: i32, %arg1: i32) -> (i32, i32, i32, i32) {
    %c0_i32 = arith.constant 0 : i32
    %c0_i32_0 = arith.constant 0 : i32
    %c0_i32_1 = arith.constant 0 : i32
    return %arg0, %arg1, %c0_i32, %c0_i32_0 : i32, i32, i32, i32
  }
}

module attributes {stable_mosaic.version = 11 : i64} {
  func.func @_conv_bn_gelu_kernel(%arg0: i32, %arg1: i32, %arg2: memref<1x20x5x128xbf16, #tpu.memory_space<vmem>>, %arg3: memref<9x128x128xbf16, #tpu.memory_space<vmem>>, %arg4: memref<1x128xf32, #tpu.memory_space<vmem>>, %arg5: memref<1x2x4x128xf32, #tpu.memory_space<vmem>>) attributes {dimension_semantics = [#tpu.dimension_semantics<parallel>, #tpu.dimension_semantics<parallel>], iteration_bounds = array<i64: 2, 2>, scalar_prefetch = 0 : i64, scratch_operands = 0 : i64, tpu.core_type = #tpu.core_type<tc>, window_params = [{transform_indices = @transform_0, window_bounds = array<i64: 1, 20, 5, 128>}, {pipeline_mode = #tpu.pipeline_mode<synchronous>, transform_indices = @transform_1, window_bounds = array<i64: 9, 128, 128>}, {pipeline_mode = #tpu.pipeline_mode<synchronous>, transform_indices = @transform_2, window_bounds = array<i64: 1, 128>}, {transform_indices = @transform_3, window_bounds = array<i64: 1, 2, 4, 128>}]} {
    %c2_i32 = arith.constant 2 : i32
    %0 = arith.muli %arg1, %c2_i32 : i32
    %cst = arith.constant 0.000000e+00 : f32
    %1 = vector.broadcast %cst : f32 to vector<4x128xf32>
    %c0_i32 = arith.constant 0 : i32
    %2 = arith.addi %c0_i32, %0 : i32
    %c0_i32_0 = arith.constant 0 : i32
    %3 = arith.addi %2, %c0_i32_0 : i32
    %c0_i32_1 = arith.constant 0 : i32
    %4 = arith.addi %3, %c0_i32_1 : i32
    %c0 = arith.constant 0 : index
    %5 = arith.index_cast %4 : i32 to index
    %c0_2 = arith.constant 0 : index
    %c0_3 = arith.constant 0 : index
    %6 = vector.load %arg2[%c0, %5, %c0_2, %c0_3] : memref<1x20x5x128xbf16, #tpu.memory_space<vmem>>, vector<1x1x4x128xbf16>
    %7 = vector.shape_cast %6 : vector<1x1x4x128xbf16> to vector<4x128xbf16>
    %c0_4 = arith.constant 0 : index
    %c0_5 = arith.constant 0 : index
    %c0_6 = arith.constant 0 : index
    %8 = vector.load %arg3[%c0_4, %c0_5, %c0_6] : memref<9x128x128xbf16, #tpu.memory_space<vmem>>, vector<1x128x128xbf16>
    %9 = vector.shape_cast %8 : vector<1x128x128xbf16> to vector<128x128xbf16>
    %cst_7 = arith.constant dense<0.000000e+00> : vector<4x128xf32>
    %10 = tpu.matmul %7, %9, %cst_7 {dimension_numbers = #tpu.dot_dimension_numbers<[1], [0], [0], [1], [0, 0, 1, 1], [], []>} : vector<4x128xbf16>, vector<128x128xbf16>, vector<4x128xf32> -> vector<4x128xf32>
    %11 = arith.addf %1, %10 : vector<4x128xf32>
    %c5_i32 = arith.constant 5 : i32
    %12 = arith.addi %c5_i32, %0 : i32
    %c0_i32_8 = arith.constant 0 : i32
    %13 = arith.addi %12, %c0_i32_8 : i32
    %c0_i32_9 = arith.constant 0 : i32
    %14 = arith.addi %13, %c0_i32_9 : i32
    %c0_10 = arith.constant 0 : index
    %15 = arith.index_cast %14 : i32 to index
    %c0_11 = arith.constant 0 : index
    %c0_12 = arith.constant 0 : index
    %16 = vector.load %arg2[%c0_10, %15, %c0_11, %c0_12] : memref<1x20x5x128xbf16, #tpu.memory_space<vmem>>, vector<1x1x4x128xbf16>
    %17 = vector.shape_cast %16 : vector<1x1x4x128xbf16> to vector<4x128xbf16>
    %c1 = arith.constant 1 : index
    %c0_13 = arith.constant 0 : index
    %c0_14 = arith.constant 0 : index
    %18 = vector.load %arg3[%c1, %c0_13, %c0_14] : memref<9x128x128xbf16, #tpu.memory_space<vmem>>, vector<1x128x128xbf16>
    %19 = vector.shape_cast %18 : vector<1x128x128xbf16> to vector<128x128xbf16>
    %cst_15 = arith.constant dense<0.000000e+00> : vector<4x128xf32>
    %20 = tpu.matmul %17, %19, %cst_15 {dimension_numbers = #tpu.dot_dimension_numbers<[1], [0], [0], [1], [0, 0, 1, 1], [], []>} : vector<4x128xbf16>, vector<128x128xbf16>, vector<4x128xf32> -> vector<4x128xf32>
    %21 = arith.addf %11, %20 : vector<4x128xf32>
    %c0_i32_16 = arith.constant 0 : i32
    %22 = arith.addi %c0_i32_16, %0 : i32
    %c0_i32_17 = arith.constant 0 : i32
    %23 = arith.addi %22, %c0_i32_17 : i32
    %c0_i32_18 = arith.constant 0 : i32
    %24 = arith.addi %23, %c0_i32_18 : i32
    %c0_19 = arith.constant 0 : index
    %25 = arith.index_cast %24 : i32 to index
    %c1_20 = arith.constant 1 : index
    %c0_21 = arith.constant 0 : index
    %26 = vector.load %arg2[%c0_19, %25, %c1_20, %c0_21] : memref<1x20x5x128xbf16, #tpu.memory_space<vmem>>, vector<1x1x4x128xbf16>
    %27 = vector.shape_cast %26 : vector<1x1x4x128xbf16> to vector<4x128xbf16>
    %c2 = arith.constant 2 : index
    %c0_22 = arith.constant 0 : index
    %c0_23 = arith.constant 0 : index
    %28 = vector.load %arg3[%c2, %c0_22, %c0_23] : memref<9x128x128xbf16, #tpu.memory_space<vmem>>, vector<1x128x128xbf16>
    %29 = vector.shape_cast %28 : vector<1x128x128xbf16> to vector<128x128xbf16>
    %cst_24 = arith.constant dense<0.000000e+00> : vector<4x128xf32>
    %30 = tpu.matmul %27, %29, %cst_24 {dimension_numbers = #tpu.dot_dimension_numbers<[1], [0], [0], [1], [0, 0, 1, 1], [], []>} : vector<4x128xbf16>, vector<128x128xbf16>, vector<4x128xf32> -> vector<4x128xf32>
    %31 = arith.addf %21, %30 : vector<4x128xf32>
    %c10_i32 = arith.constant 10 : i32
    %32 = arith.addi %c10_i32, %0 : i32
    %c0_i32_25 = arith.constant 0 : i32
    %33 = arith.addi %32, %c0_i32_25 : i32
    %c0_i32_26 = arith.constant 0 : i32
    %34 = arith.addi %33, %c0_i32_26 : i32
    %c0_27 = arith.constant 0 : index
    %35 = arith.index_cast %34 : i32 to index
    %c0_28 = arith.constant 0 : index
    %c0_29 = arith.constant 0 : index
    %36 = vector.load %arg2[%c0_27, %35, %c0_28, %c0_29] : memref<1x20x5x128xbf16, #tpu.memory_space<vmem>>, vector<1x1x4x128xbf16>
    %37 = vector.shape_cast %36 : vector<1x1x4x128xbf16> to vector<4x128xbf16>
    %c3 = arith.constant 3 : index
    %c0_30 = arith.constant 0 : index
    %c0_31 = arith.constant 0 : index
    %38 = vector.load %arg3[%c3, %c0_30, %c0_31] : memref<9x128x128xbf16, #tpu.memory_space<vmem>>, vector<1x128x128xbf16>
    %39 = vector.shape_cast %38 : vector<1x128x128xbf16> to vector<128x128xbf16>
    %cst_32 = arith.constant dense<0.000000e+00> : vector<4x128xf32>
    %40 = tpu.matmul %37, %39, %cst_32 {dimension_numbers = #tpu.dot_dimension_numbers<[1], [0], [0], [1], [0, 0, 1, 1], [], []>} : vector<4x128xbf16>, vector<128x128xbf16>, vector<4x128xf32> -> vector<4x128xf32>
    %41 = arith.addf %31, %40 : vector<4x128xf32>
    %c15_i32 = arith.constant 15 : i32
    %42 = arith.addi %c15_i32, %0 : i32
    %c0_i32_33 = arith.constant 0 : i32
    %43 = arith.addi %42, %c0_i32_33 : i32
    %c0_i32_34 = arith.constant 0 : i32
    %44 = arith.addi %43, %c0_i32_34 : i32
    %c0_35 = arith.constant 0 : index
    %45 = arith.index_cast %44 : i32 to index
    %c0_36 = arith.constant 0 : index
    %c0_37 = arith.constant 0 : index
    %46 = vector.load %arg2[%c0_35, %45, %c0_36, %c0_37] : memref<1x20x5x128xbf16, #tpu.memory_space<vmem>>, vector<1x1x4x128xbf16>
    %47 = vector.shape_cast %46 : vector<1x1x4x128xbf16> to vector<4x128xbf16>
    %c4 = arith.constant 4 : index
    %c0_38 = arith.constant 0 : index
    %c0_39 = arith.constant 0 : index
    %48 = vector.load %arg3[%c4, %c0_38, %c0_39] : memref<9x128x128xbf16, #tpu.memory_space<vmem>>, vector<1x128x128xbf16>
    %49 = vector.shape_cast %48 : vector<1x128x128xbf16> to vector<128x128xbf16>
    %cst_40 = arith.constant dense<0.000000e+00> : vector<4x128xf32>
    %50 = tpu.matmul %47, %49, %cst_40 {dimension_numbers = #tpu.dot_dimension_numbers<[1], [0], [0], [1], [0, 0, 1, 1], [], []>} : vector<4x128xbf16>, vector<128x128xbf16>, vector<4x128xf32> -> vector<4x128xf32>
    %51 = arith.addf %41, %50 : vector<4x128xf32>
    %c10_i32_41 = arith.constant 10 : i32
    %52 = arith.addi %c10_i32_41, %0 : i32
    %c0_i32_42 = arith.constant 0 : i32
    %53 = arith.addi %52, %c0_i32_42 : i32
    %c0_i32_43 = arith.constant 0 : i32
    %54 = arith.addi %53, %c0_i32_43 : i32
    %c0_44 = arith.constant 0 : index
    %55 = arith.index_cast %54 : i32 to index
    %c1_45 = arith.constant 1 : index
    %c0_46 = arith.constant 0 : index
    %56 = vector.load %arg2[%c0_44, %55, %c1_45, %c0_46] : memref<1x20x5x128xbf16, #tpu.memory_space<vmem>>, vector<1x1x4x128xbf16>
    %57 = vector.shape_cast %56 : vector<1x1x4x128xbf16> to vector<4x128xbf16>
    %c5 = arith.constant 5 : index
    %c0_47 = arith.constant 0 : index
    %c0_48 = arith.constant 0 : index
    %58 = vector.load %arg3[%c5, %c0_47, %c0_48] : memref<9x128x128xbf16, #tpu.memory_space<vmem>>, vector<1x128x128xbf16>
    %59 = vector.shape_cast %58 : vector<1x128x128xbf16> to vector<128x128xbf16>
    %cst_49 = arith.constant dense<0.000000e+00> : vector<4x128xf32>
    %60 = tpu.matmul %57, %59, %cst_49 {dimension_numbers = #tpu.dot_dimension_numbers<[1], [0], [0], [1], [0, 0, 1, 1], [], []>} : vector<4x128xbf16>, vector<128x128xbf16>, vector<4x128xf32> -> vector<4x128xf32>
    %61 = arith.addf %51, %60 : vector<4x128xf32>
    %c0_i32_50 = arith.constant 0 : i32
    %62 = arith.addi %c0_i32_50, %0 : i32
    %c0_i32_51 = arith.constant 0 : i32
    %63 = arith.addi %62, %c0_i32_51 : i32
    %c1_i32 = arith.constant 1 : i32
    %64 = arith.addi %63, %c1_i32 : i32
    %c0_52 = arith.constant 0 : index
    %65 = arith.index_cast %64 : i32 to index
    %c0_53 = arith.constant 0 : index
    %c0_54 = arith.constant 0 : index
    %66 = vector.load %arg2[%c0_52, %65, %c0_53, %c0_54] : memref<1x20x5x128xbf16, #tpu.memory_space<vmem>>, vector<1x1x4x128xbf16>
    %67 = vector.shape_cast %66 : vector<1x1x4x128xbf16> to vector<4x128xbf16>
    %c6 = arith.constant 6 : index
    %c0_55 = arith.constant 0 : index
    %c0_56 = arith.constant 0 : index
    %68 = vector.load %arg3[%c6, %c0_55, %c0_56] : memref<9x128x128xbf16, #tpu.memory_space<vmem>>, vector<1x128x128xbf16>
    %69 = vector.shape_cast %68 : vector<1x128x128xbf16> to vector<128x128xbf16>
    %cst_57 = arith.constant dense<0.000000e+00> : vector<4x128xf32>
    %70 = tpu.matmul %67, %69, %cst_57 {dimension_numbers = #tpu.dot_dimension_numbers<[1], [0], [0], [1], [0, 0, 1, 1], [], []>} : vector<4x128xbf16>, vector<128x128xbf16>, vector<4x128xf32> -> vector<4x128xf32>
    %71 = arith.addf %61, %70 : vector<4x128xf32>
    %c5_i32_58 = arith.constant 5 : i32
    %72 = arith.addi %c5_i32_58, %0 : i32
    %c0_i32_59 = arith.constant 0 : i32
    %73 = arith.addi %72, %c0_i32_59 : i32
    %c1_i32_60 = arith.constant 1 : i32
    %74 = arith.addi %73, %c1_i32_60 : i32
    %c0_61 = arith.constant 0 : index
    %75 = arith.index_cast %74 : i32 to index
    %c0_62 = arith.constant 0 : index
    %c0_63 = arith.constant 0 : index
    %76 = vector.load %arg2[%c0_61, %75, %c0_62, %c0_63] : memref<1x20x5x128xbf16, #tpu.memory_space<vmem>>, vector<1x1x4x128xbf16>
    %77 = vector.shape_cast %76 : vector<1x1x4x128xbf16> to vector<4x128xbf16>
    %c7 = arith.constant 7 : index
    %c0_64 = arith.constant 0 : index
    %c0_65 = arith.constant 0 : index
    %78 = vector.load %arg3[%c7, %c0_64, %c0_65] : memref<9x128x128xbf16, #tpu.memory_space<vmem>>, vector<1x128x128xbf16>
    %79 = vector.shape_cast %78 : vector<1x128x128xbf16> to vector<128x128xbf16>
    %cst_66 = arith.constant dense<0.000000e+00> : vector<4x128xf32>
    %80 = tpu.matmul %77, %79, %cst_66 {dimension_numbers = #tpu.dot_dimension_numbers<[1], [0], [0], [1], [0, 0, 1, 1], [], []>} : vector<4x128xbf16>, vector<128x128xbf16>, vector<4x128xf32> -> vector<4x128xf32>
    %81 = arith.addf %71, %80 : vector<4x128xf32>
    %c0_i32_67 = arith.constant 0 : i32
    %82 = arith.addi %c0_i32_67, %0 : i32
    %c0_i32_68 = arith.constant 0 : i32
    %83 = arith.addi %82, %c0_i32_68 : i32
    %c1_i32_69 = arith.constant 1 : i32
    %84 = arith.addi %83, %c1_i32_69 : i32
    %c0_70 = arith.constant 0 : index
    %85 = arith.index_cast %84 : i32 to index
    %c1_71 = arith.constant 1 : index
    %c0_72 = arith.constant 0 : index
    %86 = vector.load %arg2[%c0_70, %85, %c1_71, %c0_72] : memref<1x20x5x128xbf16, #tpu.memory_space<vmem>>, vector<1x1x4x128xbf16>
    %87 = vector.shape_cast %86 : vector<1x1x4x128xbf16> to vector<4x128xbf16>
    %c8 = arith.constant 8 : index
    %c0_73 = arith.constant 0 : index
    %c0_74 = arith.constant 0 : index
    %88 = vector.load %arg3[%c8, %c0_73, %c0_74] : memref<9x128x128xbf16, #tpu.memory_space<vmem>>, vector<1x128x128xbf16>
    %89 = vector.shape_cast %88 : vector<1x128x128xbf16> to vector<128x128xbf16>
    %cst_75 = arith.constant dense<0.000000e+00> : vector<4x128xf32>
    %90 = tpu.matmul %87, %89, %cst_75 {dimension_numbers = #tpu.dot_dimension_numbers<[1], [0], [0], [1], [0, 0, 1, 1], [], []>} : vector<4x128xbf16>, vector<128x128xbf16>, vector<4x128xf32> -> vector<4x128xf32>
    %91 = arith.addf %81, %90 : vector<4x128xf32>
    %c0_76 = arith.constant 0 : index
    %c0_77 = arith.constant 0 : index
    %92 = vector.load %arg4[%c0_76, %c0_77] : memref<1x128xf32, #tpu.memory_space<vmem>>, vector<1x128xf32>
    %93 = vector.broadcast %92 : vector<1x128xf32> to vector<4x128xf32>
    %94 = arith.addf %91, %93 : vector<4x128xf32>
    %c0_78 = arith.constant 0 : index
    %c0_79 = arith.constant 0 : index
    %c0_80 = arith.constant 0 : index
    %c0_81 = arith.constant 0 : index
    %95 = vector.load %arg5[%c0_78, %c0_79, %c0_80, %c0_81] : memref<1x2x4x128xf32, #tpu.memory_space<vmem>>, vector<1x1x4x128xf32>
    %96 = vector.shape_cast %95 : vector<1x1x4x128xf32> to vector<4x128xf32>
    %97 = vector.shape_cast %94 : vector<4x128xf32> to vector<1x1x4x128xf32>
    tpu.vector_store %arg5[%c0_78, %c0_79, %c0_80, %c0_81], %97 {strides = array<i32>} : memref<1x2x4x128xf32, #tpu.memory_space<vmem>>, vector<1x1x4x128xf32>,
    %cst_82 = arith.constant 0.000000e+00 : f32
    %98 = vector.broadcast %cst_82 : f32 to vector<4x128xf32>
    %c0_i32_83 = arith.constant 0 : i32
    %99 = arith.addi %c0_i32_83, %0 : i32
    %c1_i32_84 = arith.constant 1 : i32
    %100 = arith.addi %99, %c1_i32_84 : i32
    %c0_i32_85 = arith.constant 0 : i32
    %101 = arith.addi %100, %c0_i32_85 : i32
    %c0_86 = arith.constant 0 : index
    %102 = arith.index_cast %101 : i32 to index
    %c0_87 = arith.constant 0 : index
    %c0_88 = arith.constant 0 : index
    %103 = vector.load %arg2[%c0_86, %102, %c0_87, %c0_88] : memref<1x20x5x128xbf16, #tpu.memory_space<vmem>>, vector<1x1x4x128xbf16>
    %104 = vector.shape_cast %103 : vector<1x1x4x128xbf16> to vector<4x128xbf16>
    %c0_89 = arith.constant 0 : index
    %c0_90 = arith.constant 0 : index
    %c0_91 = arith.constant 0 : index
    %105 = vector.load %arg3[%c0_89, %c0_90, %c0_91] : memref<9x128x128xbf16, #tpu.memory_space<vmem>>, vector<1x128x128xbf16>
    %106 = vector.shape_cast %105 : vector<1x128x128xbf16> to vector<128x128xbf16>
    %cst_92 = arith.constant dense<0.000000e+00> : vector<4x128xf32>
    %107 = tpu.matmul %104, %106, %cst_92 {dimension_numbers = #tpu.dot_dimension_numbers<[1], [0], [0], [1], [0, 0, 1, 1], [], []>} : vector<4x128xbf16>, vector<128x128xbf16>, vector<4x128xf32> -> vector<4x128xf32>
    %108 = arith.addf %98, %107 : vector<4x128xf32>
    %c5_i32_93 = arith.constant 5 : i32
    %109 = arith.addi %c5_i32_93, %0 : i32
    %c1_i32_94 = arith.constant 1 : i32
    %110 = arith.addi %109, %c1_i32_94 : i32
    %c0_i32_95 = arith.constant 0 : i32
    %111 = arith.addi %110, %c0_i32_95 : i32
    %c0_96 = arith.constant 0 : index
    %112 = arith.index_cast %111 : i32 to index
    %c0_97 = arith.constant 0 : index
    %c0_98 = arith.constant 0 : index
    %113 = vector.load %arg2[%c0_96, %112, %c0_97, %c0_98] : memref<1x20x5x128xbf16, #tpu.memory_space<vmem>>, vector<1x1x4x128xbf16>
    %114 = vector.shape_cast %113 : vector<1x1x4x128xbf16> to vector<4x128xbf16>
    %c1_99 = arith.constant 1 : index
    %c0_100 = arith.constant 0 : index
    %c0_101 = arith.constant 0 : index
    %115 = vector.load %arg3[%c1_99, %c0_100, %c0_101] : memref<9x128x128xbf16, #tpu.memory_space<vmem>>, vector<1x128x128xbf16>
    %116 = vector.shape_cast %115 : vector<1x128x128xbf16> to vector<128x128xbf16>
    %cst_102 = arith.constant dense<0.000000e+00> : vector<4x128xf32>
    %117 = tpu.matmul %114, %116, %cst_102 {dimension_numbers = #tpu.dot_dimension_numbers<[1], [0], [0], [1], [0, 0, 1, 1], [], []>} : vector<4x128xbf16>, vector<128x128xbf16>, vector<4x128xf32> -> vector<4x128xf32>
    %118 = arith.addf %108, %117 : vector<4x128xf32>
    %c0_i32_103 = arith.constant 0 : i32
    %119 = arith.addi %c0_i32_103, %0 : i32
    %c1_i32_104 = arith.constant 1 : i32
    %120 = arith.addi %119, %c1_i32_104 : i32
    %c0_i32_105 = arith.constant 0 : i32
    %121 = arith.addi %120, %c0_i32_105 : i32
    %c0_106 = arith.constant 0 : index
    %122 = arith.index_cast %121 : i32 to index
    %c1_107 = arith.constant 1 : index
    %c0_108 = arith.constant 0 : index
    %123 = vector.load %arg2[%c0_106, %122, %c1_107, %c0_108] : memref<1x20x5x128xbf16, #tpu.memory_space<vmem>>, vector<1x1x4x128xbf16>
    %124 = vector.shape_cast %123 : vector<1x1x4x128xbf16> to vector<4x128xbf16>
    %c2_109 = arith.constant 2 : index
    %c0_110 = arith.constant 0 : index
    %c0_111 = arith.constant 0 : index
    %125 = vector.load %arg3[%c2_109, %c0_110, %c0_111] : memref<9x128x128xbf16, #tpu.memory_space<vmem>>, vector<1x128x128xbf16>
    %126 = vector.shape_cast %125 : vector<1x128x128xbf16> to vector<128x128xbf16>
    %cst_112 = arith.constant dense<0.000000e+00> : vector<4x128xf32>
    %127 = tpu.matmul %124, %126, %cst_112 {dimension_numbers = #tpu.dot_dimension_numbers<[1], [0], [0], [1], [0, 0, 1, 1], [], []>} : vector<4x128xbf16>, vector<128x128xbf16>, vector<4x128xf32> -> vector<4x128xf32>
    %128 = arith.addf %118, %127 : vector<4x128xf32>
    %c10_i32_113 = arith.constant 10 : i32
    %129 = arith.addi %c10_i32_113, %0 : i32
    %c1_i32_114 = arith.constant 1 : i32
    %130 = arith.addi %129, %c1_i32_114 : i32
    %c0_i32_115 = arith.constant 0 : i32
    %131 = arith.addi %130, %c0_i32_115 : i32
    %c0_116 = arith.constant 0 : index
    %132 = arith.index_cast %131 : i32 to index
    %c0_117 = arith.constant 0 : index
    %c0_118 = arith.constant 0 : index
    %133 = vector.load %arg2[%c0_116, %132, %c0_117, %c0_118] : memref<1x20x5x128xbf16, #tpu.memory_space<vmem>>, vector<1x1x4x128xbf16>
    %134 = vector.shape_cast %133 : vector<1x1x4x128xbf16> to vector<4x128xbf16>
    %c3_119 = arith.constant 3 : index
    %c0_120 = arith.constant 0 : index
    %c0_121 = arith.constant 0 : index
    %135 = vector.load %arg3[%c3_119, %c0_120, %c0_121] : memref<9x128x128xbf16, #tpu.memory_space<vmem>>, vector<1x128x128xbf16>
    %136 = vector.shape_cast %135 : vector<1x128x128xbf16> to vector<128x128xbf16>
    %cst_122 = arith.constant dense<0.000000e+00> : vector<4x128xf32>
    %137 = tpu.matmul %134, %136, %cst_122 {dimension_numbers = #tpu.dot_dimension_numbers<[1], [0], [0], [1], [0, 0, 1, 1], [], []>} : vector<4x128xbf16>, vector<128x128xbf16>, vector<4x128xf32> -> vector<4x128xf32>
    %138 = arith.addf %128, %137 : vector<4x128xf32>
    %c15_i32_123 = arith.constant 15 : i32
    %139 = arith.addi %c15_i32_123, %0 : i32
    %c1_i32_124 = arith.constant 1 : i32
    %140 = arith.addi %139, %c1_i32_124 : i32
    %c0_i32_125 = arith.constant 0 : i32
    %141 = arith.addi %140, %c0_i32_125 : i32
    %c0_126 = arith.constant 0 : index
    %142 = arith.index_cast %141 : i32 to index
    %c0_127 = arith.constant 0 : index
    %c0_128 = arith.constant 0 : index
    %143 = vector.load %arg2[%c0_126, %142, %c0_127, %c0_128] : memref<1x20x5x128xbf16, #tpu.memory_space<vmem>>, vector<1x1x4x128xbf16>
    %144 = vector.shape_cast %143 : vector<1x1x4x128xbf16> to vector<4x128xbf16>
    %c4_129 = arith.constant 4 : index
    %c0_130 = arith.constant 0 : index
    %c0_131 = arith.constant 0 : index
    %145 = vector.load %arg3[%c4_129, %c0_130, %c0_131] : memref<9x128x128xbf16, #tpu.memory_space<vmem>>, vector<1x128x128xbf16>
    %146 = vector.shape_cast %145 : vector<1x128x128xbf16> to vector<128x128xbf16>
    %cst_132 = arith.constant dense<0.000000e+00> : vector<4x128xf32>
    %147 = tpu.matmul %144, %146, %cst_132 {dimension_numbers = #tpu.dot_dimension_numbers<[1], [0], [0], [1], [0, 0, 1, 1], [], []>} : vector<4x128xbf16>, vector<128x128xbf16>, vector<4x128xf32> -> vector<4x128xf32>
    %148 = arith.addf %138, %147 : vector<4x128xf32>
    %c10_i32_133 = arith.constant 10 : i32
    %149 = arith.addi %c10_i32_133, %0 : i32
    %c1_i32_134 = arith.constant 1 : i32
    %150 = arith.addi %149, %c1_i32_134 : i32
    %c0_i32_135 = arith.constant 0 : i32
    %151 = arith.addi %150, %c0_i32_135 : i32
    %c0_136 = arith.constant 0 : index
    %152 = arith.index_cast %151 : i32 to index
    %c1_137 = arith.constant 1 : index
    %c0_138 = arith.constant 0 : index
    %153 = vector.load %arg2[%c0_136, %152, %c1_137, %c0_138] : memref<1x20x5x128xbf16, #tpu.memory_space<vmem>>, vector<1x1x4x128xbf16>
    %154 = vector.shape_cast %153 : vector<1x1x4x128xbf16> to vector<4x128xbf16>
    %c5_139 = arith.constant 5 : index
    %c0_140 = arith.constant 0 : index
    %c0_141 = arith.constant 0 : index
    %155 = vector.load %arg3[%c5_139, %c0_140, %c0_141] : memref<9x128x128xbf16, #tpu.memory_space<vmem>>, vector<1x128x128xbf16>
    %156 = vector.shape_cast %155 : vector<1x128x128xbf16> to vector<128x128xbf16>
    %cst_142 = arith.constant dense<0.000000e+00> : vector<4x128xf32>
    %157 = tpu.matmul %154, %156, %cst_142 {dimension_numbers = #tpu.dot_dimension_numbers<[1], [0], [0], [1], [0, 0, 1, 1], [], []>} : vector<4x128xbf16>, vector<128x128xbf16>, vector<4x128xf32> -> vector<4x128xf32>
    %158 = arith.addf %148, %157 : vector<4x128xf32>
    %c0_i32_143 = arith.constant 0 : i32
    %159 = arith.addi %c0_i32_143, %0 : i32
    %c1_i32_144 = arith.constant 1 : i32
    %160 = arith.addi %159, %c1_i32_144 : i32
    %c1_i32_145 = arith.constant 1 : i32
    %161 = arith.addi %160, %c1_i32_145 : i32
    %c0_146 = arith.constant 0 : index
    %162 = arith.index_cast %161 : i32 to index
    %c0_147 = arith.constant 0 : index
    %c0_148 = arith.constant 0 : index
    %163 = vector.load %arg2[%c0_146, %162, %c0_147, %c0_148] : memref<1x20x5x128xbf16, #tpu.memory_space<vmem>>, vector<1x1x4x128xbf16>
    %164 = vector.shape_cast %163 : vector<1x1x4x128xbf16> to vector<4x128xbf16>
    %c6_149 = arith.constant 6 : index
    %c0_150 = arith.constant 0 : index
    %c0_151 = arith.constant 0 : index
    %165 = vector.load %arg3[%c6_149, %c0_150, %c0_151] : memref<9x128x128xbf16, #tpu.memory_space<vmem>>, vector<1x128x128xbf16>
    %166 = vector.shape_cast %165 : vector<1x128x128xbf16> to vector<128x128xbf16>
    %cst_152 = arith.constant dense<0.000000e+00> : vector<4x128xf32>
    %167 = tpu.matmul %164, %166, %cst_152 {dimension_numbers = #tpu.dot_dimension_numbers<[1], [0], [0], [1], [0, 0, 1, 1], [], []>} : vector<4x128xbf16>, vector<128x128xbf16>, vector<4x128xf32> -> vector<4x128xf32>
    %168 = arith.addf %158, %167 : vector<4x128xf32>
    %c5_i32_153 = arith.constant 5 : i32
    %169 = arith.addi %c5_i32_153, %0 : i32
    %c1_i32_154 = arith.constant 1 : i32
    %170 = arith.addi %169, %c1_i32_154 : i32
    %c1_i32_155 = arith.constant 1 : i32
    %171 = arith.addi %170, %c1_i32_155 : i32
    %c0_156 = arith.constant 0 : index
    %172 = arith.index_cast %171 : i32 to index
    %c0_157 = arith.constant 0 : index
    %c0_158 = arith.constant 0 : index
    %173 = vector.load %arg2[%c0_156, %172, %c0_157, %c0_158] : memref<1x20x5x128xbf16, #tpu.memory_space<vmem>>, vector<1x1x4x128xbf16>
    %174 = vector.shape_cast %173 : vector<1x1x4x128xbf16> to vector<4x128xbf16>
    %c7_159 = arith.constant 7 : index
    %c0_160 = arith.constant 0 : index
    %c0_161 = arith.constant 0 : index
    %175 = vector.load %arg3[%c7_159, %c0_160, %c0_161] : memref<9x128x128xbf16, #tpu.memory_space<vmem>>, vector<1x128x128xbf16>
    %176 = vector.shape_cast %175 : vector<1x128x128xbf16> to vector<128x128xbf16>
    %cst_162 = arith.constant dense<0.000000e+00> : vector<4x128xf32>
    %177 = tpu.matmul %174, %176, %cst_162 {dimension_numbers = #tpu.dot_dimension_numbers<[1], [0], [0], [1], [0, 0, 1, 1], [], []>} : vector<4x128xbf16>, vector<128x128xbf16>, vector<4x128xf32> -> vector<4x128xf32>
    %178 = arith.addf %168, %177 : vector<4x128xf32>
    %c0_i32_163 = arith.constant 0 : i32
    %179 = arith.addi %c0_i32_163, %0 : i32
    %c1_i32_164 = arith.constant 1 : i32
    %180 = arith.addi %179, %c1_i32_164 : i32
    %c1_i32_165 = arith.constant 1 : i32
    %181 = arith.addi %180, %c1_i32_165 : i32
    %c0_166 = arith.constant 0 : index
    %182 = arith.index_cast %181 : i32 to index
    %c1_167 = arith.constant 1 : index
    %c0_168 = arith.constant 0 : index
    %183 = vector.load %arg2[%c0_166, %182, %c1_167, %c0_168] : memref<1x20x5x128xbf16, #tpu.memory_space<vmem>>, vector<1x1x4x128xbf16>
    %184 = vector.shape_cast %183 : vector<1x1x4x128xbf16> to vector<4x128xbf16>
    %c8_169 = arith.constant 8 : index
    %c0_170 = arith.constant 0 : index
    %c0_171 = arith.constant 0 : index
    %185 = vector.load %arg3[%c8_169, %c0_170, %c0_171] : memref<9x128x128xbf16, #tpu.memory_space<vmem>>, vector<1x128x128xbf16>
    %186 = vector.shape_cast %185 : vector<1x128x128xbf16> to vector<128x128xbf16>
    %cst_172 = arith.constant dense<0.000000e+00> : vector<4x128xf32>
    %187 = tpu.matmul %184, %186, %cst_172 {dimension_numbers = #tpu.dot_dimension_numbers<[1], [0], [0], [1], [0, 0, 1, 1], [], []>} : vector<4x128xbf16>, vector<128x128xbf16>, vector<4x128xf32> -> vector<4x128xf32>
    %188 = arith.addf %178, %187 : vector<4x128xf32>
    %c0_173 = arith.constant 0 : index
    %c0_174 = arith.constant 0 : index
    %189 = vector.load %arg4[%c0_173, %c0_174] : memref<1x128xf32, #tpu.memory_space<vmem>>, vector<1x128xf32>
    %190 = vector.broadcast %189 : vector<1x128xf32> to vector<4x128xf32>
    %191 = arith.addf %188, %190 : vector<4x128xf32>
    %c0_175 = arith.constant 0 : index
    %c1_176 = arith.constant 1 : index
    %c0_177 = arith.constant 0 : index
    %c0_178 = arith.constant 0 : index
    %192 = vector.load %arg5[%c0_175, %c1_176, %c0_177, %c0_178] : memref<1x2x4x128xf32, #tpu.memory_space<vmem>>, vector<1x1x4x128xf32>
    %193 = vector.shape_cast %192 : vector<1x1x4x128xf32> to vector<4x128xf32>
    %194 = vector.shape_cast %191 : vector<4x128xf32> to vector<1x1x4x128xf32>
    tpu.vector_store %arg5[%c0_175, %c1_176, %c0_177, %c0_178], %194 {strides = array<i32>} : memref<1x2x4x128xf32, #tpu.memory_space<vmem>>, vector<1x1x4x128xf32>,
    return
  }
  func.func @transform_0(%arg0: i32, %arg1: i32) -> (i32, i32, i32, i32) {
    %c0_i32 = arith.constant 0 : i32
    %c0_i32_0 = arith.constant 0 : i32
    %c0_i32_1 = arith.constant 0 : i32
    %c0_i32_2 = arith.constant 0 : i32
    return %arg0, %c0_i32, %c0_i32_0, %c0_i32_1 : i32, i32, i32, i32
  }
  func.func @transform_1(%arg0: i32, %arg1: i32) -> (i32, i32, i32) {
    %c0_i32 = arith.constant 0 : i32
    %c0_i32_0 = arith.constant 0 : i32
    %c0_i32_1 = arith.constant 0 : i32
    %c0_i32_2 = arith.constant 0 : i32
    return %c0_i32, %c0_i32_0, %c0_i32_1 : i32, i32, i32
  }
  func.func @transform_2(%arg0: i32, %arg1: i32) -> (i32, i32) {
    %c0_i32 = arith.constant 0 : i32
    %c0_i32_0 = arith.constant 0 : i32
    %c0_i32_1 = arith.constant 0 : i32
    return %c0_i32, %c0_i32_0 : i32, i32
  }
  func.func @transform_3(%arg0: i32, %arg1: i32) -> (i32, i32, i32, i32) {
    %c0_i32 = arith.constant 0 : i32
    %c0_i32_0 = arith.constant 0 : i32
    %c0_i32_1 = arith.constant 0 : i32
    return %arg0, %arg1, %c0_i32, %c0_i32_0 : i32, i32, i32, i32
  }
}

</mosaic_0001>

<bundles_post_ra>
// kernel: conv_patch_embed_forward.2
= control target key start
LH: loop header
LB: loop body
LE: loop exit
PB: predicated region body
PF: predicated region fallthrough
CT: control target
= control target key end

     0   :  { %s3018_s12 = smov 0   ;;  %s3020_s13 = smov 0   ;;  %s3418_s0 = inlined_call_operand.vmem [shape: bf16[2,36,9,4], index: 0, kind: input, shape index: {}]   ;;  %s3419_s1 = inlined_call_operand.vmem [shape: bf16[9,4,128], index: 1, kind: input, shape index: {}]   ;;  %s3420_s2 = inlined_call_operand.vmem [shape: f32[1,128], index: 2, kind: input, shape index: {}]   ;;  %s3421_s3 = inlined_call_operand.vmem [shape: bf16[2,8,8,128], index: 3, kind: output, shape index: {}]  }
   0x1   :  { %s3022_s14 = smov 0   ;;  %s3024_s15 = smov 0  }
   0x2   :  { %s3026_s16 = smov 0  }
   0x3 LB: > { %s22_s17 = sadd.s32 1, %s2986_s14  ;;  %s25_s18 = sadd.s32 1, %s2990_s15  ;;  %s2994_s16 = sphi %s3026_s16, %s13_s16   ;;  %s2990_s15 = sphi %s3024_s15, %s3425_s15   ;;  %s2986_s14 = sphi %s3022_s14, %s3424_s14   ;;  %s2982_s13 = sphi %s3020_s13, %s3423_s13   ;;  %s2978_s12 = sphi %s3018_s12, %s3422_s12  }
   0x4   : > { %p23_p0 = scmp.ge.s32.totalorder %s22_s17, 2  ;;  %p2410_p1 = scmp.ge.s32.totalorder %s2994_s16, 1 }
   0x5   : > { %p151_p2 = scmp.lt.s32.totalorder %s2994_s16, 5 }
   0x6   : > { %s3427_s17 = smov (%p23_p0, %s22_s17), 0  ;;  %s3429_s18 = smov (!%p23_p0, %s25_s18), %s2990_s15 }
   0x7   : > { %p152_p3 = pnand %p2410_p1, %p151_p2  ;;  %p27_p4 = scmp.ge.s32.totalorder %s3429_s18, 2 }
   0x8   : > { %v2421_v0 = vld [vmem:[%s3419_s1 + $0x2] sm:$0x3] (!%p152_p3)  ;;  %vm212_vm0 = vcmask (!%p152_p3), 1041408   ;;  %v200_v1 = vld [vmem:[%s3419_s1] sm:$0x3] (!%p152_p3)  ;;  %v2996_v2 = vmov (!%p152_p3), 0.0  }
   0x9   : > { %s3431_s18 = smov (%p27_p4, %s3429_s18), 0  ;;  %155 = sbr.rel (%p152_p3) target bundleno = 396 (0x18c), region = 32 }
   0xa   : > { %2677 = vmatprep.subr.bf16.mxu0 (!%p152_p3), %v2996_v2  ;;  %v214_v3 = vsel (!%p152_p3), %vm212_vm0, %v2421_v0, 0  ;;  %2683 = vmatprep.subr.bf16.mxu1 (!%p152_p3), %v2996_v2  ;;  %v260_v4 = vsel (!%p152_p3), %vm212_vm0, %v200_v1, 0  ;;  %p179_p5 = scmp.lt.s32.totalorder (!%p152_p3), %s2982_s13, 1  ;;  %vm2997_vm1 = vmmov (!%p152_p3), 0   ;;  %s2587_s24 = sshll.u32 (!%p152_p3), %s2978_s12, 5  ;;  %vm208_vm2 = vcmask (!%p152_p3), 31744  }
   0xb   : > { %2678 = vmatpush3.bf16.msra.mxu0 (!%p152_p3), %v214_v3  ;;  %2684 = vmatpush3.bf16.msra.mxu1 (!%p152_p3), %v260_v4  ;;  %v2424_v5 = vld [vmem:[%s3419_s1 + $0x4] sm:$0x3] (!%p152_p3)  ;;  %v2430_v6 = vld [vmem:[%s3419_s1 + $0x6] sm:$0x3] (!%p152_p3)  ;;  %v2435_v14 = vld [vmem:[%s3419_s1 + $0x8] sm:$0x3] (!%p152_p3) }
   0xc   : > { %2679 = vmatprep.mubr.msk.bf16.mxu0 (!%p152_p3), %vm2997_vm1, %v2996_v2  ;;  %2685 = vmatprep.mubr.msk.bf16.mxu1 (!%p152_p3), %vm2997_vm1, %v2996_v2  ;;  %v322_v7 = vsel (!%p152_p3), %vm212_vm0, %v2424_v5, 0  ;;  %v376_v8 = vsel (!%p152_p3), %vm212_vm0, %v2430_v6, 0  ;;  %v2439_v16 = vld [vmem:[%s3419_s1 + $0xa] sm:$0x3] (!%p152_p3)  ;;  %v430_v21 = vsel (!%p152_p3), %vm212_vm0, %v2435_v14, 0  ;;  %s2412_s21 = sshll.u32 (!%p152_p3), %s2978_s12, 2 }
   0xd   : > { %2689 = vmatprep.subr.bf16.mxu0 (!%p152_p3), %v2996_v2  ;;  %2695 = vmatprep.subr.bf16.mxu1 (!%p152_p3), %v2996_v2  ;;  %v493_v22 = vsel (!%p152_p3), %vm212_vm0, %v2439_v16, 0  ;;  %v2445_v25 = vld [vmem:[%s3419_s1 + $0xc] sm:$0x3] (!%p152_p3)  ;;  %v2450_v26 = vld [vmem:[%s3419_s1 + $0xe] sm:$0x3] (!%p152_p3)  ;;  %p187_p6 = scmp.lt.s32.totalorder (!%p152_p3), %s2412_s21, 7 }
   0xe   : > { %v547_v29 = vsel (!%p152_p3), %vm212_vm0, %v2445_v25, 0  ;;  %v601_v30 = vsel (!%p152_p3), %vm212_vm0, %v2450_v26, 0  ;;  %v2454_v32 = vld [vmem:[%s3419_s1 + $0x10] sm:$0x3] (!%p152_p3)  ;;  %v2460_v33 = vld [vmem:[%s3419_s1 + $0x2] sm:$0x3] (!%p152_p3) }
   0xf   : > { %v664_v37 = vsel (!%p152_p3), %vm212_vm0, %v2454_v32, 0  ;;  %v730_v38 = vsel (!%p152_p3), %vm212_vm0, %v2460_v33, 0  ;;  %v723_v42 = vld [vmem:[%s3419_s1] sm:$0x3] (!%p152_p3)  ;;  %v2465_v43 = vld [vmem:[%s3419_s1 + $0x4] sm:$0x3] (!%p152_p3) }
  0x10   : > { %s3433_s13 = smov (!%p179_p5, %s2982_s13), 1  ;;  %v776_v47 = vsel %vm212_vm0, %v723_v42, 0  ;;  %v837_v48 = vsel %vm212_vm0, %v2465_v43, 0  ;;  %v2471_v51 = vld [vmem:[%s3419_s1 + $0x6] sm:$0x3]  ;;  %s3435_s21 = smov (!%p187_p6, %s2412_s21), 7 }
  0x11   : > { %s2893_s23 = smul.u32 288, %s3433_s13  ;;  %v2476_v52 = vld [vmem:[%s3419_s1 + $0x8] sm:$0x3]  ;;  %v890_v55 = vsel %vm212_vm0, %v2471_v51, 0  ;;  %v2480_v58 = vld [vmem:[%s3419_s1 + $0xa] sm:$0x3] }
  0x12   : > { %v943_v56 = vsel %vm212_vm0, %v2476_v52, 0  ;;  %v2486_v59 = vld [vmem:[%s3419_s1 + $0xc] sm:$0x3]  ;;  %v1005_v63 = vsel %vm212_vm0, %v2480_v58, 0  ;;  %v2491_v5 = vld [vmem:[%s3419_s1 + $0xe] sm:$0x3] }
  0x13   : > { %s183_s4 = scalar_lea.vmem %s3418_s0, %s2893_s23  ;;  %v1058_v0 = vsel %vm212_vm0, %v2486_v59, 0  ;;  %v2495_v6 = vld [vmem:[%s3419_s1 + $0x10] sm:$0x3]  ;;  %v2502_v14 = vld [vmem:[%s3419_s1 + $0x2] sm:$0x3]  ;;  %s2413_s22 = sshll.u32 %s3433_s13, 3 }
  0x14   : > { %s3079_s5 = scalar_lea.vmem %s183_s4, %s2587_s24  ;;  %v2522_v32 = vld [vmem:[%s3419_s1 + $0xa] sm:$0x3]  ;;  %v2549_v58 = vld [vmem:[%s3419_s1 + $0x4] sm:$0x3]  ;;  %s190_s23 = sadd.s32 %s2413_s22, %s3435_s21 }
  0x15   : > { %v2420_v9 = vld [vmem:[%s3079_s5 + $0x48] sm:$0xf]  ;;  %v199_v10 = vld [vmem:[%s3079_s5] sm:$0xf]  ;;  %v2937_v15 = vld [vmem:[%s3079_s5 + $0x90] sm:$0x1f]  }
  0x16   : > { %2680 = vmatmul.mubr.msk.bf16.vlgmr.msra.gmra.mrb[0].mxu0 %vm208_vm2, %v2420_v9  ;;  %2686 = vmatmul.mubr.msk.bf16.vlgmr.msra.gmra.mrb[0].mxu1 %vm208_vm2, %v199_v10  ;;  %v2936_v11 = vld [vmem:[%s3079_s5] sm:$0x1f]   ;;  %v485_v18 = vshll.u32 %v2937_v15, 16  ;;  %v2429_v19 = vld [vmem:[%s3079_s5 + $0x90] sm:$0xf]  ;;  %v483_v23 = vshrl.u32 %v2937_v15, 16 }
  0x17   : > { %2690 = vmatpush3.bf16.msra.mxu0 %v322_v7  ;;  %2696 = vmatpush3.bf16.msra.mxu1 %v376_v8  ;;  %v312_v12 = vshrl.u32 %v2936_v11, 16  ;;  %v314_v13 = vshll.u32 %v2936_v11, 16  ;;  %v2434_v28 = vld [vmem:[%s3079_s5 + $0xd8] sm:$0xf]  ;;  %v2938_v31 = vld [vmem:[%s3079_s5 + $0x8] sm:$0x1f]  }
  0x18   : > { %2691 = vmatprep.mubr.msk.bf16.mxu0 %vm2997_vm1, %v2996_v2  ;;  %2697 = vmatprep.mubr.msk.bf16.mxu1 %vm2997_vm1, %v2996_v2  ;;  %v487_v24 = vrot.slane %v485_v18, 1  ;;  %v656_v34 = vshll.u32 %v2938_v31, 16  ;;  %v2444_v35 = vld [vmem:[%s3079_s5 + $0x8] sm:$0xf]  ;;  %v2449_v36 = vld [vmem:[%s3079_s5 + $0x50] sm:$0xf] }
  0x19   : > { %2701 = vmatprep.subr.bf16.mxu0 %v2996_v2  ;;  %2707 = vmatprep.subr.bf16.mxu1 %v2996_v2  ;;  %v316_v17 = vrot.slane %v314_v13, 1  ;;  %v654_v39 = vshrl.u32 %v2938_v31, 16  ;;  %v2939_v41 = vld [vmem:[%s3079_s5 + $0x8] sm:$0x1f]   ;;  %v2459_v46 = vld [vmem:[%s3079_s5 + $0x50] sm:$0xf] }
  0x1a   : > { %v488_v27 = vor.u32 %v487_v24, %v483_v23  ;;  %v658_v40 = vrot.slane %v656_v34, 1  ;;  %v829_v45 = vshll.u32 %v2939_v41, 16  ;;  %v827_v49 = vshrl.u32 %v2939_v41, 16  ;;  %v2458_v54 = vld [vmem:[%s3079_s5 + $0x8] sm:$0xf]  ;;  %s2414_s12 = sshll.u32 %s190_s23, 2 }
  0x1b   : > { %v317_v20 = vor.u32 %v316_v17, %v312_v12  ;;  %v2940_v57 = vld [vmem:[%s3079_s5 + $0x98] sm:$0x1f]   ;;  %v2475_v62 = vld [vmem:[%s3079_s5 + $0xe0] sm:$0xf]  ;;  %v2941_v4 = vld [vmem:[%s3079_s5 + $0x10] sm:$0x1f]   ;;  %s3394_s13 = scalar_lea.vmem %s3421_s3, %s2414_s12 }
  0x1c   : > { %v659_v44 = vor.u32 %v658_v40, %v654_v39  ;;  %v831_v50 = vrot.slane %v829_v45, 1  ;;  %v997_v60 = vshll.u32 %v2940_v57, 16  ;;  %v2470_v61 = vld [vmem:[%s3079_s5 + $0x98] sm:$0xf]  ;;  %v995_v1 = vshrl.u32 %v2940_v57, 16 }
  0x1d   : > { %v1165_v8 = vshll.u32 %v2941_v4, 16  ;;  %v2485_v9 = vld [vmem:[%s3079_s5 + $0x10] sm:$0xf]  ;;  %v1111_v10 = vsel %vm212_vm0, %v2491_v5, 0  ;;  %v1173_v11 = vsel %vm212_vm0, %v2495_v6, 0  ;;  %v1163_v12 = vshrl.u32 %v2941_v4, 16 }
  0x1e   : > { %2692 = vmatmul.mubr.msk.bf16.vlgmr.msra.gmra.mrb[4].mxu0 %vm208_vm2, %v317_v20  ;;  %2698 = vmatmul.mubr.msk.bf16.vlgmr.msra.gmra.mrb[4].mxu1 %vm208_vm2, %v2429_v19  ;;  %v832_v53 = vor.u32 %v831_v50, %v827_v49  ;;  %v999_v3 = vrot.slane %v997_v60, 1  ;;  %v1233_v15 = vld [vmem:[%s3419_s1] sm:$0x3]  ;;  %v2490_v17 = vld [vmem:[%s3079_s5 + $0x58] sm:$0xf]  ;;  %v1240_v18 = vsel %vm212_vm0, %v2502_v14, 0 }
  0x1f   : > { %2702 = vmatpush3.bf16.msra.mxu0 %v430_v21  ;;  %2708 = vmatpush3.bf16.msra.mxu1 %v493_v22  ;;  %v1167_v13 = vrot.slane %v1165_v8, 1  ;;  %v1286_v19 = vsel %vm212_vm0, %v1233_v15, 0  ;;  %v2942_v20 = vld [vmem:[%s3079_s5 + $0x10] sm:$0x1f]   ;;  %v2507_v21 = vld [vmem:[%s3419_s1 + $0x4] sm:$0x3] }
  0x20   : > { %2703 = vmatprep.mubr.msk.bf16.mxu0 %vm2997_vm1, %v2996_v2  ;;  %2709 = vmatprep.mubr.msk.bf16.mxu1 %vm2997_vm1, %v2996_v2  ;;  %v1000_v7 = vor.u32 %v999_v3, %v995_v1  ;;  %v2513_v22 = vld [vmem:[%s3419_s1 + $0x6] sm:$0x3]  ;;  %v1339_v23 = vshll.u32 %v2942_v20, 16  ;;  %v2501_v24 = vld [vmem:[%s3079_s5 + $0x58] sm:$0xf]  ;;  %v1347_v26 = vsel %vm212_vm0, %v2507_v21, 0 }
  0x21   : > { %2713 = vmatprep.subr.bf16.mxu0 %v2996_v2  ;;  %2719 = vmatprep.subr.bf16.mxu1 %v2996_v2  ;;  %v1168_v16 = vor.u32 %v1167_v13, %v1163_v12  ;;  %v2500_v25 = vld [vmem:[%s3079_s5 + $0x10] sm:$0xf]  ;;  %v2518_v31 = vld [vmem:[%s3419_s1 + $0x8] sm:$0x3]  ;;  %v2528_v40 = vld [vmem:[%s3419_s1 + $0xc] sm:$0x3] }
  0x22   : > { %v2533_v41 = vld [vmem:[%s3419_s1 + $0xe] sm:$0x3]  ;;  %v2517_v43 = vld [vmem:[%s3079_s5 + $0xe8] sm:$0xf]  ;;  %v2527_v50 = vld [vmem:[%s3079_s5 + $0x18] sm:$0xf] }
  0x23   : > { %v1621_v45 = vsel %vm212_vm0, %v2533_v41, 0  ;;  %v2532_v51 = vld [vmem:[%s3079_s5 + $0x60] sm:$0xf]  ;;  %v2555_v3 = vld [vmem:[%s3419_s1 + $0x6] sm:$0x3] }
  0x24   : > { %v1743_v57 = vld [vmem:[%s3419_s1] sm:$0x3]  ;;  %v2560_v4 = vld [vmem:[%s3419_s1 + $0x8] sm:$0x3]  ;;  %v2542_v6 = vld [vmem:[%s3079_s5 + $0x18] sm:$0xf] }
  0x25   : > { %v1963_v8 = vsel %vm212_vm0, %v2560_v4, 0  ;;  %v2554_v13 = vld [vmem:[%s3079_s5 + $0xa8] sm:$0xf]  ;;  %v2559_v14 = vld [vmem:[%s3079_s5 + $0xf0] sm:$0xf] }
  0x26   : > { %2704 = vmatmul.mubr.msk.bf16.vlgmr.msra.gmra.mrb[8].mxu0 %vm208_vm2, %v2434_v28  ;;  %2710 = vmatmul.mubr.msk.bf16.vlgmr.msra.gmra.mrb[8].mxu1 %vm208_vm2, %v488_v27  ;;  %v1400_v27 = vsel %vm212_vm0, %v2513_v22, 0  ;;  %v1337_v28 = vshrl.u32 %v2942_v20, 16  ;;  %v2575_v20 = vld [vmem:[%s3419_s1 + $0xe] sm:$0x3]  ;;  %v2579_v21 = vld [vmem:[%s3419_s1 + $0x10] sm:$0x3] }
  0x27   : > { %2714 = vmatpush3.bf16.msra.mxu0 %v547_v29  ;;  %2720 = vmatpush3.bf16.msra.mxu1 %v601_v30  ;;  %v1341_v29 = vrot.slane %v1339_v23, 1  ;;  %v2943_v30 = vld [vmem:[%s3079_s5 + $0xa0] sm:$0x1f]  }
  0x28   : > { %2715 = vmatprep.mubr.msk.bf16.mxu0 %vm2997_vm1, %v2996_v2  ;;  %2721 = vmatprep.mubr.msk.bf16.mxu1 %vm2997_vm1, %v2996_v2  ;;  %v1507_v34 = vshll.u32 %v2943_v30, 16 }
  0x29   : > { %2725 = vmatprep.subr.bf16.mxu0 %v2996_v2  ;;  %2731 = vmatprep.subr.bf16.mxu1 %v2996_v2  ;;  %v1342_v33 = vor.u32 %v1341_v29, %v1337_v28 }
  0x2a   : > { %v1509_v39 = vrot.slane %v1507_v34, 1 }
  0x2e   : > { %2716 = vmatmul.mubr.msk.bf16.vlgmr.msra.gmra.mrb[12].mxu0 %vm208_vm2, %v2444_v35  ;;  %2722 = vmatmul.mubr.msk.bf16.vlgmr.msra.gmra.mrb[12].mxu1 %vm208_vm2, %v2449_v36  ;;  %v2512_v35 = vld [vmem:[%s3079_s5 + $0xa0] sm:$0xf]  ;;  %v1453_v36 = vsel %vm212_vm0, %v2518_v31, 0 }
  0x2f   : > { %2726 = vmatpush3.bf16.msra.mxu0 %v664_v37  ;;  %2732 = vmatpush3.bf16.msra.mxu1 %v730_v38  ;;  %v1515_v37 = vsel %vm212_vm0, %v2522_v32, 0  ;;  %v1505_v38 = vshrl.u32 %v2943_v30, 16  ;;  %v2574_v30 = vld [vmem:[%s3079_s5 + $0x68] sm:$0xf] }
  0x30   : > { %2727 = vmatprep.mubr.msk.bf16.mxu0 %vm2997_vm1, %v2996_v2  ;;  %2733 = vmatprep.mubr.msk.bf16.mxu1 %vm2997_vm1, %v2996_v2 }
  0x31   : > { %2737 = vmatprep.subr.bf16.mxu0 %v2996_v2  ;;  %2743 = vmatprep.subr.bf16.mxu1 %v2996_v2  ;;  %v1510_v42 = vor.u32 %v1509_v39, %v1505_v38 }
  0x36   : > { %2728 = vmatmul.mubr.msk.bf16.vlgmr.msra.gmra.mrb[16].mxu0 %vm208_vm2, %v659_v44  ;;  %2734 = vmatmul.mubr.msk.bf16.vlgmr.msra.gmra.mrb[16].mxu1 %vm208_vm2, %v2459_v46  ;;  %v1568_v44 = vsel %vm212_vm0, %v2528_v40, 0  ;;  %v2944_v46 = vld [vmem:[%s3079_s5 + $0x18] sm:$0x1f]  }
  0x37   : > { %2738 = vmatpush3.bf16.msra.mxu0 %v776_v47  ;;  %2744 = vmatpush3.bf16.msra.mxu1 %v837_v48  ;;  %v2537_v47 = vld [vmem:[%s3419_s1 + $0x10] sm:$0x3]  ;;  %v2544_v48 = vld [vmem:[%s3419_s1 + $0x2] sm:$0x3]  ;;  %v1675_v49 = vshll.u32 %v2944_v46, 16 }
  0x38   : > { %2739 = vmatprep.mubr.msk.bf16.mxu0 %vm2997_vm1, %v2996_v2  ;;  %2745 = vmatprep.mubr.msk.bf16.mxu1 %vm2997_vm1, %v2996_v2  ;;  %v1683_v52 = vsel %vm212_vm0, %v2537_v47, 0 }
  0x39   : > { %2749 = vmatprep.subr.bf16.mxu0 %v2996_v2  ;;  %2755 = vmatprep.subr.bf16.mxu1 %v2996_v2 }
  0x3e   : > { %2740 = vmatmul.mubr.msk.bf16.vlgmr.msra.gmra.mrb[20].mxu0 %vm208_vm2, %v2458_v54  ;;  %2746 = vmatmul.mubr.msk.bf16.vlgmr.msra.gmra.mrb[20].mxu1 %vm208_vm2, %v832_v53  ;;  %v1750_v53 = vsel %vm212_vm0, %v2544_v48, 0  ;;  %v1673_v54 = vshrl.u32 %v2944_v46, 16 }
  0x3f   : > { %2750 = vmatpush3.bf16.msra.mxu0 %v890_v55  ;;  %2756 = vmatpush3.bf16.msra.mxu1 %v943_v56  ;;  %v1677_v55 = vrot.slane %v1675_v49, 1  ;;  %v2945_v56 = vld [vmem:[%s3079_s5 + $0x18] sm:$0x1f]  }
  0x40   : > { %2751 = vmatprep.mubr.msk.bf16.mxu0 %vm2997_vm1, %v2996_v2  ;;  %2757 = vmatprep.mubr.msk.bf16.mxu1 %vm2997_vm1, %v2996_v2  ;;  %v1849_v60 = vshll.u32 %v2945_v56, 16 }
  0x41   : > { %2761 = vmatprep.subr.bf16.mxu0 %v2996_v2  ;;  %2767 = vmatprep.subr.bf16.mxu1 %v2996_v2  ;;  %v1678_v59 = vor.u32 %v1677_v55, %v1673_v54 }
  0x42   : > { %v1851_v1 = vrot.slane %v1849_v60, 1 }
  0x46   : > { %2752 = vmatmul.mubr.msk.bf16.vlgmr.msra.gmra.mrb[24].mxu0 %vm208_vm2, %v2470_v61  ;;  %2758 = vmatmul.mubr.msk.bf16.vlgmr.msra.gmra.mrb[24].mxu1 %vm208_vm2, %v2475_v62  ;;  %v2543_v61 = vld [vmem:[%s3079_s5 + $0x60] sm:$0xf]  ;;  %v1796_v62 = vsel %vm212_vm0, %v1743_v57, 0 }
  0x47   : > { %2762 = vmatpush3.bf16.msra.mxu0 %v1005_v63  ;;  %2768 = vmatpush3.bf16.msra.mxu1 %v1058_v0  ;;  %v1857_v63 = vsel %vm212_vm0, %v2549_v58, 0  ;;  %v1847_v0 = vshrl.u32 %v2945_v56, 16 }
  0x48   : > { %2763 = vmatprep.mubr.msk.bf16.mxu0 %vm2997_vm1, %v2996_v2  ;;  %2769 = vmatprep.mubr.msk.bf16.mxu1 %vm2997_vm1, %v2996_v2 }
  0x49   : > { %2773 = vmatprep.subr.bf16.mxu0 %v2996_v2  ;;  %2779 = vmatprep.subr.bf16.mxu1 %v2996_v2  ;;  %v1852_v5 = vor.u32 %v1851_v1, %v1847_v0 }
  0x4e   : > { %2764 = vmatmul.mubr.msk.bf16.vlgmr.msra.gmra.mrb[28].mxu0 %vm208_vm2, %v1000_v7  ;;  %2770 = vmatmul.mubr.msk.bf16.vlgmr.msra.gmra.mrb[28].mxu1 %vm208_vm2, %v2485_v9  ;;  %v1910_v7 = vsel %vm212_vm0, %v2555_v3, 0  ;;  %v2946_v9 = vld [vmem:[%s3079_s5 + $0xa8] sm:$0x1f]  }
  0x4f   : > { %2774 = vmatpush3.bf16.msra.mxu0 %v1111_v10  ;;  %2780 = vmatpush3.bf16.msra.mxu1 %v1173_v11  ;;  %v2564_v10 = vld [vmem:[%s3419_s1 + $0xa] sm:$0x3]  ;;  %v2570_v11 = vld [vmem:[%s3419_s1 + $0xc] sm:$0x3]  ;;  %v2017_v12 = vshll.u32 %v2946_v9, 16 }
  0x50   : > { %2775 = vmatprep.mubr.msk.bf16.mxu0 %vm2997_vm1, %v2996_v2  ;;  %2781 = vmatprep.mubr.msk.bf16.mxu1 %vm2997_vm1, %v2996_v2  ;;  %v2025_v15 = vsel %vm212_vm0, %v2564_v10, 0 }
  0x51   : > { %2785 = vmatprep.subr.bf16.mxu0 %v2996_v2  ;;  %2791 = vmatprep.subr.bf16.mxu1 %v2996_v2 }
  0x56   : > { %2776 = vmatmul.mubr.msk.bf16.vlgmr.msra.gmra.mrb[32].mxu0 %vm208_vm2, %v2490_v17  ;;  %2782 = vmatmul.mubr.msk.bf16.vlgmr.msra.gmra.mrb[32].mxu1 %vm208_vm2, %v1168_v16  ;;  %v2078_v16 = vsel %vm212_vm0, %v2570_v11, 0  ;;  %v2015_v17 = vshrl.u32 %v2946_v9, 16 }
  0x57   : > { %2786 = vmatpush3.bf16.msra.mxu0 %v1240_v18  ;;  %2792 = vmatpush3.bf16.msra.mxu1 %v1286_v19  ;;  %v2019_v18 = vrot.slane %v2017_v12, 1  ;;  %v2947_v19 = vld [vmem:[%s3079_s5 + $0x20] sm:$0x1f]  }
  0x58   : > { %2787 = vmatprep.mubr.msk.bf16.mxu0 %vm2997_vm1, %v2996_v2  ;;  %2793 = vmatprep.mubr.msk.bf16.mxu1 %vm2997_vm1, %v2996_v2  ;;  %v2185_v23 = vshll.u32 %v2947_v19, 16 }
  0x59   : > { %2797 = vmatprep.subr.bf16.mxu0 %v2996_v2  ;;  %2803 = vmatprep.subr.bf16.mxu1 %v2996_v2  ;;  %v2020_v22 = vor.u32 %v2019_v18, %v2015_v17 }
  0x5a   : > { %v2187_v28 = vrot.slane %v2185_v23, 1 }
  0x5e   : > { %2788 = vmatmul.mubr.msk.bf16.vlgmr.msra.gmra.mrb[36].mxu0 %vm208_vm2, %v2501_v24  ;;  %2794 = vmatmul.mubr.msk.bf16.vlgmr.msra.gmra.mrb[36].mxu1 %vm208_vm2, %v2500_v25  ;;  %v2569_v24 = vld [vmem:[%s3079_s5 + $0x20] sm:$0xf]  ;;  %v2131_v25 = vsel %vm212_vm0, %v2575_v20, 0 }
  0x5f   : > { %2798 = vmatpush3.bf16.msra.mxu0 %v1347_v26  ;;  %2804 = vmatpush3.bf16.msra.mxu1 %v1400_v27  ;;  %v2193_v26 = vsel %vm212_vm0, %v2579_v21, 0  ;;  %v2183_v27 = vshrl.u32 %v2947_v19, 16 }
  0x60   : > { %2799 = vmatprep.mubr.msk.bf16.mxu0 %vm2997_vm1, %v2996_v2  ;;  %2805 = vmatprep.mubr.msk.bf16.mxu1 %vm2997_vm1, %v2996_v2 }
  0x61   : > { %2809 = vmatprep.subr.bf16.mxu0 %v2996_v2  ;;  %2815 = vmatprep.subr.bf16.mxu1 %v2996_v2  ;;  %v2188_v29 = vor.u32 %v2187_v28, %v2183_v27 }
  0x66   : > { %2800 = vmatmul.mubr.msk.bf16.vlgmr.msra.gmra.mrb[40].mxu0 %vm208_vm2, %v1342_v33  ;;  %2806 = vmatmul.mubr.msk.bf16.vlgmr.msra.gmra.mrb[40].mxu1 %vm208_vm2, %v2512_v35 }
  0x67   : > { %2810 = vmatpush3.bf16.msra.mxu0 %v1453_v36  ;;  %2816 = vmatpush3.bf16.msra.mxu1 %v1515_v37 }
  0x68   : > { %2811 = vmatprep.mubr.msk.bf16.mxu0 %vm2997_vm1, %v2996_v2  ;;  %2817 = vmatprep.mubr.msk.bf16.mxu1 %vm2997_vm1, %v2996_v2 }
  0x69   : > { %2821 = vmatprep.subr.bf16.mxu0 %v2996_v2  ;;  %2827 = vmatprep.subr.bf16.mxu1 %v2996_v2 }
  0x6e   : > { %2812 = vmatmul.mubr.msk.bf16.vlgmr.msra.gmra.mrb[44].mxu0 %vm208_vm2, %v2517_v43  ;;  %2818 = vmatmul.mubr.msk.bf16.vlgmr.msra.gmra.mrb[44].mxu1 %vm208_vm2, %v1510_v42 }
  0x6f   : > { %2822 = vmatpush3.bf16.msra.mxu0 %v1568_v44  ;;  %2828 = vmatpush3.bf16.msra.mxu1 %v1621_v45 }
  0x70   : > { %2823 = vmatprep.mubr.msk.bf16.mxu0 %vm2997_vm1, %v2996_v2  ;;  %2829 = vmatprep.mubr.msk.bf16.mxu1 %vm2997_vm1, %v2996_v2 }
  0x71   : > { %2833 = vmatprep.subr.bf16.mxu0 %v2996_v2  ;;  %2839 = vmatprep.subr.bf16.mxu1 %v2996_v2 }
  0x76   : > { %2824 = vmatmul.mubr.msk.bf16.vlgmr.msra.gmra.mrb[48].mxu0 %vm208_vm2, %v2527_v50  ;;  %2830 = vmatmul.mubr.msk.bf16.vlgmr.msra.gmra.mrb[48].mxu1 %vm208_vm2, %v2532_v51 }
  0x77   : > { %2834 = vmatpush3.bf16.msra.mxu0 %v1683_v52  ;;  %2840 = vmatpush3.bf16.msra.mxu1 %v1750_v53 }
  0x78   : > { %2835 = vmatprep.mubr.msk.bf16.mxu0 %vm2997_vm1, %v2996_v2  ;;  %2841 = vmatprep.mubr.msk.bf16.mxu1 %vm2997_vm1, %v2996_v2 }
  0x79   : > { %2845 = vmatprep.subr.bf16.mxu0 %v2996_v2  ;;  %2851 = vmatprep.subr.bf16.mxu1 %v2996_v2 }
  0x7e   : > { %2836 = vmatmul.mubr.msk.bf16.vlgmr.msra.gmra.mrb[52].mxu0 %vm208_vm2, %v1678_v59  ;;  %2842 = vmatmul.mubr.msk.bf16.vlgmr.msra.gmra.mrb[52].mxu1 %vm208_vm2, %v2543_v61 }
  0x7f   : > { %2846 = vmatpush3.bf16.msra.mxu0 %v1796_v62  ;;  %2852 = vmatpush3.bf16.msra.mxu1 %v1857_v63 }
  0x80   : > { %2847 = vmatprep.mubr.msk.bf16.mxu0 %vm2997_vm1, %v2996_v2  ;;  %2853 = vmatprep.mubr.msk.bf16.mxu1 %vm2997_vm1, %v2996_v2 }
  0x81   : > { %2857 = vmatprep.subr.bf16.mxu0 %v2996_v2  ;;  %2863 = vmatprep.subr.bf16.mxu1 %v2996_v2 }
  0x86   : > { %2848 = vmatmul.mubr.msk.bf16.vlgmr.msra.gmra.mrb[56].mxu0 %vm208_vm2, %v2542_v6  ;;  %2854 = vmatmul.mubr.msk.bf16.vlgmr.msra.gmra.mrb[56].mxu1 %vm208_vm2, %v1852_v5 }
  0x87   : > { %2858 = vmatpush3.bf16.msra.mxu0 %v1910_v7  ;;  %2864 = vmatpush3.bf16.msra.mxu1 %v1963_v8  ;;  %v3386_v7 = vld [vmem:[%s3420_s2] ss:$0 sm:$0xff] }
  0x88   : > { %2859 = vmatprep.mubr.msk.bf16.mxu0 %vm2997_vm1, %v2996_v2  ;;  %2865 = vmatprep.mubr.msk.bf16.mxu1 %vm2997_vm1, %v2996_v2 }
  0x89   : > { %2869 = vmatprep.subr.bf16.mxu0 %v2996_v2  ;;  %2875 = vmatprep.subr.bf16.mxu1 %v2996_v2 }
  0x8e   : > { %2860 = vmatmul.mubr.msk.bf16.vlgmr.msra.gmra.mrb[60].mxu0 %vm208_vm2, %v2554_v13  ;;  %2866 = vmatmul.mubr.msk.bf16.vlgmr.msra.gmra.mrb[60].mxu1 %vm208_vm2, %v2559_v14 }
  0x8f   : > { %2870 = vmatpush3.bf16.msra.mxu0 %v2025_v15  ;;  %2876 = vmatpush3.bf16.msra.mxu1 %v2078_v16 }
  0x90   : > { %2871 = vmatprep.mubr.msk.bf16.mxu0 %vm2997_vm1, %v2996_v2  ;;  %2877 = vmatprep.mubr.msk.bf16.mxu1 %vm2997_vm1, %v2996_v2 }
  0x91   : > { %2881 = vmatprep.subr.bf16.mxu0 %v2996_v2  ;;  %2887 = vmatprep.subr.bf16.mxu1 %v2996_v2 }
  0x96   : > { %2872 = vmatmul.mubr.msk.bf16.vlgmr.msra.gmra.mrb[64].mxu0 %vm208_vm2, %v2020_v22  ;;  %2878 = vmatmul.mubr.msk.bf16.vlgmr.msra.gmra.mrb[64].mxu1 %vm208_vm2, %v2569_v24 }
  0x97   : > { %2882 = vmatpush3.bf16.msra.mxu0 %v2131_v25  ;;  %2888 = vmatpush3.bf16.msra.mxu1 %v2193_v26 }
  0x98   : > { %2883 = vmatprep.mubr.msk.bf16.mxu0 %vm2997_vm1, %v2996_v2  ;;  %2889 = vmatprep.mubr.msk.bf16.mxu1 %vm2997_vm1, %v2996_v2 }
  0x9e   : > { %2884 = vmatmul.mubr.msk.bf16.vlgmr.msra.gmra.mrb[68].mxu0 %vm208_vm2, %v2574_v30  ;;  %2890 = vmatmul.mubr.msk.bf16.vlgmr.msra.gmra.mrb[68].mxu1 %vm208_vm2, %v2188_v29 }
  0xe9   : > { %v250_v31 = vpop.f32.mrb[0].mxu0  ;;  %v296_v32 = vpop.f32.mrb[0].mxu1 }
  0xea   : > { %v297_v33 = vadd.f32 %v296_v32, %v250_v31  ;;  %v2681_v34 = vpop.f32.mrb[1].mxu0  ;;  %v2687_v35 = vpop.f32.mrb[1].mxu1 }
  0xeb   : > { %v253_v36 = vpop.f32.mrb[2].mxu0  ;;  %v299_v37 = vpop.f32.mrb[2].mxu1 }
  0xec   : > { %v2682_v38 = vpop.f32.mrb[3].mxu0  ;;  %v2688_v39 = vpop.f32.mrb[3].mxu1 }
  0xf1   : > { %v358_v40 = vpop.f32.mrb[4].mxu0  ;;  %v412_v41 = vpop.f32.mrb[4].mxu1 }
  0xf2   : > { %v364_v42 = vadd.f32 %v358_v40, %v297_v33  ;;  %v2693_v43 = vpop.f32.mrb[5].mxu0  ;;  %v2699_v2 = vpop.f32.mrb[5].mxu1 }
  0xf3   : > { %v361_v44 = vpop.f32.mrb[6].mxu0  ;;  %v415_v45 = vpop.f32.mrb[6].mxu1 }
  0xf4   : > { %v418_v46 = vadd.f32 %v412_v41, %v364_v42  ;;  %v2694_v47 = vpop.f32.mrb[7].mxu0  ;;  %v2700_v48 = vpop.f32.mrb[7].mxu1 }
  0xf9   : > { %v466_v49 = vpop.f32.mrb[8].mxu0  ;;  %v529_v50 = vpop.f32.mrb[8].mxu1 }
  0xfa   : > { %v472_v51 = vadd.f32 %v466_v49, %v418_v46  ;;  %v2705_v52 = vpop.f32.mrb[9].mxu0  ;;  %v2711_v53 = vpop.f32.mrb[9].mxu1 }
  0xfb   : > { %v469_v54 = vpop.f32.mrb[10].mxu0  ;;  %v532_v55 = vpop.f32.mrb[10].mxu1 }
  0xfc   : > { %v535_v56 = vadd.f32 %v529_v50, %v472_v51  ;;  %v2706_v57 = vpop.f32.mrb[11].mxu0  ;;  %v2712_v58 = vpop.f32.mrb[11].mxu1 }
 0x101   : > { %v583_v59 = vpop.f32.mrb[12].mxu0  ;;  %v637_v60 = vpop.f32.mrb[12].mxu1 }
 0x102   : > { %v589_v61 = vadd.f32 %v583_v59, %v535_v56  ;;  %v2717_v62 = vpop.f32.mrb[13].mxu0  ;;  %v2723_v63 = vpop.f32.mrb[13].mxu1 }
 0x103   : > { %v586_v0 = vpop.f32.mrb[14].mxu0  ;;  %v640_v1 = vpop.f32.mrb[14].mxu1 }
 0x104   : > { %v643_v3 = vadd.f32 %v637_v60, %v589_v61  ;;  %v2718_v4 = vpop.f32.mrb[15].mxu0  ;;  %v2724_v5 = vpop.f32.mrb[15].mxu1 }
 0x109   : > { %v700_v6 = vpop.f32.mrb[16].mxu0  ;;  %v766_v8 = vpop.f32.mrb[16].mxu1 }
 0x10a   : > { %v706_v9 = vadd.f32 %v700_v6, %v643_v3  ;;  %v2729_v10 = vpop.f32.mrb[17].mxu0  ;;  %v2735_v11 = vpop.f32.mrb[17].mxu1 }
 0x10b   : > { %v703_v12 = vpop.f32.mrb[18].mxu0  ;;  %v769_v13 = vpop.f32.mrb[18].mxu1 }
 0x10c   : > { %v714_v14 = vadd.f32 %v3386_v7, %v706_v9  ;;  %v2730_v15 = vpop.f32.mrb[19].mxu0  ;;  %v2736_v16 = vpop.f32.mrb[19].mxu1 }
 0x10e   : > { %v716_v17 = vmul.f32 0.70710677, %v714_v14  ;;  %v715_v34 = vmul.f32 0.5, %v714_v14 }
 0x110   : > { %2948 = verf.f32 %v716_v17 }
 0x111   : > { %v812_v18 = vpop.f32.mrb[20].mxu0  ;;  %v873_v19 = vpop.f32.mrb[20].mxu1 }
 0x112   : > { %v813_v20 = vadd.f32 %v812_v18, %v766_v8  ;;  %v2741_v21 = vpop.f32.mrb[21].mxu0  ;;  %v2747_v22 = vpop.f32.mrb[21].mxu1 }
 0x113   : > { %v815_v23 = vpop.f32.mrb[22].mxu0  ;;  %v876_v24 = vpop.f32.mrb[22].mxu1 }
 0x114   : > { %v879_v25 = vadd.f32 %v873_v19, %v813_v20  ;;  %v2742_v26 = vpop.f32.mrb[23].mxu0  ;;  %v2748_v27 = vpop.f32.mrb[23].mxu1 }
 0x119   : > { %v926_v28 = vpop.f32.mrb[24].mxu0  ;;  %v979_v29 = vpop.f32.mrb[24].mxu1 }
 0x11a   : > { %v2949_v30 = vpop.eup %2948  ;;  %v932_v31 = vadd.f32 %v926_v28, %v879_v25  ;;  %v2753_v32 = vpop.f32.mrb[25].mxu0 }
 0x11b   : > { %v2759_v33 = vpop.f32.mrb[25].mxu1  ;;  %v718_v35 = vadd.f32 1.0, %v2949_v30  ;;  %v929_v36 = vpop.f32.mrb[26].mxu0 }
 0x11c   : > { %v982_v37 = vpop.f32.mrb[26].mxu1  ;;  %v985_v38 = vadd.f32 %v979_v29, %v932_v31  ;;  %v2754_v39 = vpop.f32.mrb[27].mxu0 }
 0x11d   : > { %v2760_v40 = vpop.f32.mrb[27].mxu1  ;;  %v719_v41 = vmul.f32 %v718_v35, %v715_v34 }
 0x11f   : > { %v720_v42 = vpack.c.bf16 %v719_v41, %v719_v41 }
 0x121   : > { %721 = vst [vmem:[%s3394_s13] sm:$0xf] %v720_v42  ;;  %v1041_v43 = vpop.f32.mrb[28].mxu0  ;;  %v1094_v2 = vpop.f32.mrb[28].mxu1 }
 0x122   : > { %v1047_v44 = vadd.f32 %v1041_v43, %v985_v38  ;;  %v2765_v45 = vpop.f32.mrb[29].mxu0  ;;  %v2771_v46 = vpop.f32.mrb[29].mxu1 }
 0x123   : > { %v1044_v47 = vpop.f32.mrb[30].mxu0  ;;  %v1097_v48 = vpop.f32.mrb[30].mxu1 }
 0x124   : > { %v1100_v49 = vadd.f32 %v1094_v2, %v1047_v44  ;;  %v2766_v50 = vpop.f32.mrb[31].mxu0  ;;  %v2772_v51 = vpop.f32.mrb[31].mxu1 }
 0x129   : > { %v1147_v52 = vpop.f32.mrb[32].mxu0  ;;  %v1209_v53 = vpop.f32.mrb[32].mxu1 }
 0x12a   : > { %v1153_v54 = vadd.f32 %v1147_v52, %v1100_v49  ;;  %v2777_v55 = vpop.f32.mrb[33].mxu0  ;;  %v2783_v56 = vpop.f32.mrb[33].mxu1 }
 0x12b   : > { %v1150_v57 = vpop.f32.mrb[34].mxu0  ;;  %v1212_v58 = vpop.f32.mrb[34].mxu1 }
 0x12c   : > { %v1215_v59 = vadd.f32 %v1209_v53, %v1153_v54  ;;  %v2778_v60 = vpop.f32.mrb[35].mxu0  ;;  %v2784_v61 = vpop.f32.mrb[35].mxu1 }
 0x12e   : > { %v1223_v62 = vadd.f32 %v3386_v7, %v1215_v59 }
 0x130   : > { %v1225_v63 = vmul.f32 0.70710677, %v1223_v62  ;;  %v1224_v22 = vmul.f32 0.5, %v1223_v62 }
 0x131   : > { %v1276_v0 = vpop.f32.mrb[36].mxu0  ;;  %v1322_v1 = vpop.f32.mrb[36].mxu1 }
 0x132   : > { %2950 = verf.f32 %v1225_v63  ;;  %v1323_v3 = vadd.f32 %v1322_v1, %v1276_v0  ;;  %v2789_v4 = vpop.f32.mrb[37].mxu0  ;;  %v2795_v5 = vpop.f32.mrb[37].mxu1 }
 0x133   : > { %v1279_v6 = vpop.f32.mrb[38].mxu0  ;;  %v1325_v8 = vpop.f32.mrb[38].mxu1 }
 0x134   : > { %v2790_v9 = vpop.f32.mrb[39].mxu0  ;;  %v2796_v10 = vpop.f32.mrb[39].mxu1 }
 0x139   : > { %v1383_v11 = vpop.f32.mrb[40].mxu0  ;;  %v1436_v12 = vpop.f32.mrb[40].mxu1 }
 0x13a   : > { %v1389_v13 = vadd.f32 %v1383_v11, %v1323_v3  ;;  %v2801_v14 = vpop.f32.mrb[41].mxu0  ;;  %v2807_v15 = vpop.f32.mrb[41].mxu1 }
 0x13b   : > { %v1386_v16 = vpop.f32.mrb[42].mxu0  ;;  %v1439_v17 = vpop.f32.mrb[42].mxu1 }
 0x13c   : > { %v2951_v18 = vpop.eup %2950  ;;  %v1442_v19 = vadd.f32 %v1436_v12, %v1389_v13  ;;  %v2802_v20 = vpop.f32.mrb[43].mxu0 }
 0x13d   : > { %v2808_v21 = vpop.f32.mrb[43].mxu1  ;;  %v1227_v23 = vadd.f32 1.0, %v2951_v18 }
 0x13f   : > { %v1228_v24 = vmul.f32 %v1227_v23, %v1224_v22 }
 0x141   : > { %v1229_v25 = vpack.c.bf16 %v1228_v24, %v1228_v24  ;;  %v1489_v26 = vpop.f32.mrb[44].mxu0  ;;  %v1551_v27 = vpop.f32.mrb[44].mxu1 }
 0x142   : > { %v1495_v28 = vadd.f32 %v1489_v26, %v1442_v19  ;;  %v2813_v29 = vpop.f32.mrb[45].mxu0  ;;  %v2819_v30 = vpop.f32.mrb[45].mxu1 }
 0x143   : > { %2499 = vst [vmem:[%s3394_s13 + $0x4] sm:$0xf] %v1229_v25  ;;  %v1492_v31 = vpop.f32.mrb[46].mxu0  ;;  %v1554_v32 = vpop.f32.mrb[46].mxu1 }
 0x144   : > { %v1557_v33 = vadd.f32 %v1551_v27, %v1495_v28  ;;  %v2814_v34 = vpop.f32.mrb[47].mxu0  ;;  %v2820_v35 = vpop.f32.mrb[47].mxu1 }
 0x149   : > { %v1604_v36 = vpop.f32.mrb[48].mxu0  ;;  %v1657_v37 = vpop.f32.mrb[48].mxu1 }
 0x14a   : > { %v1610_v38 = vadd.f32 %v1604_v36, %v1557_v33  ;;  %v2825_v39 = vpop.f32.mrb[49].mxu0  ;;  %v2831_v40 = vpop.f32.mrb[49].mxu1 }
 0x14b   : > { %v1607_v41 = vpop.f32.mrb[50].mxu0  ;;  %v1660_v42 = vpop.f32.mrb[50].mxu1 }
 0x14c   : > { %v1663_v43 = vadd.f32 %v1657_v37, %v1610_v38  ;;  %v2826_v2 = vpop.f32.mrb[51].mxu0  ;;  %v2832_v44 = vpop.f32.mrb[51].mxu1 }
 0x151   : > { %v1719_v45 = vpop.f32.mrb[52].mxu0  ;;  %v1786_v46 = vpop.f32.mrb[52].mxu1 }
 0x152   : > { %v1725_v47 = vadd.f32 %v1719_v45, %v1663_v43  ;;  %v2837_v48 = vpop.f32.mrb[53].mxu0  ;;  %v2843_v49 = vpop.f32.mrb[53].mxu1 }
 0x153   : > { %v1722_v50 = vpop.f32.mrb[54].mxu0  ;;  %v1789_v51 = vpop.f32.mrb[54].mxu1 }
 0x154   : > { %v1733_v52 = vadd.f32 %v3386_v7, %v1725_v47  ;;  %v2838_v53 = vpop.f32.mrb[55].mxu0  ;;  %v2844_v54 = vpop.f32.mrb[55].mxu1 }
 0x156   : > { %v1735_v55 = vmul.f32 0.70710677, %v1733_v52  ;;  %v1734_v10 = vmul.f32 0.5, %v1733_v52 }
 0x158   : > { %2952 = verf.f32 %v1735_v55 }
 0x159   : > { %v1832_v56 = vpop.f32.mrb[56].mxu0  ;;  %v1893_v57 = vpop.f32.mrb[56].mxu1 }
 0x15a   : > { %v1833_v58 = vadd.f32 %v1832_v56, %v1786_v46  ;;  %v2849_v59 = vpop.f32.mrb[57].mxu0  ;;  %v2855_v60 = vpop.f32.mrb[57].mxu1 }
 0x15b   : > { %v1835_v61 = vpop.f32.mrb[58].mxu0  ;;  %v1896_v62 = vpop.f32.mrb[58].mxu1 }
 0x15c   : > { %v1899_v63 = vadd.f32 %v1893_v57, %v1833_v58  ;;  %v2850_v0 = vpop.f32.mrb[59].mxu0  ;;  %v2856_v1 = vpop.f32.mrb[59].mxu1 }
 0x161   : > { %v1946_v3 = vpop.f32.mrb[60].mxu0  ;;  %v1999_v4 = vpop.f32.mrb[60].mxu1 }
 0x162   : > { %v2953_v5 = vpop.eup %2952  ;;  %v1952_v6 = vadd.f32 %v1946_v3, %v1899_v63  ;;  %v2861_v8 = vpop.f32.mrb[61].mxu0 }
 0x163   : > { %v2867_v9 = vpop.f32.mrb[61].mxu1  ;;  %v1737_v11 = vadd.f32 1.0, %v2953_v5  ;;  %v1949_v12 = vpop.f32.mrb[62].mxu0 }
 0x164   : > { %v2002_v13 = vpop.f32.mrb[62].mxu1  ;;  %v2005_v14 = vadd.f32 %v1999_v4, %v1952_v6  ;;  %v2862_v15 = vpop.f32.mrb[63].mxu0 }
 0x165   : > { %v2868_v16 = vpop.f32.mrb[63].mxu1  ;;  %v1738_v17 = vmul.f32 %v1737_v11, %v1734_v10 }
 0x167   : > { %v1739_v18 = vpack.c.bf16 %v1738_v17, %v1738_v17 }
 0x169   : > { %2541 = vst [vmem:[%s3394_s13 + $0x8] sm:$0xf] %v1739_v18  ;;  %v2061_v19 = vpop.f32.mrb[64].mxu0  ;;  %v2114_v20 = vpop.f32.mrb[64].mxu1 }
 0x16a   : > { %v2067_v21 = vadd.f32 %v2061_v19, %v2005_v14  ;;  %v2873_v22 = vpop.f32.mrb[65].mxu0  ;;  %v2879_v23 = vpop.f32.mrb[65].mxu1 }
 0x16b   : > { %v2064_v24 = vpop.f32.mrb[66].mxu0  ;;  %v2117_v25 = vpop.f32.mrb[66].mxu1 }
 0x16c   : > { %v2120_v26 = vadd.f32 %v2114_v20, %v2067_v21  ;;  %v2874_v27 = vpop.f32.mrb[67].mxu0  ;;  %v2880_v28 = vpop.f32.mrb[67].mxu1 }
 0x171   : > { %v2167_v29 = vpop.f32.mrb[68].mxu0  ;;  %v2229_v30 = vpop.f32.mrb[68].mxu1 }
 0x172   : > { %v2173_v31 = vadd.f32 %v2167_v29, %v2120_v26  ;;  %v2885_v32 = vpop.f32.mrb[69].mxu0  ;;  %v2891_v33 = vpop.f32.mrb[69].mxu1 }
 0x173   : > { %v2170_v34 = vpop.f32.mrb[70].mxu0  ;;  %v2232_v35 = vpop.f32.mrb[70].mxu1 }
 0x174   : > { %v2235_v36 = vadd.f32 %v2229_v30, %v2173_v31  ;;  %v2886_v37 = vpop.f32.mrb[71].mxu0  ;;  %v2892_v38 = vpop.f32.mrb[71].mxu1 }
 0x176   : > { %v2243_v39 = vadd.f32 %v3386_v7, %v2235_v36 }
 0x178   : > { %v2245_v40 = vmul.f32 0.70710677, %v2243_v39  ;;  %v2244_v42 = vmul.f32 0.5, %v2243_v39 }
 0x17a   : > { %2954 = verf.f32 %v2245_v40 }
 0x184   : > { %v2955_v41 = vpop.eup %2954 }
 0x185   : > { %v2247_v43 = vadd.f32 1.0, %v2955_v41 }
 0x187   : > { %v2248_v2 = vmul.f32 %v2247_v43, %v2244_v42 }
 0x189   : > { %v2249_v44 = vpack.c.bf16 %v2248_v2, %v2248_v2 }
 0x18b   : > { %2583 = vst [vmem:[%s3394_s13 + $0xc] sm:$0xf] %v2249_v44 }
 0x18c PF: > { %s13_s16 = sadd.s32 1, %s2994_s16   ;;  %s3422_s12 = smov %s2986_s14 }
 0x18d   : > { %p10_p7 = scmp.ge.s32.totalorder %s13_s16, 6   ;;  %s3423_s13 = smov %s2990_s15 }
 0x18e   : > { %s3424_s14 = smov %s3427_s17  ;;  %s3425_s15 = smov %s3431_s18 }
 0x18f   :  { %12 = sbr.rel (!%p10_p7) target bundleno = 3 (0x3), region = 91 }

// kernel: conv_patch_embed_forward.3
= control target key start
LH: loop header
LB: loop body
LE: loop exit
PB: predicated region body
PF: predicated region fallthrough
CT: control target
= control target key end

     0   :  { %8 = vsyncpa [#allocation3], 0  ;;  %s4465_s0 = inlined_call_operand.vmem [shape: bf16[2,20,5,128], index: 0, kind: input, shape index: {}]   ;;  %s4466_s1 = inlined_call_operand.vmem [shape: bf16[9,128,128], index: 1, kind: input, shape index: {}]   ;;  %s4467_s2 = inlined_call_operand.vmem [shape: f32[1,128], index: 2, kind: input, shape index: {}]   ;;  %s4468_s3 = inlined_call_operand.hbm [shape: f32[2,4,4,128], index: 3, kind: output, shape index: {}]  }
   0x1   :  { %10 = vsyncpa [#allocation3 + $0x1], 0  ;;  %s3679_s12 = smov 0   ;;  %s3681_s13 = smov 0  }
   0x2   :  { %s3683_s14 = smov 0   ;;  %s3685_s15 = smov 0  }
   0x3   :  { %s3687_s16 = smov 0   ;;  %s3689_s17 = smov 0  }
   0x4   :  { %s3691_s18 = smov 0   ;;  %s3693_s19 = smov 0  }
   0x5 LB: > { %s2342_s20 = sadd.s32 4294967295, %s3652_s19   ;;  %s2343_s21 = sadd.s32 4294967294, %s3652_s19   ;;  %s3652_s19 = sphi %s3693_s19, %s16_s19   ;;  %s3648_s18 = sphi %s3691_s18, %s4477_s18   ;;  %s3644_s17 = sphi %s3689_s17, %s4476_s17   ;;  %s3640_s16 = sphi %s3687_s16, %s4475_s16   ;;  %s3636_s15 = sphi %s3685_s15, %s4474_s15   ;;  %s3632_s14 = sphi %s3683_s14, %s4473_s14   ;;  %s3628_s13 = sphi %s3681_s13, %s4472_s13   ;;  %s3624_s12 = sphi %s3679_s12, %s4471_s12  }
   0x6   : > { %s25_s22 = sadd.s32 1, %s3644_s17  ;;  %s28_s23 = sadd.s32 1, %s3648_s18 }
   0x7   : > { %p26_p0 = scmp.ge.s32.totalorder %s25_s22, 2  ;;  %p115_p1 = scmp.ne.s32.totalorder %s3632_s14, %s3628_s13 }
   0x8   : > { %p116_p2 = scmp.eq.s32.totalorder %s2342_s20, 3  ;;  %p121_p5 = scmp.ne.s32.totalorder %s3628_s13, %s3624_s12 }
   0x9   : > { %s4479_s22 = smov (%p26_p0, %s25_s22), 0  ;;  %s4481_s23 = smov (!%p26_p0, %s28_s23), %s3648_s18 }
   0xa   : > { %s101_s24 = ssub.s32 %s3644_s17, %s4479_s22  ;;  %p3730_p3 = por %p116_p2, %p115_p1 }
   0xb   : > { %p30_p4 = scmp.ge.s32.totalorder %s4481_s23, 2  ;;  %p122_p6 = scmp.eq.s32.totalorder %s2343_s21, 3 }
   0xc   : > { %p2346_p7 = scmp.ge.s32.totalorder %s3652_s19, 1  ;;  %p154_p9 = scmp.lt.s32.totalorder %s3652_s19, 5 }
   0xd   : > { %s4483_s23 = smov (%p30_p4, %s4481_s23), 0  ;;  %p3739_p8 = por %p122_p6, %p121_p5 }
   0xe   : > { %s100_s27 = ssub.s32 %s3648_s18, %s4483_s23  ;;  %s105_s28 = sadd.s32 1, %s3632_s14 }
   0xf   : > { %s102_s29 = sor.u32 %s101_s24, %s100_s27  ;;  %p155_p10 = pnand %p2346_p7, %p154_p9 }
  0x10   : > { %p103_p11 = scmp.eq.s32.totalorder %s102_s29, 0  ;;  %v3408_v0 = vld [vmem:[%s4466_s1 + $0x40] sm:$0xff] (!%p155_p10)   ;;  %v3654_v1 = vmov (!%p155_p10), 0.0   ;;  %v3410_v3 = vld [vmem:[%s4466_s1 + $0x48] sm:$0xff] (!%p155_p10)   ;;  %vm3655_vm0 = vmmov (!%p155_p10), 0   ;;  %v3412_v5 = vld [vmem:[%s4466_s1 + $0x50] sm:$0xff] (!%p155_p10)  }
  0x11   : > { %158 = sbr.rel (%p155_p10) target bundleno = 539 (0x21b), region = 32  ;;  %2972 = vmatprep.subr.bf16.mxu0 (!%p155_p10), %v3654_v1  ;;  %2992 = vmatprep.subr.bf16.mxu1 (!%p155_p10), %v3654_v1  ;;  %v3409_v2 = vld [vmem:[%s4466_s1] sm:$0xff] (!%p155_p10)   ;;  %v3411_v4 = vld [vmem:[%s4466_s1 + $0x8] sm:$0xff] (!%p155_p10)   ;;  %v3413_v6 = vld [vmem:[%s4466_s1 + $0x10] sm:$0xff] (!%p155_p10)   ;;  %p178_p12 = scmp.lt.s32.totalorder (!%p155_p10), %s3640_s16, 1 }
  0x12   : > { %s3748_s30 = scalar_select %p103_p11, %s3632_s14, %s105_s28  }
  0x13   : > { %2973 = vmatpush3.bf16.msra.mxu0 (!%p155_p10), %v3408_v0  ;;  %2988 = vmatprep.mubr.msk.bf16.mxu0 (!%p155_p10), %vm3655_vm0, %v3654_v1  ;;  %v3414_v7 = vld [vmem:[%s4466_s1 + $0x58] sm:$0xff] (!%p155_p10)   ;;  %v3416_v9 = vld [vmem:[%s4466_s1 + $0x60] sm:$0xff] (!%p155_p10)   ;;  %v3418_v11 = vld [vmem:[%s4466_s1 + $0x68] sm:$0xff] (!%p155_p10)   ;;  %s2800_s7 = sshll.u32 (!%p155_p10), %s3636_s15, 3  ;;  %s2795_s27 = sshll.u32 (!%p155_p10), %s3636_s15, 1 }
  0x14   : > { %2993 = vmatpush3.bf16.msra.mxu1 (!%p155_p10), %v3409_v2  ;;  %2974 = vmatprep.subr.bf16.mxu0 (!%p155_p10), %v3654_v1  ;;  %v3415_v8 = vld [vmem:[%s4466_s1 + $0x18] sm:$0xff] (!%p155_p10)   ;;  %v3417_v10 = vld [vmem:[%s4466_s1 + $0x20] sm:$0xff] (!%p155_p10)   ;;  %v3419_v12 = vld [vmem:[%s4466_s1 + $0x28] sm:$0xff] (!%p155_p10)   ;;  %s2796_s28 = sshll.u32 (!%p155_p10), %s3640_s16, 2  ;;  %s3656_s9 = smov (!%p155_p10), [#allocation2]  }
  0x15   : > { %2994 = vmatprep.subr.bf16.mxu1 (!%p155_p10), %v3654_v1  ;;  %3008 = vmatprep.mubr.msk.bf16.mxu1 (!%p155_p10), %vm3655_vm0, %v3654_v1  ;;  %v3420_v13 = vld [vmem:[%s4466_s1 + $0x70] sm:$0xff] (!%p155_p10)   ;;  %v3422_v15 = vld [vmem:[%s4466_s1 + $0x78] sm:$0xff] (!%p155_p10)   ;;  %v3424_v19 = vld [vmem:[%s4466_s1 + $0x80] sm:$0xff] (!%p155_p10)   ;;  %s2225_s29 = sadd.s32 (!%p155_p10), %s2796_s28, %s2795_s27 }
  0x16   : > { %v3421_v14 = vld [vmem:[%s4466_s1 + $0x30] sm:$0xff] (!%p155_p10)   ;;  %v3423_v16 = vld [vmem:[%s4466_s1 + $0x38] sm:$0xff] (!%p155_p10)   ;;  %v3425_v20 = vld [vmem:[%s4466_s1 + $0xc0] sm:$0xff] (!%p155_p10)   ;;  %s2797_s5 = sshll.u32 (!%p155_p10), %s2225_s29, 6 }
  0x17   : > { %2975 = vmatpush3.bf16.msra.mxu0 (!%p155_p10), %v3410_v3  ;;  %v3426_v21 = vld [vmem:[%s4466_s1 + $0x88] sm:$0xff] (!%p155_p10)   ;;  %v3428_v23 = vld [vmem:[%s4466_s1 + $0x90] sm:$0xff] (!%p155_p10)   ;;  %v3430_v25 = vld [vmem:[%s4466_s1 + $0x98] sm:$0xff] (!%p155_p10)  }
  0x18   : > { %2995 = vmatpush3.bf16.msra.mxu1 %v3411_v4  ;;  %2976 = vmatprep.subr.bf16.mxu0 %v3654_v1  ;;  %s179_s8 = scalar_select %p178_p12, %s3640_s16, 1  ;;  %v3427_v22 = vld [vmem:[%s4466_s1 + $0xc8] sm:$0xff]   ;;  %v3429_v24 = vld [vmem:[%s4466_s1 + $0xd0] sm:$0xff]   ;;  %v3431_v26 = vld [vmem:[%s4466_s1 + $0xd8] sm:$0xff]  }
  0x19   : > { %2996 = vmatprep.subr.bf16.mxu1 %v3654_v1  ;;  %v3432_v27 = vld [vmem:[%s4466_s1 + $0xa0] sm:$0xff]   ;;  %v3434_v30 = vld [vmem:[%s4466_s1 + $0xa8] sm:$0xff]   ;;  %v3436_v33 = vld [vmem:[%s4466_s1 + $0xb0] sm:$0xff]  }
  0x1a   : > { %s3332_s21 = smul.u32 80, %s179_s8  ;;  %v3433_v29 = vld [vmem:[%s4466_s1 + $0xe0] sm:$0xff]   ;;  %v3435_v31 = vld [vmem:[%s4466_s1 + $0xe8] sm:$0xff]   ;;  %v3437_v34 = vld [vmem:[%s4466_s1 + $0xf0] sm:$0xff]  }
  0x1b   : > { %2977 = vmatpush3.bf16.msra.mxu0 %v3412_v5  ;;  %v3438_v37 = vld [vmem:[%s4466_s1 + $0xb8] sm:$0xff]   ;;  %v3441_v41 = vld [vmem:[%s4466_s1 + $0x100] sm:$0xff]   ;;  %v3443_v43 = vld [vmem:[%s4466_s1 + $0x108] sm:$0xff]  }
  0x1c   : > { %2997 = vmatpush3.bf16.msra.mxu1 %v3413_v6  ;;  %2978 = vmatprep.subr.bf16.mxu0 %v3654_v1  ;;  %s182_s6 = scalar_lea.vmem %s4465_s0, %s3332_s21  ;;  %v3439_v38 = vld [vmem:[%s4466_s1 + $0xf8] sm:$0xff]   ;;  %v3442_v42 = vld [vmem:[%s4466_s1 + $0x140] sm:$0xff]   ;;  %v3444_v44 = vld [vmem:[%s4466_s1 + $0x148] sm:$0xff]  }
  0x1d   : > { %2998 = vmatprep.subr.bf16.mxu1 %v3654_v1  ;;  %s3816_s10 = scalar_lea.vmem %s182_s6, %s2800_s7  ;;  %v3445_v45 = vld [vmem:[%s4466_s1 + $0x110] sm:$0xff]   ;;  %v3447_v47 = vld [vmem:[%s4466_s1 + $0x118] sm:$0xff]   ;;  %v3449_v49 = vld [vmem:[%s4466_s1 + $0x120] sm:$0xff]   ;;  %s4408_s6 = scalar_lea.hbm %s4468_s3, %s2797_s5 }
  0x1e   : > { %v2353_v17 = vld [vmem:[%s3816_s10 + $0x14] sm:$0x3]  ;;  %v188_v18 = vld [vmem:[%s3816_s10] sm:$0x3]  ;;  %v2413_v40 = vld [vmem:[%s3816_s10 + $0x28] sm:$0x3] }
  0x1f   : > { %2979 = vmatpush3.bf16.msra.mxu0 %v3414_v7  ;;  %v3440_v28 = vld [vmem:[%s3816_s10] ss:$0 sps:$4 sm:$0x77]   ;;  %v3446_v46 = vld [vmem:[%s4466_s1 + $0x150] sm:$0xff]   ;;  %v3448_v48 = vld [vmem:[%s4466_s1 + $0x158] sm:$0xff]  }
  0x20   : > { %2999 = vmatpush3.bf16.msra.mxu1 %v3415_v8  ;;  %2980 = vmatprep.subr.bf16.mxu0 %v3654_v1  ;;  %v426_v32 = vshll.u32 %v3440_v28, 16  ;;  %v424_v35 = vshrl.u32 %v3440_v28, 16  ;;  %v3450_v50 = vld [vmem:[%s4466_s1 + $0x160] sm:$0xff]   ;;  %v3457_v51 = vld [vmem:[%s3816_s10 + $0x28] ss:$0 sps:$4 sm:$0x77]  }
  0x21   : > { %3000 = vmatprep.subr.bf16.mxu1 %v3654_v1  ;;  %v3451_v52 = vld [vmem:[%s4466_s1 + $0x128] sm:$0xff]   ;;  %v3453_v54 = vld [vmem:[%s4466_s1 + $0x130] sm:$0xff]   ;;  %v764_v55 = vshll.u32 %v3457_v51, 16  ;;  %v3455_v57 = vld [vmem:[%s4466_s1 + $0x138] sm:$0xff]   ;;  %v762_v58 = vshrl.u32 %v3457_v51, 16 }
  0x22   : > { %v428_v36 = vrot.slane %v426_v32, 1  ;;  %v3452_v53 = vld [vmem:[%s4466_s1 + $0x168] sm:$0xff]   ;;  %v3454_v56 = vld [vmem:[%s4466_s1 + $0x170] sm:$0xff]   ;;  %v3456_v60 = vld [vmem:[%s4466_s1 + $0x178] sm:$0xff]  }
  0x23   : > { %2981 = vmatpush3.bf16.msra.mxu0 %v3416_v9  ;;  %v766_v59 = vrot.slane %v764_v55, 1  ;;  %v2440_v61 = vld [vmem:[%s3816_s10 + $0x3c] sm:$0x3]  ;;  %v3458_v63 = vld [vmem:[%s4466_s1 + $0x180] sm:$0xff]   ;;  %v3460_v2 = vld [vmem:[%s4466_s1 + $0x188] sm:$0xff]  }
  0x24   : > { %3001 = vmatpush3.bf16.msra.mxu1 %v3417_v10  ;;  %2982 = vmatprep.subr.bf16.mxu0 %v3654_v1  ;;  %v429_v39 = vor.u32 %v428_v36, %v424_v35  ;;  %v3459_v0 = vld [vmem:[%s4466_s1 + $0x1c0] sm:$0xff]   ;;  %v3461_v3 = vld [vmem:[%s4466_s1 + $0x1c8] sm:$0xff]   ;;  %v3462_v4 = vld [vmem:[%s4466_s1 + $0x190] sm:$0xff]  }
  0x25   : > { %3002 = vmatprep.subr.bf16.mxu1 %v3654_v1  ;;  %v767_v62 = vor.u32 %v766_v59, %v762_v58  ;;  %v3463_v5 = vld [vmem:[%s4466_s1 + $0x1d0] sm:$0xff]   ;;  %v3464_v6 = vld [vmem:[%s4466_s1 + $0x198] sm:$0xff]   ;;  %v3466_v8 = vld [vmem:[%s4466_s1 + $0x1a0] sm:$0xff]  }
  0x26   : > { %v3465_v7 = vld [vmem:[%s4466_s1 + $0x1d8] sm:$0xff]   ;;  %v3467_v9 = vld [vmem:[%s4466_s1 + $0x1e0] sm:$0xff]   ;;  %v3468_v10 = vld [vmem:[%s4466_s1 + $0x1a8] sm:$0xff]  }
  0x27   : > { %2983 = vmatpush3.bf16.msra.mxu0 %v3418_v11  ;;  %v3469_v11 = vld [vmem:[%s4466_s1 + $0x1e8] sm:$0xff]   ;;  %v3490_v28 = vld [vmem:[%s3816_s10 + $0x4] ss:$0 sps:$4 sm:$0x77]   ;;  %v3486_v32 = vld [vmem:[%s4466_s1 + $0x230] sm:$0xff]  }
  0x28   : > { %3003 = vmatpush3.bf16.msra.mxu1 %v3419_v12  ;;  %2984 = vmatprep.subr.bf16.mxu0 %v3654_v1  ;;  %v3470_v12 = vld [vmem:[%s4466_s1 + $0x1b0] sm:$0xff]   ;;  %v3488_v36 = vld [vmem:[%s4466_s1 + $0x238] sm:$0xff]   ;;  %v3507_v51 = vld [vmem:[%s3816_s10 + $0x4] ss:$0 sps:$4 sm:$0x77]  }
  0x29   : > { %3004 = vmatprep.subr.bf16.mxu1 %v3654_v1  ;;  %v3504_v55 = vld [vmem:[%s4466_s1 + $0xb0] sm:$0xff]   ;;  %v3506_v59 = vld [vmem:[%s4466_s1 + $0xb8] sm:$0xff]  }
  0x2b   : > { %2985 = vmatpush3.bf16.msra.mxu0 %v3420_v13  ;;  %v3471_v13 = vld [vmem:[%s4466_s1 + $0x1f0] sm:$0xff]  }
  0x2c   : > { %3005 = vmatpush3.bf16.msra.mxu1 %v3421_v14  ;;  %2986 = vmatprep.subr.bf16.mxu0 %v3654_v1  ;;  %v3472_v14 = vld [vmem:[%s4466_s1 + $0x1b8] sm:$0xff]  }
  0x2d   : > { %3006 = vmatprep.subr.bf16.mxu1 %v3654_v1 }
  0x2f   : > { %2987 = vmatpush3.bf16.msra.mxu0 %v3422_v15  ;;  %v3473_v15 = vld [vmem:[%s4466_s1 + $0x1f8] sm:$0xff]  }
  0x30   : > { %3007 = vmatpush3.bf16.msra.mxu1 %v3423_v16  ;;  %3012 = vmatprep.subr.bf16.mxu0 %v3654_v1  ;;  %v2493_v16 = vld [vmem:[%s3816_s10 + $0x4] sm:$0x3] }
  0x31   : > { %3032 = vmatprep.subr.bf16.mxu1 %v3654_v1 }
  0x32   : > { %2989 = vmatmul.mubr.bf16.vlgmr.msra.gmra.mrb[0].mxu0 %v2353_v17  ;;  %v2520_v17 = vld [vmem:[%s3816_s10 + $0x18] sm:$0x3] }
  0x33   : > { %3009 = vmatmul.mubr.bf16.vlgmr.msra.gmra.mrb[0].mxu1 %v188_v18  ;;  %3013 = vmatpush3.bf16.msra.mxu0 %v3424_v19  ;;  %v3474_v18 = vld [vmem:[%s4466_s1 + $0x200] sm:$0xff]  }
  0x34   : > { %3033 = vmatpush3.bf16.msra.mxu1 %v3425_v20  ;;  %3014 = vmatprep.subr.bf16.mxu0 %v3654_v1  ;;  %v3475_v19 = vld [vmem:[%s4466_s1 + $0x40] sm:$0xff]   ;;  %v3476_v20 = vld [vmem:[%s4466_s1 + $0x208] sm:$0xff]  }
  0x35   : > { %3034 = vmatprep.subr.bf16.mxu1 %v3654_v1  ;;  %3028 = vmatprep.mubr.msk.bf16.mxu0 %vm3655_vm0, %v3654_v1 }
  0x36   : > { %3048 = vmatprep.mubr.msk.bf16.mxu1 %vm3655_vm0, %v3654_v1 }
  0x37   : > { %3015 = vmatpush3.bf16.msra.mxu0 %v3426_v21  ;;  %v3477_v21 = vld [vmem:[%s4466_s1 + $0x48] sm:$0xff]  }
  0x38   : > { %3035 = vmatpush3.bf16.msra.mxu1 %v3427_v22  ;;  %3016 = vmatprep.subr.bf16.mxu0 %v3654_v1  ;;  %v3478_v22 = vld [vmem:[%s4466_s1 + $0x210] sm:$0xff]  }
  0x39   : > { %3036 = vmatprep.subr.bf16.mxu1 %v3654_v1 }
  0x3b   : > { %3017 = vmatpush3.bf16.msra.mxu0 %v3428_v23  ;;  %v3479_v23 = vld [vmem:[%s4466_s1 + $0x50] sm:$0xff]  }
  0x3c   : > { %3037 = vmatpush3.bf16.msra.mxu1 %v3429_v24  ;;  %3018 = vmatprep.subr.bf16.mxu0 %v3654_v1  ;;  %v3480_v24 = vld [vmem:[%s4466_s1 + $0x218] sm:$0xff]  }
  0x3d   : > { %3038 = vmatprep.subr.bf16.mxu1 %v3654_v1 }
  0x3f   : > { %3019 = vmatpush3.bf16.msra.mxu0 %v3430_v25  ;;  %v3481_v25 = vld [vmem:[%s4466_s1 + $0x58] sm:$0xff]  }
  0x40   : > { %3039 = vmatpush3.bf16.msra.mxu1 %v3431_v26  ;;  %3020 = vmatprep.subr.bf16.mxu0 %v3654_v1  ;;  %v3482_v26 = vld [vmem:[%s4466_s1 + $0x220] sm:$0xff]  }
  0x41   : > { %3040 = vmatprep.subr.bf16.mxu1 %v3654_v1 }
  0x43   : > { %3021 = vmatpush3.bf16.msra.mxu0 %v3432_v27  ;;  %v3483_v27 = vld [vmem:[%s4466_s1 + $0x60] sm:$0xff]  }
  0x44   : > { %3041 = vmatpush3.bf16.msra.mxu1 %v3433_v29  ;;  %3022 = vmatprep.subr.bf16.mxu0 %v3654_v1  ;;  %v3484_v29 = vld [vmem:[%s4466_s1 + $0x228] sm:$0xff]  }
  0x45   : > { %3042 = vmatprep.subr.bf16.mxu1 %v3654_v1 }
  0x47   : > { %3023 = vmatpush3.bf16.msra.mxu0 %v3434_v30  ;;  %v3485_v30 = vld [vmem:[%s4466_s1 + $0x68] sm:$0xff]  }
  0x48   : > { %3043 = vmatpush3.bf16.msra.mxu1 %v3435_v31  ;;  %3024 = vmatprep.subr.bf16.mxu0 %v3654_v1  ;;  %v1102_v31 = vshll.u32 %v3490_v28, 16 }
  0x49   : > { %3044 = vmatprep.subr.bf16.mxu1 %v3654_v1 }
  0x4a   : > { %v1104_v35 = vrot.slane %v1102_v31, 1 }
  0x4b   : > { %3025 = vmatpush3.bf16.msra.mxu0 %v3436_v33  ;;  %v3487_v33 = vld [vmem:[%s4466_s1 + $0x70] sm:$0xff]  }
  0x4c   : > { %3045 = vmatpush3.bf16.msra.mxu1 %v3437_v34  ;;  %3026 = vmatprep.subr.bf16.mxu0 %v3654_v1  ;;  %v1100_v34 = vshrl.u32 %v3490_v28, 16  ;;  %v3534_v28 = vld [vmem:[%s4466_s1 + $0x168] sm:$0xff]  }
  0x4d   : > { %3046 = vmatprep.subr.bf16.mxu1 %v3654_v1 }
  0x4f   : > { %3027 = vmatpush3.bf16.msra.mxu0 %v3438_v37  ;;  %v3489_v37 = vld [vmem:[%s4466_s1 + $0x78] sm:$0xff]  }
  0x50   : > { %3047 = vmatpush3.bf16.msra.mxu1 %v3439_v38  ;;  %3052 = vmatprep.subr.bf16.mxu0 %v3654_v1  ;;  %v1105_v38 = vor.u32 %v1104_v35, %v1100_v34 }
  0x51   : > { %3072 = vmatprep.subr.bf16.mxu1 %v3654_v1 }
  0x52   : > { %3029 = vmatmul.mubr.bf16.vlgmr.msra.gmra.mrb[4].mxu0 %v429_v39  ;;  %v3491_v39 = vld [vmem:[%s4466_s1] sm:$0xff]  }
  0x53   : > { %3049 = vmatmul.mubr.bf16.vlgmr.msra.gmra.mrb[4].mxu1 %v2413_v40  ;;  %3053 = vmatpush3.bf16.msra.mxu0 %v3441_v41  ;;  %v2573_v40 = vld [vmem:[%s3816_s10 + $0x18] sm:$0x3]  ;;  %v3492_v41 = vld [vmem:[%s4466_s1 + $0x80] sm:$0xff]  }
  0x54   : > { %3073 = vmatpush3.bf16.msra.mxu1 %v3442_v42  ;;  %3054 = vmatprep.subr.bf16.mxu0 %v3654_v1  ;;  %v3493_v42 = vld [vmem:[%s4466_s1 + $0x8] sm:$0xff]  }
  0x55   : > { %3074 = vmatprep.subr.bf16.mxu1 %v3654_v1  ;;  %3068 = vmatprep.mubr.msk.bf16.mxu0 %vm3655_vm0, %v3654_v1 }
  0x56   : > { %3088 = vmatprep.mubr.msk.bf16.mxu1 %vm3655_vm0, %v3654_v1 }
  0x57   : > { %3055 = vmatpush3.bf16.msra.mxu0 %v3443_v43  ;;  %v3494_v43 = vld [vmem:[%s4466_s1 + $0x88] sm:$0xff]  }
  0x58   : > { %3075 = vmatpush3.bf16.msra.mxu1 %v3444_v44  ;;  %3056 = vmatprep.subr.bf16.mxu0 %v3654_v1  ;;  %v3495_v44 = vld [vmem:[%s4466_s1 + $0x10] sm:$0xff]  }
  0x59   : > { %3076 = vmatprep.subr.bf16.mxu1 %v3654_v1 }
  0x5b   : > { %3057 = vmatpush3.bf16.msra.mxu0 %v3445_v45  ;;  %v3496_v45 = vld [vmem:[%s4466_s1 + $0x90] sm:$0xff]  }
  0x5c   : > { %3077 = vmatpush3.bf16.msra.mxu1 %v3446_v46  ;;  %3058 = vmatprep.subr.bf16.mxu0 %v3654_v1  ;;  %v3497_v46 = vld [vmem:[%s4466_s1 + $0x18] sm:$0xff]  }
  0x5d   : > { %3078 = vmatprep.subr.bf16.mxu1 %v3654_v1 }
  0x5f   : > { %3059 = vmatpush3.bf16.msra.mxu0 %v3447_v47  ;;  %v3498_v47 = vld [vmem:[%s4466_s1 + $0x98] sm:$0xff]  }
  0x60   : > { %3079 = vmatpush3.bf16.msra.mxu1 %v3448_v48  ;;  %3060 = vmatprep.subr.bf16.mxu0 %v3654_v1  ;;  %v3499_v48 = vld [vmem:[%s4466_s1 + $0x20] sm:$0xff]  }
  0x61   : > { %3080 = vmatprep.subr.bf16.mxu1 %v3654_v1 }
  0x63   : > { %3061 = vmatpush3.bf16.msra.mxu0 %v3449_v49  ;;  %v3500_v49 = vld [vmem:[%s4466_s1 + $0xa0] sm:$0xff]  }
  0x64   : > { %3081 = vmatpush3.bf16.msra.mxu1 %v3450_v50  ;;  %3062 = vmatprep.subr.bf16.mxu0 %v3654_v1  ;;  %v3501_v50 = vld [vmem:[%s4466_s1 + $0x28] sm:$0xff]  }
  0x65   : > { %3082 = vmatprep.subr.bf16.mxu1 %v3654_v1 }
  0x67   : > { %3063 = vmatpush3.bf16.msra.mxu0 %v3451_v52  ;;  %v3502_v52 = vld [vmem:[%s4466_s1 + $0xa8] sm:$0xff]  }
  0x68   : > { %3083 = vmatpush3.bf16.msra.mxu1 %v3452_v53  ;;  %3064 = vmatprep.subr.bf16.mxu0 %v3654_v1  ;;  %v3503_v53 = vld [vmem:[%s4466_s1 + $0x30] sm:$0xff]  }
  0x69   : > { %3084 = vmatprep.subr.bf16.mxu1 %v3654_v1 }
  0x6b   : > { %3065 = vmatpush3.bf16.msra.mxu0 %v3453_v54  ;;  %v1438_v54 = vshll.u32 %v3507_v51, 16 }
  0x6c   : > { %3085 = vmatpush3.bf16.msra.mxu1 %v3454_v56  ;;  %3066 = vmatprep.subr.bf16.mxu0 %v3654_v1  ;;  %v3505_v56 = vld [vmem:[%s4466_s1 + $0x38] sm:$0xff]  }
  0x6d   : > { %3086 = vmatprep.subr.bf16.mxu1 %v3654_v1  ;;  %v1440_v58 = vrot.slane %v1438_v54, 1  ;;  %v3547_v54 = vld [vmem:[%s4466_s1 + $0x1d8] sm:$0xff]  }
  0x6f   : > { %3067 = vmatpush3.bf16.msra.mxu0 %v3455_v57  ;;  %v1436_v57 = vshrl.u32 %v3507_v51, 16  ;;  %v3544_v51 = vld [vmem:[%s4466_s1 + $0x208] sm:$0xff]  }
  0x70   : > { %3087 = vmatpush3.bf16.msra.mxu1 %v3456_v60  ;;  %3092 = vmatprep.subr.bf16.mxu0 %v3654_v1  ;;  %v2572_v60 = vld [vmem:[%s3816_s10 + $0x4] sm:$0x3] }
  0x71   : > { %3112 = vmatprep.subr.bf16.mxu1 %v3654_v1 }
  0x72   : > { %3069 = vmatmul.mubr.bf16.vlgmr.msra.gmra.mrb[8].mxu0 %v2440_v61  ;;  %v1441_v61 = vor.u32 %v1440_v58, %v1436_v57  ;;  %v3550_v57 = vld [vmem:[%s4466_s1 + $0x220] sm:$0xff]   ;;  %v3551_v58 = vld [vmem:[%s4466_s1 + $0x1e8] sm:$0xff]  }
  0x73   : > { %3089 = vmatmul.mubr.bf16.vlgmr.msra.gmra.mrb[8].mxu1 %v767_v62  ;;  %3093 = vmatpush3.bf16.msra.mxu0 %v3458_v63  ;;  %v3508_v62 = vld [vmem:[%s4466_s1 + $0xc0] sm:$0xff]  }
  0x74   : > { %3113 = vmatpush3.bf16.msra.mxu1 %v3459_v0  ;;  %3094 = vmatprep.subr.bf16.mxu0 %v3654_v1  ;;  %v3509_v63 = vld [vmem:[%s4466_s1 + $0x100] sm:$0xff]   ;;  %v3510_v0 = vld [vmem:[%s4466_s1 + $0xc8] sm:$0xff]  }
  0x75   : > { %3114 = vmatprep.subr.bf16.mxu1 %v3654_v1  ;;  %3108 = vmatprep.mubr.msk.bf16.mxu0 %vm3655_vm0, %v3654_v1 }
  0x76   : > { %3128 = vmatprep.mubr.msk.bf16.mxu1 %vm3655_vm0, %v3654_v1 }
  0x77   : > { %3095 = vmatpush3.bf16.msra.mxu0 %v3460_v2  ;;  %v3511_v2 = vld [vmem:[%s4466_s1 + $0x108] sm:$0xff]  }
  0x78   : > { %3115 = vmatpush3.bf16.msra.mxu1 %v3461_v3  ;;  %3096 = vmatprep.subr.bf16.mxu0 %v3654_v1  ;;  %v3512_v3 = vld [vmem:[%s4466_s1 + $0xd0] sm:$0xff]  }
  0x79   : > { %3116 = vmatprep.subr.bf16.mxu1 %v3654_v1 }
  0x7b   : > { %3097 = vmatpush3.bf16.msra.mxu0 %v3462_v4  ;;  %v3513_v4 = vld [vmem:[%s4466_s1 + $0x110] sm:$0xff]  }
  0x7c   : > { %3117 = vmatpush3.bf16.msra.mxu1 %v3463_v5  ;;  %3098 = vmatprep.subr.bf16.mxu0 %v3654_v1  ;;  %v3514_v5 = vld [vmem:[%s4466_s1 + $0xd8] sm:$0xff]  }
  0x7d   : > { %3118 = vmatprep.subr.bf16.mxu1 %v3654_v1 }
  0x7f   : > { %3099 = vmatpush3.bf16.msra.mxu0 %v3464_v6  ;;  %v3515_v6 = vld [vmem:[%s4466_s1 + $0x118] sm:$0xff]  }
  0x80   : > { %3119 = vmatpush3.bf16.msra.mxu1 %v3465_v7  ;;  %3100 = vmatprep.subr.bf16.mxu0 %v3654_v1  ;;  %v3516_v7 = vld [vmem:[%s4466_s1 + $0xe0] sm:$0xff]  }
  0x81   : > { %3120 = vmatprep.subr.bf16.mxu1 %v3654_v1 }
  0x83   : > { %3101 = vmatpush3.bf16.msra.mxu0 %v3466_v8  ;;  %v3517_v8 = vld [vmem:[%s4466_s1 + $0x120] sm:$0xff]  }
  0x84   : > { %3121 = vmatpush3.bf16.msra.mxu1 %v3467_v9  ;;  %3102 = vmatprep.subr.bf16.mxu0 %v3654_v1  ;;  %v3518_v9 = vld [vmem:[%s4466_s1 + $0xe8] sm:$0xff]  }
  0x85   : > { %3122 = vmatprep.subr.bf16.mxu1 %v3654_v1 }
  0x87   : > { %3103 = vmatpush3.bf16.msra.mxu0 %v3468_v10  ;;  %v3519_v10 = vld [vmem:[%s4466_s1 + $0x128] sm:$0xff]  }
  0x88   : > { %3123 = vmatpush3.bf16.msra.mxu1 %v3469_v11  ;;  %3104 = vmatprep.subr.bf16.mxu0 %v3654_v1  ;;  %v3520_v11 = vld [vmem:[%s4466_s1 + $0xf0] sm:$0xff]  }
  0x89   : > { %3124 = vmatprep.subr.bf16.mxu1 %v3654_v1 }
  0x8b   : > { %3105 = vmatpush3.bf16.msra.mxu0 %v3470_v12  ;;  %v3521_v12 = vld [vmem:[%s4466_s1 + $0x130] sm:$0xff]  }
  0x8c   : > { %3125 = vmatpush3.bf16.msra.mxu1 %v3471_v13  ;;  %3106 = vmatprep.subr.bf16.mxu0 %v3654_v1  ;;  %v3522_v13 = vld [vmem:[%s4466_s1 + $0xf8] sm:$0xff]  }
  0x8d   : > { %3126 = vmatprep.subr.bf16.mxu1 %v3654_v1 }
  0x8f   : > { %3107 = vmatpush3.bf16.msra.mxu0 %v3472_v14  ;;  %v3523_v14 = vld [vmem:[%s4466_s1 + $0x138] sm:$0xff]  }
  0x90   : > { %3127 = vmatpush3.bf16.msra.mxu1 %v3473_v15  ;;  %3132 = vmatprep.subr.bf16.mxu0 %v3654_v1  ;;  %v2634_v15 = vld [vmem:[%s3816_s10 + $0x2c] sm:$0x3] }
  0x91   : > { %3152 = vmatprep.subr.bf16.mxu1 %v3654_v1 }
  0x92   : > { %3109 = vmatmul.mubr.bf16.vlgmr.msra.gmra.mrb[12].mxu0 %v2493_v16  ;;  %v3524_v16 = vld [vmem:[%s4466_s1 + $0x140] sm:$0xff]  }
  0x93   : > { %3129 = vmatmul.mubr.bf16.vlgmr.msra.gmra.mrb[12].mxu1 %v2520_v17  ;;  %3133 = vmatpush3.bf16.msra.mxu0 %v3474_v18  ;;  %v2661_v17 = vld [vmem:[%s3816_s10 + $0x40] sm:$0x3] }
  0x94   : > { %3153 = vmatpush3.bf16.msra.mxu1 %v3475_v19  ;;  %3134 = vmatprep.subr.bf16.mxu0 %v3654_v1  ;;  %v3525_v18 = vld [vmem:[%s4466_s1 + $0x180] sm:$0xff]   ;;  %v3526_v19 = vld [vmem:[%s4466_s1 + $0x148] sm:$0xff]  }
  0x95   : > { %3154 = vmatprep.subr.bf16.mxu1 %v3654_v1  ;;  %3148 = vmatprep.mubr.msk.bf16.mxu0 %vm3655_vm0, %v3654_v1 }
  0x96   : > { %3168 = vmatprep.mubr.msk.bf16.mxu1 %vm3655_vm0, %v3654_v1 }
  0x97   : > { %3135 = vmatpush3.bf16.msra.mxu0 %v3476_v20  ;;  %v3527_v20 = vld [vmem:[%s4466_s1 + $0x188] sm:$0xff]  }
  0x98   : > { %3155 = vmatpush3.bf16.msra.mxu1 %v3477_v21  ;;  %3136 = vmatprep.subr.bf16.mxu0 %v3654_v1  ;;  %v3528_v21 = vld [vmem:[%s4466_s1 + $0x150] sm:$0xff]  }
  0x99   : > { %3156 = vmatprep.subr.bf16.mxu1 %v3654_v1 }
  0x9b   : > { %3137 = vmatpush3.bf16.msra.mxu0 %v3478_v22  ;;  %v3529_v22 = vld [vmem:[%s4466_s1 + $0x190] sm:$0xff]  }
  0x9c   : > { %3157 = vmatpush3.bf16.msra.mxu1 %v3479_v23  ;;  %3138 = vmatprep.subr.bf16.mxu0 %v3654_v1  ;;  %v3530_v23 = vld [vmem:[%s4466_s1 + $0x158] sm:$0xff]  }
  0x9d   : > { %3158 = vmatprep.subr.bf16.mxu1 %v3654_v1 }
  0x9f   : > { %3139 = vmatpush3.bf16.msra.mxu0 %v3480_v24  ;;  %v3531_v24 = vld [vmem:[%s4466_s1 + $0x198] sm:$0xff]  }
  0xa0   : > { %3159 = vmatpush3.bf16.msra.mxu1 %v3481_v25  ;;  %3140 = vmatprep.subr.bf16.mxu0 %v3654_v1  ;;  %v3532_v25 = vld [vmem:[%s4466_s1 + $0x160] sm:$0xff]  }
  0xa1   : > { %3160 = vmatprep.subr.bf16.mxu1 %v3654_v1 }
  0xa3   : > { %3141 = vmatpush3.bf16.msra.mxu0 %v3482_v26  ;;  %v3533_v26 = vld [vmem:[%s4466_s1 + $0x1a0] sm:$0xff]  }
  0xa4   : > { %3161 = vmatpush3.bf16.msra.mxu1 %v3483_v27  ;;  %3142 = vmatprep.subr.bf16.mxu0 %v3654_v1  ;;  %v3540_v27 = vld [vmem:[%s3816_s10 + $0x2c] ss:$0 sps:$4 sm:$0x77]  }
  0xa5   : > { %3162 = vmatprep.subr.bf16.mxu1 %v3654_v1 }
  0xa7   : > { %3143 = vmatpush3.bf16.msra.mxu0 %v3484_v29  ;;  %v3535_v29 = vld [vmem:[%s4466_s1 + $0x1a8] sm:$0xff]  }
  0xa8   : > { %3163 = vmatpush3.bf16.msra.mxu1 %v3485_v30  ;;  %3144 = vmatprep.subr.bf16.mxu0 %v3654_v1 }
  0xa9   : > { %3164 = vmatprep.subr.bf16.mxu1 %v3654_v1 }
  0xab   : > { %3145 = vmatpush3.bf16.msra.mxu0 %v3486_v32 }
  0xac   : > { %3165 = vmatpush3.bf16.msra.mxu1 %v3487_v33  ;;  %3146 = vmatprep.subr.bf16.mxu0 %v3654_v1  ;;  %v1773_v33 = vshll.u32 %v3540_v27, 16 }
  0xad   : > { %3166 = vmatprep.subr.bf16.mxu1 %v3654_v1 }
  0xaf   : > { %3147 = vmatpush3.bf16.msra.mxu0 %v3488_v36 }
  0xb0   : > { %3167 = vmatpush3.bf16.msra.mxu1 %v3489_v37  ;;  %3172 = vmatprep.subr.bf16.mxu0 %v3654_v1  ;;  %v3536_v37 = vld [vmem:[%s4466_s1 + $0x170] sm:$0xff]  }
  0xb1   : > { %3192 = vmatprep.subr.bf16.mxu1 %v3654_v1 }
  0xb2   : > { %3149 = vmatmul.mubr.bf16.vlgmr.msra.gmra.mrb[16].mxu0 %v1105_v38 }
  0xb3   : > { %3169 = vmatmul.mubr.bf16.vlgmr.msra.gmra.mrb[16].mxu1 %v2573_v40  ;;  %3173 = vmatpush3.bf16.msra.mxu0 %v3491_v39  ;;  %v3537_v40 = vld [vmem:[%s4466_s1 + $0x1b0] sm:$0xff]  }
  0xb4   : > { %3193 = vmatpush3.bf16.msra.mxu1 %v3492_v41  ;;  %3174 = vmatprep.subr.bf16.mxu0 %v3654_v1 }
  0xb5   : > { %3194 = vmatprep.subr.bf16.mxu1 %v3654_v1  ;;  %3188 = vmatprep.mubr.msk.bf16.mxu0 %vm3655_vm0, %v3654_v1 }
  0xb6   : > { %3208 = vmatprep.mubr.msk.bf16.mxu1 %vm3655_vm0, %v3654_v1 }
  0xb7   : > { %3175 = vmatpush3.bf16.msra.mxu0 %v3493_v42  ;;  %v1771_v42 = vshrl.u32 %v3540_v27, 16 }
  0xb8   : > { %3195 = vmatpush3.bf16.msra.mxu1 %v3494_v43  ;;  %3176 = vmatprep.subr.bf16.mxu0 %v3654_v1  ;;  %v1775_v43 = vrot.slane %v1773_v33, 1 }
  0xb9   : > { %3196 = vmatprep.subr.bf16.mxu1 %v3654_v1 }
  0xbb   : > { %3177 = vmatpush3.bf16.msra.mxu0 %v3495_v44  ;;  %v3538_v44 = vld [vmem:[%s4466_s1 + $0x178] sm:$0xff]  }
  0xbc   : > { %3197 = vmatpush3.bf16.msra.mxu1 %v3496_v45  ;;  %3178 = vmatprep.subr.bf16.mxu0 %v3654_v1  ;;  %v3539_v45 = vld [vmem:[%s4466_s1 + $0x1b8] sm:$0xff]  }
  0xbd   : > { %3198 = vmatprep.subr.bf16.mxu1 %v3654_v1 }
  0xbf   : > { %3179 = vmatpush3.bf16.msra.mxu0 %v3497_v46  ;;  %v1776_v46 = vor.u32 %v1775_v43, %v1771_v42 }
  0xc0   : > { %3199 = vmatpush3.bf16.msra.mxu1 %v3498_v47  ;;  %3180 = vmatprep.subr.bf16.mxu0 %v3654_v1  ;;  %v3541_v47 = vld [vmem:[%s4466_s1 + $0x1c0] sm:$0xff]  }
  0xc1   : > { %3200 = vmatprep.subr.bf16.mxu1 %v3654_v1 }
  0xc3   : > { %3181 = vmatpush3.bf16.msra.mxu0 %v3499_v48  ;;  %v2714_v48 = vld [vmem:[%s3816_s10 + $0x8] sm:$0x3] }
  0xc4   : > { %3201 = vmatpush3.bf16.msra.mxu1 %v3500_v49  ;;  %3182 = vmatprep.subr.bf16.mxu0 %v3654_v1  ;;  %v3542_v49 = vld [vmem:[%s4466_s1 + $0x200] sm:$0xff]  }
  0xc5   : > { %3202 = vmatprep.subr.bf16.mxu1 %v3654_v1 }
  0xc7   : > { %3183 = vmatpush3.bf16.msra.mxu0 %v3501_v50  ;;  %v3543_v50 = vld [vmem:[%s4466_s1 + $0x1c8] sm:$0xff]  }
  0xc8   : > { %3203 = vmatpush3.bf16.msra.mxu1 %v3502_v52  ;;  %3184 = vmatprep.subr.bf16.mxu0 %v3654_v1  ;;  %v3545_v52 = vld [vmem:[%s4466_s1 + $0x1d0] sm:$0xff]  }
  0xc9   : > { %3204 = vmatprep.subr.bf16.mxu1 %v3654_v1 }
  0xcb   : > { %3185 = vmatpush3.bf16.msra.mxu0 %v3503_v53  ;;  %v3546_v53 = vld [vmem:[%s4466_s1 + $0x210] sm:$0xff]  }
  0xcc   : > { %3205 = vmatpush3.bf16.msra.mxu1 %v3504_v55  ;;  %3186 = vmatprep.subr.bf16.mxu0 %v3654_v1  ;;  %v3548_v55 = vld [vmem:[%s4466_s1 + $0x218] sm:$0xff]  }
  0xcd   : > { %3206 = vmatprep.subr.bf16.mxu1 %v3654_v1 }
  0xcf   : > { %3187 = vmatpush3.bf16.msra.mxu0 %v3505_v56  ;;  %v3549_v56 = vld [vmem:[%s4466_s1 + $0x1e0] sm:$0xff]  }
  0xd0   : > { %3207 = vmatpush3.bf16.msra.mxu1 %v3506_v59  ;;  %3212 = vmatprep.subr.bf16.mxu0 %v3654_v1  ;;  %v3557_v59 = vld [vmem:[%s3816_s10 + $0x8] ss:$0 sps:$4 sm:$0x77]  }
  0xd1   : > { %3232 = vmatprep.subr.bf16.mxu1 %v3654_v1 }
  0xd2   : > { %3189 = vmatmul.mubr.bf16.vlgmr.msra.gmra.mrb[20].mxu0 %v2572_v60  ;;  %v3552_v60 = vld [vmem:[%s4466_s1 + $0x228] sm:$0xff]  }
  0xd3   : > { %3209 = vmatmul.mubr.bf16.vlgmr.msra.gmra.mrb[20].mxu1 %v1441_v61  ;;  %3213 = vmatpush3.bf16.msra.mxu0 %v3508_v62 }
  0xd4   : > { %3233 = vmatpush3.bf16.msra.mxu1 %v3509_v63  ;;  %3214 = vmatprep.subr.bf16.mxu0 %v3654_v1 }
  0xd5   : > { %3234 = vmatprep.subr.bf16.mxu1 %v3654_v1  ;;  %3228 = vmatprep.mubr.msk.bf16.mxu0 %vm3655_vm0, %v3654_v1 }
  0xd6   : > { %3248 = vmatprep.mubr.msk.bf16.mxu1 %vm3655_vm0, %v3654_v1 }
  0xd7   : > { %3215 = vmatpush3.bf16.msra.mxu0 %v3510_v0 }
  0xd8   : > { %3235 = vmatpush3.bf16.msra.mxu1 %v3511_v2  ;;  %3216 = vmatprep.subr.bf16.mxu0 %v3654_v1 }
  0xd9   : > { %3236 = vmatprep.subr.bf16.mxu1 %v3654_v1 }
  0xdb   : > { %3217 = vmatpush3.bf16.msra.mxu0 %v3512_v3 }
  0xdc   : > { %3237 = vmatpush3.bf16.msra.mxu1 %v3513_v4  ;;  %3218 = vmatprep.subr.bf16.mxu0 %v3654_v1  ;;  %v3553_v4 = vld [vmem:[%s4466_s1 + $0x1f0] sm:$0xff]  }
  0xdd   : > { %3238 = vmatprep.subr.bf16.mxu1 %v3654_v1 }
  0xdf   : > { %3219 = vmatpush3.bf16.msra.mxu0 %v3514_v5  ;;  %v2108_v5 = vshll.u32 %v3557_v59, 16 }
  0xe0   : > { %3239 = vmatpush3.bf16.msra.mxu1 %v3515_v6  ;;  %3220 = vmatprep.subr.bf16.mxu0 %v3654_v1 }
  0xe1   : > { %3240 = vmatprep.subr.bf16.mxu1 %v3654_v1 }
  0xe3   : > { %3221 = vmatpush3.bf16.msra.mxu0 %v3516_v7 }
  0xe4   : > { %3241 = vmatpush3.bf16.msra.mxu1 %v3517_v8  ;;  %3222 = vmatprep.subr.bf16.mxu0 %v3654_v1 }
  0xe5   : > { %3242 = vmatprep.subr.bf16.mxu1 %v3654_v1 }
  0xe7   : > { %3223 = vmatpush3.bf16.msra.mxu0 %v3518_v9  ;;  %v3554_v9 = vld [vmem:[%s4466_s1 + $0x230] sm:$0xff]  }
  0xe8   : > { %3243 = vmatpush3.bf16.msra.mxu1 %v3519_v10  ;;  %3224 = vmatprep.subr.bf16.mxu0 %v3654_v1 }
  0xe9   : > { %3244 = vmatprep.subr.bf16.mxu1 %v3654_v1 }
  0xeb   : > { %3225 = vmatpush3.bf16.msra.mxu0 %v3520_v11  ;;  %v3555_v11 = vld [vmem:[%s4466_s1 + $0x1f8] sm:$0xff]  }
  0xec   : > { %3245 = vmatpush3.bf16.msra.mxu1 %v3521_v12  ;;  %3226 = vmatprep.subr.bf16.mxu0 %v3654_v1  ;;  %v2106_v12 = vshrl.u32 %v3557_v59, 16 }
  0xed   : > { %3246 = vmatprep.subr.bf16.mxu1 %v3654_v1 }
  0xef   : > { %3227 = vmatpush3.bf16.msra.mxu0 %v3522_v13  ;;  %v2110_v13 = vrot.slane %v2108_v5, 1 }
  0xf0   : > { %3247 = vmatpush3.bf16.msra.mxu1 %v3523_v14  ;;  %3252 = vmatprep.subr.bf16.mxu0 %v3654_v1  ;;  %v3556_v14 = vld [vmem:[%s4466_s1 + $0x238] sm:$0xff]  }
  0xf1   : > { %3272 = vmatprep.subr.bf16.mxu1 %v3654_v1 }
  0xf2   : > { %3229 = vmatmul.mubr.bf16.vlgmr.msra.gmra.mrb[24].mxu0 %v2634_v15  ;;  %v2741_v15 = vld [vmem:[%s3816_s10 + $0x1c] sm:$0x3]  ;;  %s175_s10 = sand.u32 1, %s3628_s13  }
  0xf3   : > { %3249 = vmatmul.mubr.bf16.vlgmr.msra.gmra.mrb[24].mxu1 %v2661_v17  ;;  %3253 = vmatpush3.bf16.msra.mxu0 %v3524_v16  ;;  %v2111_v16 = vor.u32 %v2110_v13, %v2106_v12  ;;  %s2347_s11 = sshll.u32 %s175_s10, 3  ;;  %s4413_s7 = scalar_lea.sflag [#allocation3], %s175_s10 }
  0xf4   : > { %3273 = vmatpush3.bf16.msra.mxu1 %v3525_v18  ;;  %3254 = vmatprep.subr.bf16.mxu0 %v3654_v1  ;;  %s4397_s24 = scalar_lea.vmem [#allocation2], %s2347_s11  ;;  %s3562_s11 = sshll.u32 %s3656_s9, 4  ;;  %s3563_s11 = int_to_ptr.vmem [resolvable:$false] %s3562_s11 }
  0xf5   : > { %3274 = vmatprep.subr.bf16.mxu1 %v3654_v1  ;;  %3268 = vmatprep.mubr.msk.bf16.mxu0 %vm3655_vm0, %v3654_v1  ;;  %s2228_s4 = sshll.u32 %s4397_s24, 4  ;;  %s3564_s20 = scalar_lea.vmem %s3563_s11, 256  ;;  %s4403_s4 = int_to_ptr.vmem [resolvable:$true] %s2228_s4 }
  0xf6   : > { %3288 = vmatprep.mubr.msk.bf16.mxu1 %vm3655_vm0, %v3654_v1  ;;  %s3558_s8 = scalar_lea.vmem %s4403_s4, 128  ;;  %p3565_p2 = scmp.lt.s32.totalorder %s4403_s4, %s3563_s11 }
  0xf7   : > { %3255 = vmatpush3.bf16.msra.mxu0 %v3526_v19  ;;  %p3559_p13 = scmp.ne.s32.totalorder %s4403_s4, %s3558_s8  ;;  %p3566_p4 = scmp.lt.s32.totalorder %s3564_s20, %s3558_s8 }
  0xf8   : > { %3275 = vmatpush3.bf16.msra.mxu1 %v3527_v20  ;;  %3256 = vmatprep.subr.bf16.mxu0 %v3654_v1 }
  0xf9   : > { %3276 = vmatprep.subr.bf16.mxu1 %v3654_v1  ;;  %p3560_p0 = pnand %p3559_p13, %p3730_p3  ;;  %p3567_p5 = por %p3566_p4, %p3565_p2 }
  0xfb   : > { %3257 = vmatpush3.bf16.msra.mxu0 %v3528_v21  ;;  %p3561_p1 = pneg %p3560_p0 }
  0xfc   : > { %3277 = vmatpush3.bf16.msra.mxu1 %v3529_v22  ;;  %3258 = vmatprep.subr.bf16.mxu0 %v3654_v1 }
  0xfd   : > { %3278 = vmatprep.subr.bf16.mxu1 %v3654_v1  ;;  %p3568_p6 = pnand %p3567_p5, %p3561_p1 }
  0xff   : > { %3259 = vmatpush3.bf16.msra.mxu0 %v3530_v23 }
 0x100   : > { %3279 = vmatpush3.bf16.msra.mxu1 %v3531_v24  ;;  %3260 = vmatprep.subr.bf16.mxu0 %v3654_v1 }
 0x101   : > { %3280 = vmatprep.subr.bf16.mxu1 %v3654_v1 }
 0x103   : > { %3261 = vmatpush3.bf16.msra.mxu0 %v3532_v25 }
 0x104   : > { %3281 = vmatpush3.bf16.msra.mxu1 %v3533_v26  ;;  %3262 = vmatprep.subr.bf16.mxu0 %v3654_v1 }
 0x105   : > { %v308_v30 = vpop.f32.mrb[0].mxu0  ;;  %3282 = vmatprep.subr.bf16.mxu1 %v3654_v1 }
 0x106   : > { %v396_v31 = vpop.f32.mrb[0].mxu1  ;;  %v2990_v32 = vpop.f32.mrb[1].mxu0 }
 0x107   : > { %v4301_v34 = vadd.f32 %v396_v31, %v308_v30  ;;  %v3010_v35 = vpop.f32.mrb[1].mxu1  ;;  %v311_v36 = vpop.f32.mrb[2].mxu0  ;;  %3263 = vmatpush3.bf16.msra.mxu0 %v3534_v28 }
 0x108   : > { %v399_v38 = vpop.f32.mrb[2].mxu1  ;;  %3283 = vmatpush3.bf16.msra.mxu1 %v3535_v29  ;;  %v2991_v39 = vpop.f32.mrb[3].mxu0  ;;  %3264 = vmatprep.subr.bf16.mxu0 %v3654_v1 }
 0x109   : > { %v3011_v41 = vpop.f32.mrb[3].mxu1  ;;  %3284 = vmatprep.subr.bf16.mxu1 %v3654_v1 }
 0x10b   : > { %3265 = vmatpush3.bf16.msra.mxu0 %v3536_v37  ;;  %v2571_v37 = vld [vmem:[%s4467_s2] ss:$0 sm:$0xff] }
 0x10c   : > { %3285 = vmatpush3.bf16.msra.mxu1 %v3537_v40  ;;  %3266 = vmatprep.subr.bf16.mxu0 %v3654_v1 }
 0x10d   : > { %3286 = vmatprep.subr.bf16.mxu1 %v3654_v1 }
 0x10f   : > { %3267 = vmatpush3.bf16.msra.mxu0 %v3538_v44 }
 0x110   : > { %3287 = vmatpush3.bf16.msra.mxu1 %v3539_v45  ;;  %3292 = vmatprep.subr.bf16.mxu0 %v3654_v1 }
 0x111   : > { %3312 = vmatprep.subr.bf16.mxu1 %v3654_v1 }
 0x112   : > { %3269 = vmatmul.mubr.bf16.vlgmr.msra.gmra.mrb[28].mxu0 %v1776_v46 }
 0x113   : > { %3289 = vmatmul.mubr.bf16.vlgmr.msra.gmra.mrb[28].mxu1 %v2714_v48  ;;  %3293 = vmatpush3.bf16.msra.mxu0 %v3541_v47 }
 0x114   : > { %3313 = vmatpush3.bf16.msra.mxu1 %v3542_v49  ;;  %3294 = vmatprep.subr.bf16.mxu0 %v3654_v1 }
 0x115   : > { %3314 = vmatprep.subr.bf16.mxu1 %v3654_v1  ;;  %3308 = vmatprep.mubr.msk.bf16.mxu0 %vm3655_vm0, %v3654_v1 }
 0x116   : > { %3328 = vmatprep.mubr.msk.bf16.mxu1 %vm3655_vm0, %v3654_v1 }
 0x117   : > { %3295 = vmatpush3.bf16.msra.mxu0 %v3543_v50 }
 0x118   : > { %3315 = vmatpush3.bf16.msra.mxu1 %v3544_v51  ;;  %3296 = vmatprep.subr.bf16.mxu0 %v3654_v1 }
 0x119   : > { %3316 = vmatprep.subr.bf16.mxu1 %v3654_v1 }
 0x11b   : > { %3297 = vmatpush3.bf16.msra.mxu0 %v3545_v52 }
 0x11c   : > { %3317 = vmatpush3.bf16.msra.mxu1 %v3546_v53  ;;  %3298 = vmatprep.subr.bf16.mxu0 %v3654_v1 }
 0x11d   : > { %3318 = vmatprep.subr.bf16.mxu1 %v3654_v1 }
 0x11f   : > { %3299 = vmatpush3.bf16.msra.mxu0 %v3547_v54 }
 0x120   : > { %3319 = vmatpush3.bf16.msra.mxu1 %v3548_v55  ;;  %3300 = vmatprep.subr.bf16.mxu0 %v3654_v1 }
 0x121   : > { %3320 = vmatprep.subr.bf16.mxu1 %v3654_v1 }
 0x123   : > { %3301 = vmatpush3.bf16.msra.mxu0 %v3549_v56 }
 0x124   : > { %3321 = vmatpush3.bf16.msra.mxu1 %v3550_v57  ;;  %3302 = vmatprep.subr.bf16.mxu0 %v3654_v1 }
 0x125   : > { %v513_v61 = vpop.f32.mrb[4].mxu0  ;;  %3322 = vmatprep.subr.bf16.mxu1 %v3654_v1 }
 0x126   : > { %v519_v62 = vadd.f32 %v513_v61, %v4301_v34  ;;  %v623_v63 = vpop.f32.mrb[4].mxu1  ;;  %v3030_v0 = vpop.f32.mrb[5].mxu0 }
 0x127   : > { %v3050_v2 = vpop.f32.mrb[5].mxu1  ;;  %v516_v3 = vpop.f32.mrb[6].mxu0  ;;  %3303 = vmatpush3.bf16.msra.mxu0 %v3551_v58 }
 0x128   : > { %v629_v6 = vadd.f32 %v623_v63, %v519_v62  ;;  %v626_v7 = vpop.f32.mrb[6].mxu1  ;;  %3323 = vmatpush3.bf16.msra.mxu1 %v3552_v60  ;;  %v3031_v8 = vpop.f32.mrb[7].mxu0  ;;  %3304 = vmatprep.subr.bf16.mxu0 %v3654_v1 }
 0x129   : > { %v3051_v10 = vpop.f32.mrb[7].mxu1  ;;  %3324 = vmatprep.subr.bf16.mxu1 %v3654_v1 }
 0x12b   : > { %3305 = vmatpush3.bf16.msra.mxu0 %v3553_v4 }
 0x12c   : > { %3325 = vmatpush3.bf16.msra.mxu1 %v3554_v9  ;;  %3306 = vmatprep.subr.bf16.mxu0 %v3654_v1 }
 0x12d   : > { %3326 = vmatprep.subr.bf16.mxu1 %v3654_v1 }
 0x12f   : > { %3307 = vmatpush3.bf16.msra.mxu0 %v3555_v11 }
 0x130   : > { %3327 = vmatpush3.bf16.msra.mxu1 %v3556_v14 }
 0x132   : > { %3309 = vmatmul.mubr.bf16.vlgmr.msra.gmra.mrb[32].mxu0 %v2741_v15 }
 0x133   : > { %3329 = vmatmul.mubr.bf16.vlgmr.msra.gmra.mrb[32].mxu1 %v2111_v16 }
 0x145   : > { %v733_v17 = vpop.f32.mrb[8].mxu0 }
 0x146   : > { %v739_v18 = vadd.f32 %v733_v17, %v629_v6  ;;  %v851_v19 = vpop.f32.mrb[8].mxu1  ;;  %v3070_v20 = vpop.f32.mrb[9].mxu0 }
 0x147   : > { %v3090_v21 = vpop.f32.mrb[9].mxu1  ;;  %v736_v22 = vpop.f32.mrb[10].mxu0 }
 0x148   : > { %v857_v23 = vadd.f32 %v851_v19, %v739_v18  ;;  %v854_v24 = vpop.f32.mrb[10].mxu1  ;;  %v3071_v25 = vpop.f32.mrb[11].mxu0 }
 0x149   : > { %v3091_v26 = vpop.f32.mrb[11].mxu1 }
 0x165   : > { %v961_v27 = vpop.f32.mrb[12].mxu0 }
 0x166   : > { %v967_v1 = vadd.f32 %v961_v27, %v857_v23  ;;  %v1071_v28 = vpop.f32.mrb[12].mxu1  ;;  %v3110_v29 = vpop.f32.mrb[13].mxu0 }
 0x167   : > { %v3130_v30 = vpop.f32.mrb[13].mxu1  ;;  %v964_v31 = vpop.f32.mrb[14].mxu0 }
 0x168   : > { %v1077_v32 = vadd.f32 %v1071_v28, %v967_v1  ;;  %v1074_v33 = vpop.f32.mrb[14].mxu1  ;;  %v3111_v34 = vpop.f32.mrb[15].mxu0 }
 0x169   : > { %v3131_v35 = vpop.f32.mrb[15].mxu1 }
 0x185   : > { %v1189_v36 = vpop.f32.mrb[16].mxu0 }
 0x186   : > { %v1195_v38 = vadd.f32 %v1189_v36, %v1077_v32  ;;  %v1321_v39 = vpop.f32.mrb[16].mxu1  ;;  %v3150_v40 = vpop.f32.mrb[17].mxu0 }
 0x187   : > { %v3170_v41 = vpop.f32.mrb[17].mxu1  ;;  %v1192_v42 = vpop.f32.mrb[18].mxu0 }
 0x188   : > { %v1203_v43 = vadd.f32 %v2571_v37, %v1195_v38  ;;  %v1324_v44 = vpop.f32.mrb[18].mxu1  ;;  %v3151_v45 = vpop.f32.mrb[19].mxu0 }
 0x189   : > { %v3171_v46 = vpop.f32.mrb[19].mxu1 }
 0x18a   : > { %1204 = vst [vmem:[%s4397_s24] sm:$0xf] %v1203_v43 }
 0x1a5   : > { %v1409_v47 = vpop.f32.mrb[20].mxu0 }
 0x1a6   : > { %v1410_v48 = vadd.f32 %v1409_v47, %v1321_v39  ;;  %v1525_v49 = vpop.f32.mrb[20].mxu1  ;;  %v3190_v50 = vpop.f32.mrb[21].mxu0 }
 0x1a7   : > { %v3210_v51 = vpop.f32.mrb[21].mxu1  ;;  %v1412_v52 = vpop.f32.mrb[22].mxu0 }
 0x1a8   : > { %v1531_v53 = vadd.f32 %v1525_v49, %v1410_v48  ;;  %v1528_v54 = vpop.f32.mrb[22].mxu1  ;;  %v3191_v55 = vpop.f32.mrb[23].mxu0 }
 0x1a9   : > { %v3211_v56 = vpop.f32.mrb[23].mxu1 }
 0x1c5   : > { %v1634_v57 = vpop.f32.mrb[24].mxu0 }
 0x1c6   : > { %v1640_v58 = vadd.f32 %v1634_v57, %v1531_v53  ;;  %v1743_v59 = vpop.f32.mrb[24].mxu1  ;;  %v3230_v60 = vpop.f32.mrb[25].mxu0 }
 0x1c7   : > { %v3250_v61 = vpop.f32.mrb[25].mxu1  ;;  %v1637_v62 = vpop.f32.mrb[26].mxu0 }
 0x1c8   : > { %v1749_v63 = vadd.f32 %v1743_v59, %v1640_v58  ;;  %v1746_v0 = vpop.f32.mrb[26].mxu1  ;;  %v3231_v2 = vpop.f32.mrb[27].mxu0 }
 0x1c9   : > { %v3251_v3 = vpop.f32.mrb[27].mxu1 }
 0x1e5   : > { %v1860_v4 = vpop.f32.mrb[28].mxu0 }
 0x1e6   : > { %v1866_v5 = vadd.f32 %v1860_v4, %v1749_v63  ;;  %v1969_v6 = vpop.f32.mrb[28].mxu1  ;;  %v3270_v7 = vpop.f32.mrb[29].mxu0 }
 0x1e7   : > { %v3290_v8 = vpop.f32.mrb[29].mxu1  ;;  %v1863_v9 = vpop.f32.mrb[30].mxu0 }
 0x1e8   : > { %v1975_v10 = vadd.f32 %v1969_v6, %v1866_v5  ;;  %v1972_v11 = vpop.f32.mrb[30].mxu1  ;;  %v3271_v12 = vpop.f32.mrb[31].mxu0 }
 0x1e9   : > { %v3291_v13 = vpop.f32.mrb[31].mxu1 }
 0x205   : > { %v2078_v14 = vpop.f32.mrb[32].mxu0 }
 0x206   : > { %v2084_v15 = vadd.f32 %v2078_v14, %v1975_v10  ;;  %v2195_v16 = vpop.f32.mrb[32].mxu1  ;;  %v3310_v17 = vpop.f32.mrb[33].mxu0 }
 0x207   : > { %v3330_v18 = vpop.f32.mrb[33].mxu1  ;;  %v2081_v19 = vpop.f32.mrb[34].mxu0 }
 0x208   : > { %v2201_v20 = vadd.f32 %v2195_v16, %v2084_v15  ;;  %v2198_v21 = vpop.f32.mrb[34].mxu1  ;;  %v3311_v22 = vpop.f32.mrb[35].mxu0 }
 0x209   : > { %v3331_v23 = vpop.f32.mrb[35].mxu1 }
 0x20a   : > { %v2209_v24 = vadd.f32 %v2571_v37, %v2201_v20 }
 0x20c   : > { %2793 = vst [vmem:[%s4397_s24 + $0x4] sm:$0xf] %v2209_v24 }
 0x20d   : > { %3571 = shalt.err (!%p3568_p6)
}
 0x20e   : > { %s3572_s10 = scalar_lea.hbm %s4408_s6, 128  ;;  %s3576_s27 = scalar_lea.hbm %s4468_s3, 512 }
 0x20f   : > { %p3573_p7 = scmp.ne.s32.totalorder %s4408_s6, %s3572_s10  ;;  %p3577_p11 = scmp.lt.u32.totalorder %s4408_s6, %s4468_s3 }
 0x210   : > { %p3578_p12 = scmp.lt.u32.totalorder %s3576_s27, %s3572_s10  ;;  %p3580_p0 = scmp.lt.u32.totalorder %s3572_s10, %s4408_s6 }
 0x211   : > { %p3574_p9 = pnand %p3573_p7, %p3730_p3 }
 0x212   : > { %p3579_p13 = por %p3578_p12, %p3577_p11 }
 0x213   : > { %p3575_p10 = pneg %p3574_p9 }
 0x214   : > { %p3581_p1 = por %p3580_p0, %p3579_p13 }
 0x216   : > { %p3582_p2 = pnand %p3581_p1, %p3575_p10 }
 0x218   : > { %3585 = shalt.err (!%p3582_p2)
}
 0x219   : > { %s3657_s5 = smov 64   ;;  %s3658_s15 = smov 4  }
 0x21a   : > { %3333 = dma.vmem_to_hbm [thread:$0]  (%p3730_p3), %s4403_s4, 128, %s4408_s6, %s4413_s7, %s3657_s5, %s3657_s5, %s3658_s15  }
 0x21b PF: > { %p3339_p4 = scmp.ge.s32.totalorder %s3652_s19, 2  ;;  %s2243_s16 = sand.u32 1, %s3624_s12  }
 0x21c   : > { %s2244_s8 = scalar_lea.sflag [#allocation3], %s2243_s16 }
 0x21d   : > { %p3336_p5 = pnand %p3339_p4, %p3739_p8 }
 0x21f   : > { %3619 = dma.done.wait (!%p3336_p5), %s2244_s8, 128  }
 0x220   : > { %3621 = vsyncadd (!%p3336_p5), %s2244_s8, 4294967168  ;;  %s16_s19 = sadd.s32 1, %s3652_s19   ;;  %s4471_s12 = smov %s3628_s13 }
 0x221   : > { %p13_p6 = scmp.ge.s32.totalorder %s16_s19, 6   ;;  %s4472_s13 = smov %s3632_s14 }
 0x222   : > { %s4473_s14 = smov %s3748_s30  ;;  %s4474_s15 = smov %s3644_s17 }
 0x223   : > { %s4475_s16 = smov %s3648_s18  ;;  %s4476_s17 = smov %s4479_s22 }
 0x224   : > { %s4477_s18 = smov %s4483_s23  ;;  %15 = sbr.rel (!%p13_p6) target bundleno = 5 (0x5), region = 86 }
 0x22b   :  { %2249 = vsyncpa [#allocation3], 1 }
 0x22c   :  { %2251 = vsyncpa [#allocation3 + $0x1], 1 }

</bundles_post_ra>
